<compile_context>
chip_gen: v6e
topology: v6e:2x2x1
jax: 0.10.0
libtpu: 0.0.40
codegen_flags: <defaults>
</compile_context>

<pallas_src>
import functools
import math

import jax
import jax.numpy as jnp
from jax.experimental import pallas as pl
from jax.experimental.pallas import tpu as pltpu


def _round_up(v, m):
    return ((v + m - 1) // m) * m


def _choose_time_chunk(seq_len, batch, target=32):
    """Chunk size whose row count (t_chunk*batch) is a multiple of 8 (dense
    sublanes) and small enough that the static step loop fully unrolls."""
    step = 8 // math.gcd(batch, 8)
    tc = min(max(target, step), _round_up(seq_len, step))
    return _round_up(tc, step)


# ---------------- fused LSTM layer kernel (input proj + recurrence) -----------
def _lstm_layer_kernel(x_ref, w_ih_ref, w_hh_ref, b_ref, out_ref,
                       h_sc, c_sc, gates_sc, *, hidden_pad, batch, t_chunk):
    chunk = pl.program_id(0)

    @pl.when(chunk == 0)
    def _():
        h_sc[...] = jnp.zeros_like(h_sc)
        c_sc[...] = jnp.zeros_like(c_sc)

    hp = hidden_pad

    # Fused per-chunk input projection: one MXU matmul per chunk into VMEM
    # scratch (replaces the old gates_x HBM round trip).
    gates_sc[...] = (
        jnp.dot(x_ref[...].astype(w_ih_ref.dtype), w_ih_ref[...],
                preferred_element_type=jnp.float32)
        + b_ref[...])

    h = h_sc[...]
    c = c_sc[...]
    hs = []
    # Static, fully-unrolled step loop (T is padded to a multiple of t_chunk,
    # so every chunk takes this path).
    for t in range(t_chunk):
        row = t * batch
        # Recurrent matmul: re-read W_hh from VMEM each step (do not pin the
        # 128 KiB weight in vregs across the unrolled loop).
        gates = (gates_sc[pl.ds(row, batch), :]
                 + jnp.dot(h.astype(w_hh_ref.dtype), w_hh_ref[...],
                           preferred_element_type=jnp.float32))
        # PyTorch gate order i, f, g, o; Hp is a multiple of 128 so every slice
        # is lane-aligned.  Padded gate lanes are exactly 0, so padded h/c
        # lanes stay exactly 0.
        i = jax.nn.sigmoid(gates[:, 0 * hp:1 * hp])
        f = jax.nn.sigmoid(gates[:, 1 * hp:2 * hp])
        g = jnp.tanh(gates[:, 2 * hp:3 * hp])
        o = jax.nn.sigmoid(gates[:, 3 * hp:4 * hp])
        c = f * c + i * g
        h = o * jnp.tanh(c)
        hs.append(h)
    # One dense, lane/sublane-packed bf16 store per chunk.
    out_ref[...] = jnp.concatenate(hs, axis=0).astype(out_ref.dtype)
    h_sc[...] = h
    c_sc[...] = c


def lstm_layer_pallas(x_seq, w_ih, w_hh, b, *, hidden_pad, batch, t_chunk,
                      vmem_limit_bytes=None):
    """x_seq: (T_pad*B, d) time-major flattened -> (T_pad*B, Hp) bfloat16."""
    rows, d = x_seq.shape
    hp = hidden_pad
    assert rows % (t_chunk * batch) == 0
    n_chunks = rows // (t_chunk * batch)
    kernel = functools.partial(_lstm_layer_kernel, hidden_pad=hp, batch=batch,
                               t_chunk=t_chunk)
    cp = dict(dimension_semantics=("arbitrary",))   # recurrence is serial in time
    if vmem_limit_bytes is not None:
        cp["vmem_limit_bytes"] = vmem_limit_bytes
    return pl.pallas_call(
        kernel,
        out_shape=jax.ShapeDtypeStruct((rows, hp), jnp.bfloat16),
        grid_spec=pltpu.PrefetchScalarGridSpec(
            num_scalar_prefetch=0,
            grid=(n_chunks,),
            in_specs=[
                pl.BlockSpec((t_chunk * batch, d), lambda c: (c, 0)),
                # Constant-index weight / bias blocks (VMEM-resident across chunks).
                pl.BlockSpec((d, 4 * hp), lambda c: (0, 0)),
                pl.BlockSpec((hp, 4 * hp), lambda c: (0, 0)),
                pl.BlockSpec((1, 4 * hp), lambda c: (0, 0)),
            ],
            out_specs=pl.BlockSpec((t_chunk * batch, hp), lambda c: (c, 0)),
            scratch_shapes=[
                pltpu.VMEM((batch, hp), jnp.float32),               # h carry
                pltpu.VMEM((batch, hp), jnp.float32),               # c carry
                pltpu.VMEM((t_chunk * batch, 4 * hp), jnp.float32),  # chunk gates
            ],
        ),
        compiler_params=pltpu.CompilerParams(**cp),
    )(x_seq, w_ih, w_hh, b)


# --------------------- tiled matmul + bias (final linear) ---------------------
def _matmul_bias_kernel(x_ref, w_ref, b_ref, o_ref):
    acc = jnp.dot(x_ref[...].astype(w_ref.dtype), w_ref[...],
                  preferred_element_type=jnp.float32)
    o_ref[...] = (acc + b_ref[...]).astype(o_ref.dtype)


def matmul_bias_pallas(x, w, b, *, row_tile=512, col_tile=512):
    """x: (N, K), w: (K, M) bf16, b: (1, M) f32 -> (N, M) f32."""
    n, k = x.shape
    m = w.shape[1]
    tn = min(n, row_tile)
    tm = min(m, col_tile)
    return pl.pallas_call(
        _matmul_bias_kernel,
        out_shape=jax.ShapeDtypeStruct((n, m), jnp.float32),
        grid_spec=pltpu.PrefetchScalarGridSpec(
            num_scalar_prefetch=0,
            grid=(pl.cdiv(n, tn), pl.cdiv(m, tm)),
            in_specs=[
                pl.BlockSpec((tn, k), lambda r, c: (r, 0)),
                pl.BlockSpec((k, tm), lambda r, c: (0, c)),
                pl.BlockSpec((1, tm), lambda r, c: (0, c)),
            ],
            out_specs=pl.BlockSpec((tn, tm), lambda r, c: (r, c)),
        ),
        compiler_params=pltpu.CompilerParams(
            dimension_semantics=("parallel", "parallel")),
    )(x, w, b)


# --------------------------------- model glue ---------------------------------
def lstm_model_forward(x, kparams, *, hidden_pad, output_size, future, t_chunk):
    """x: (B, T, input_size) batch-first -> (B, future, output_size)."""
    B, T, _ = x.shape
    hp = hidden_pad
    t_pad = _round_up(T, t_chunk)
    # Single small transpose of the raw input; everything afterwards stays
    # time-major and flattened (T*B, .), so no per-layer HBM transposes.
    seq = jnp.transpose(x, (1, 0, 2))                 # (T, B, in)
    if t_pad != T:
        seq = jnp.pad(seq, ((0, t_pad - T), (0, 0), (0, 0)))
    seq = seq.reshape(t_pad * B, -1)
    for layer in kparams["lstm"]:
        seq = lstm_layer_pallas(seq, layer["w_ih"], layer["w_hh"], layer["b"],
                                hidden_pad=hp, batch=B, t_chunk=t_chunk)
    # Last `future` VALID timesteps (padded steps are at the end and discarded).
    tail = seq[(T - future) * B: T * B]               # (future*B, Hp) bf16
    pred = matmul_bias_pallas(tail, kparams["w_out"], kparams["b_out"])
    pred = pred[:, :output_size].reshape(future, B, output_size)
    return jnp.transpose(pred, (1, 0, 2))             # (B, future, out)


lstm_model_forward_jit = jax.jit(
    lstm_model_forward,
    static_argnames=("hidden_pad", "output_size", "future", "t_chunk"))


# ------------------------------ parameter setup --------------------------------
def init_reference_params(key, input_size, hidden_size, output_size, num_layers):
    """PyTorch-style uniform(-1/sqrt(H), 1/sqrt(H)); weights stored transposed."""
    bound = 1.0 / float(hidden_size) ** 0.5
    params = {"lstm": []}
    for layer in range(num_layers):
        in_dim = input_size if layer == 0 else hidden_size
        key, k1, k2, k3, k4 = jax.random.split(key, 5)
        params["lstm"].append({
            "w_ih": jax.random.uniform(k1, (in_dim, 4 * hidden_size), jnp.float32, -bound, bound),
            "w_hh": jax.random.uniform(k2, (hidden_size, 4 * hidden_size), jnp.float32, -bound, bound),
            "b_ih": jax.random.uniform(k3, (4 * hidden_size,), jnp.float32, -bound, bound),
            "b_hh": jax.random.uniform(k4, (4 * hidden_size,), jnp.float32, -bound, bound),
        })
    key, k5, k6 = jax.random.split(key, 3)
    params["w_out"] = jax.random.uniform(k5, (hidden_size, output_size), jnp.float32, -bound, bound)
    params["b_out"] = jax.random.uniform(k6, (output_size,), jnp.float32, -bound, bound)
    return params


def _pad_gate_cols(w, h, hp):
    """(rows, 4h) -> (rows, 4hp): each i/f/g/o block zero-padded to hp columns."""
    blocks = [jnp.pad(w[:, g * h:(g + 1) * h], ((0, 0), (0, hp - h))) for g in range(4)]
    return jnp.concatenate(blocks, axis=1)


def _pad_rows(w, rows_to):
    return jnp.pad(w, ((0, rows_to - w.shape[0]), (0, 0)))


def pack_kernel_params(ref_params, hidden_size, output_size):
    """Pad hidden/output dims to multiples of 128, cast weights to bf16.
    Zero padding keeps padded gate/h/c lanes exactly zero throughout."""
    h = hidden_size
    hp = _round_up(h, 128)
    op = _round_up(output_size, 128)
    packed = {"lstm": []}
    for li, layer in enumerate(ref_params["lstm"]):
        w_ih = layer["w_ih"]
        if li > 0:                                  # hidden-to-hidden input is padded
            w_ih = _pad_rows(w_ih, hp)
        b = (layer["b_ih"] + layer["b_hh"])[None, :]
        packed["lstm"].append({
            "w_ih": _pad_gate_cols(w_ih, h, hp).astype(jnp.bfloat16),
            "w_hh": _pad_gate_cols(_pad_rows(layer["w_hh"], hp), h, hp).astype(jnp.bfloat16),
            "b": _pad_gate_cols(b, h, hp).astype(jnp.float32),
        })
    packed["w_out"] = jnp.pad(ref_params["w_out"],
                              ((0, hp - h), (0, op - output_size))).astype(jnp.bfloat16)
    packed["b_out"] = jnp.pad(ref_params["b_out"],
                              (0, op - output_size))[None, :].astype(jnp.float32)
    return packed


# ------------------------------ pure-JAX reference ------------------------------
def lstm_model_reference(x, ref_params, hidden_size, future):
    """Same LSTM semantics (bf16 matmul inputs, f32 accumulation/state)."""
    B = x.shape[0]
    H = hidden_size
    seq = x
    for layer in ref_params["lstm"]:
        w_ih = layer["w_ih"].astype(jnp.bfloat16)
        w_hh = layer["w_hh"].astype(jnp.bfloat16)
        b = layer["b_ih"] + layer["b_hh"]

        def step(carry, x_t, w_ih=w_ih, w_hh=w_hh, b=b):
            h, c = carry
            gates = (jnp.dot(x_t.astype(jnp.bfloat16), w_ih, preferred_element_type=jnp.float32)
                     + jnp.dot(h.astype(jnp.bfloat16), w_hh, preferred_element_type=jnp.float32)
                     + b)
            i = jax.nn.sigmoid(gates[:, 0 * H:1 * H])
            f = jax.nn.sigmoid(gates[:, 1 * H:2 * H])
            g = jnp.tanh(gates[:, 2 * H:3 * H])
            o = jax.nn.sigmoid(gates[:, 3 * H:4 * H])
            c = f * c + i * g
            h = o * jnp.tanh(c)
            return (h, c), h

        init = (jnp.zeros((B, H), jnp.float32), jnp.zeros((B, H), jnp.float32))
        _, hs = jax.lax.scan(step, init, jnp.transpose(seq, (1, 0, 2)))
        seq = jnp.transpose(hs, (1, 0, 2))
    tail = seq[:, -future:, :]                                # (B, future, H)
    bf = tail.shape[0] * tail.shape[1]
    pred = (jnp.dot(tail.reshape(bf, H).astype(jnp.bfloat16),
                    ref_params["w_out"].astype(jnp.bfloat16),
                    preferred_element_type=jnp.float32)
            + ref_params["b_out"])
    return pred.reshape(tail.shape[0], tail.shape[1], -1)


# ------------------------------------ main --------------------------------------
if __name__ == "__main__":
    batch, seq_len = 2, 8
    input_size, hidden_size, output_size, num_layers = 4, 32, 4, 2
    future = 4

    key = jax.random.PRNGKey(0)
    key, xkey = jax.random.split(key)
    x = jax.random.normal(xkey, (batch, seq_len, input_size), jnp.float32)

    ref_params = init_reference_params(key, input_size, hidden_size, output_size, num_layers)
    kparams = pack_kernel_params(ref_params, hidden_size, output_size)
    hp = _round_up(hidden_size, 128)
    t_chunk = _choose_time_chunk(seq_len, batch)

    preds = lstm_model_forward_jit(x, kparams, hidden_pad=hp,
                                   output_size=output_size, future=future,
                                   t_chunk=t_chunk)
    preds = jax.block_until_ready(preds)
    assert preds.shape == (batch, future, output_size), preds.shape

    ref = lstm_model_reference(x, ref_params, hidden_size, future)
    assert jnp.allclose(preds, ref, atol=2e-3, rtol=2e-3), \
        float(jnp.max(jnp.abs(preds - ref)))

    print("KERNEL_OK")
</pallas_src>

<mosaic_0001>
module attributes {stable_mosaic.version = 11 : i64} {
  func.func @_lstm_layer_kernel(%arg0: i32, %arg1: memref<16x128xbf16, #tpu.memory_space<vmem>>, %arg2: memref<128x512xbf16, #tpu.memory_space<vmem>>, %arg3: memref<128x512xbf16, #tpu.memory_space<vmem>>, %arg4: memref<1x512xf32, #tpu.memory_space<vmem>>, %arg5: memref<16x128xbf16, #tpu.memory_space<vmem>>, %arg6: memref<2x128xf32, #tpu.memory_space<vmem>>, %arg7: memref<2x128xf32, #tpu.memory_space<vmem>>, %arg8: memref<16x512xf32, #tpu.memory_space<vmem>>) attributes {dimension_semantics = [#tpu.dimension_semantics<arbitrary>], iteration_bounds = array<i64: 1>, scalar_prefetch = 0 : i64, scratch_operands = 3 : i64, tpu.core_type = #tpu.core_type<tc>, window_params = [{transform_indices = @transform_0, window_bounds = array<i64: 16, 128>}, {pipeline_mode = #tpu.pipeline_mode<synchronous>, transform_indices = @transform_1, window_bounds = array<i64: 128, 512>}, {pipeline_mode = #tpu.pipeline_mode<synchronous>, transform_indices = @transform_2, window_bounds = array<i64: 128, 512>}, {pipeline_mode = #tpu.pipeline_mode<synchronous>, transform_indices = @transform_3, window_bounds = array<i64: 1, 512>}, {transform_indices = @transform_4, window_bounds = array<i64: 16, 128>}]} {
    %c0_i32 = arith.constant 0 : i32
    %0 = arith.cmpi eq, %arg0, %c0_i32 : i32
    %1 = arith.extui %0 : i1 to i32
    %c0_i32_0 = arith.constant 0 : i32
    %2 = arith.cmpi ne, %1, %c0_i32_0 : i32
    scf.if %2 {
      %cst_75 = arith.constant 0.000000e+00 : f32
      %257 = vector.broadcast %cst_75 : f32 to vector<2x128xf32>
      %c0_76 = arith.constant 0 : index
      %c0_77 = arith.constant 0 : index
      %258 = vector.load %arg6[%c0_76, %c0_77] : memref<2x128xf32, #tpu.memory_space<vmem>>, vector<2x128xf32>
      tpu.vector_store %arg6[%c0_76, %c0_77], %257 {strides = array<i32>} : memref<2x128xf32, #tpu.memory_space<vmem>>, vector<2x128xf32>,
      %cst_78 = arith.constant 0.000000e+00 : f32
      %259 = vector.broadcast %cst_78 : f32 to vector<2x128xf32>
      %c0_79 = arith.constant 0 : index
      %c0_80 = arith.constant 0 : index
      %260 = vector.load %arg7[%c0_79, %c0_80] : memref<2x128xf32, #tpu.memory_space<vmem>>, vector<2x128xf32>
      tpu.vector_store %arg7[%c0_79, %c0_80], %259 {strides = array<i32>} : memref<2x128xf32, #tpu.memory_space<vmem>>, vector<2x128xf32>,
    } else {
    }
    %c0 = arith.constant 0 : index
    %c0_1 = arith.constant 0 : index
    %3 = vector.load %arg1[%c0, %c0_1] : memref<16x128xbf16, #tpu.memory_space<vmem>>, vector<16x128xbf16>
    %c0_2 = arith.constant 0 : index
    %c0_3 = arith.constant 0 : index
    %4 = vector.load %arg2[%c0_2, %c0_3] : memref<128x512xbf16, #tpu.memory_space<vmem>>, vector<128x512xbf16>
    %cst = arith.constant dense<0.000000e+00> : vector<16x512xf32>
    %5 = tpu.matmul %3, %4, %cst {dimension_numbers = #tpu.dot_dimension_numbers<[1], [0], [0], [1], [0, 0, 1, 1], [], []>} : vector<16x128xbf16>, vector<128x512xbf16>, vector<16x512xf32> -> vector<16x512xf32>
    %c0_4 = arith.constant 0 : index
    %c0_5 = arith.constant 0 : index
    %6 = vector.load %arg4[%c0_4, %c0_5] : memref<1x512xf32, #tpu.memory_space<vmem>>, vector<1x512xf32>
    %7 = vector.broadcast %6 : vector<1x512xf32> to vector<16x512xf32>
    %8 = arith.addf %5, %7 : vector<16x512xf32>
    %c0_6 = arith.constant 0 : index
    %c0_7 = arith.constant 0 : index
    %9 = vector.load %arg8[%c0_6, %c0_7] : memref<16x512xf32, #tpu.memory_space<vmem>>, vector<16x512xf32>
    tpu.vector_store %arg8[%c0_6, %c0_7], %8 {strides = array<i32>} : memref<16x512xf32, #tpu.memory_space<vmem>>, vector<16x512xf32>,
    %c0_8 = arith.constant 0 : index
    %c0_9 = arith.constant 0 : index
    %10 = vector.load %arg6[%c0_8, %c0_9] : memref<2x128xf32, #tpu.memory_space<vmem>>, vector<2x128xf32>
    %c0_10 = arith.constant 0 : index
    %c0_11 = arith.constant 0 : index
    %11 = vector.load %arg7[%c0_10, %c0_11] : memref<2x128xf32, #tpu.memory_space<vmem>>, vector<2x128xf32>
    %c0_12 = arith.constant 0 : index
    %c0_13 = arith.constant 0 : index
    %12 = vector.load %arg8[%c0_12, %c0_13] : memref<16x512xf32, #tpu.memory_space<vmem>>, vector<2x512xf32>
    %13 = arith.truncf %10 : vector<2x128xf32> to vector<2x128xbf16>
    %c0_14 = arith.constant 0 : index
    %c0_15 = arith.constant 0 : index
    %14 = vector.load %arg3[%c0_14, %c0_15] : memref<128x512xbf16, #tpu.memory_space<vmem>>, vector<128x512xbf16>
    %cst_16 = arith.constant dense<0.000000e+00> : vector<2x512xf32>
    %15 = tpu.matmul %13, %14, %cst_16 {dimension_numbers = #tpu.dot_dimension_numbers<[1], [0], [0], [1], [0, 0, 1, 1], [], []>} : vector<2x128xbf16>, vector<128x512xbf16>, vector<2x512xf32> -> vector<2x512xf32>
    %16 = arith.addf %12, %15 : vector<2x512xf32>
    %17 = vector.extract_strided_slice %16 {offsets = [0, 0], sizes = [2, 128], strides = [1, 1]} : vector<2x512xf32> to vector<2x128xf32>
    %18 = arith.negf %17 : vector<2x128xf32>
    %19 = math.exp %18 : vector<2x128xf32>
    %cst_17 = arith.constant 1.000000e+00 : f32
    %20 = vector.broadcast %cst_17 : f32 to vector<2x128xf32>
    %21 = arith.addf %20, %19 : vector<2x128xf32>
    %22 = arith.divf %20, %21 : vector<2x128xf32>
    %23 = vector.extract_strided_slice %16 {offsets = [0, 128], sizes = [2, 128], strides = [1, 1]} : vector<2x512xf32> to vector<2x128xf32>
    %24 = arith.negf %23 : vector<2x128xf32>
    %25 = math.exp %24 : vector<2x128xf32>
    %cst_18 = arith.constant 1.000000e+00 : f32
    %26 = vector.broadcast %cst_18 : f32 to vector<2x128xf32>
    %27 = arith.addf %26, %25 : vector<2x128xf32>
    %28 = arith.divf %26, %27 : vector<2x128xf32>
    %29 = vector.extract_strided_slice %16 {offsets = [0, 256], sizes = [2, 128], strides = [1, 1]} : vector<2x512xf32> to vector<2x128xf32>
    %30 = math.tanh %29 : vector<2x128xf32>
    %31 = vector.extract_strided_slice %16 {offsets = [0, 384], sizes = [2, 128], strides = [1, 1]} : vector<2x512xf32> to vector<2x128xf32>
    %32 = arith.negf %31 : vector<2x128xf32>
    %33 = math.exp %32 : vector<2x128xf32>
    %cst_19 = arith.constant 1.000000e+00 : f32
    %34 = vector.broadcast %cst_19 : f32 to vector<2x128xf32>
    %35 = arith.addf %34, %33 : vector<2x128xf32>
    %36 = arith.divf %34, %35 : vector<2x128xf32>
    %37 = arith.mulf %28, %11 : vector<2x128xf32>
    %38 = arith.mulf %22, %30 : vector<2x128xf32>
    %39 = arith.addf %37, %38 : vector<2x128xf32>
    %40 = math.tanh %39 : vector<2x128xf32>
    %41 = arith.mulf %36, %40 : vector<2x128xf32>
    %c2 = arith.constant 2 : index
    %c0_20 = arith.constant 0 : index
    %42 = vector.load %arg8[%c2, %c0_20] : memref<16x512xf32, #tpu.memory_space<vmem>>, vector<2x512xf32>
    %43 = arith.truncf %41 : vector<2x128xf32> to vector<2x128xbf16>
    %c0_21 = arith.constant 0 : index
    %c0_22 = arith.constant 0 : index
    %44 = vector.load %arg3[%c0_21, %c0_22] : memref<128x512xbf16, #tpu.memory_space<vmem>>, vector<128x512xbf16>
    %cst_23 = arith.constant dense<0.000000e+00> : vector<2x512xf32>
    %45 = tpu.matmul %43, %44, %cst_23 {dimension_numbers = #tpu.dot_dimension_numbers<[1], [0], [0], [1], [0, 0, 1, 1], [], []>} : vector<2x128xbf16>, vector<128x512xbf16>, vector<2x512xf32> -> vector<2x512xf32>
    %46 = arith.addf %42, %45 : vector<2x512xf32>
    %47 = vector.extract_strided_slice %46 {offsets = [0, 0], sizes = [2, 128], strides = [1, 1]} : vector<2x512xf32> to vector<2x128xf32>
    %48 = arith.negf %47 : vector<2x128xf32>
    %49 = math.exp %48 : vector<2x128xf32>
    %cst_24 = arith.constant 1.000000e+00 : f32
    %50 = vector.broadcast %cst_24 : f32 to vector<2x128xf32>
    %51 = arith.addf %50, %49 : vector<2x128xf32>
    %52 = arith.divf %50, %51 : vector<2x128xf32>
    %53 = vector.extract_strided_slice %46 {offsets = [0, 128], sizes = [2, 128], strides = [1, 1]} : vector<2x512xf32> to vector<2x128xf32>
    %54 = arith.negf %53 : vector<2x128xf32>
    %55 = math.exp %54 : vector<2x128xf32>
    %cst_25 = arith.constant 1.000000e+00 : f32
    %56 = vector.broadcast %cst_25 : f32 to vector<2x128xf32>
    %57 = arith.addf %56, %55 : vector<2x128xf32>
    %58 = arith.divf %56, %57 : vector<2x128xf32>
    %59 = vector.extract_strided_slice %46 {offsets = [0, 256], sizes = [2, 128], strides = [1, 1]} : vector<2x512xf32> to vector<2x128xf32>
    %60 = math.tanh %59 : vector<2x128xf32>
    %61 = vector.extract_strided_slice %46 {offsets = [0, 384], sizes = [2, 128], strides = [1, 1]} : vector<2x512xf32> to vector<2x128xf32>
    %62 = arith.negf %61 : vector<2x128xf32>
    %63 = math.exp %62 : vector<2x128xf32>
    %cst_26 = arith.constant 1.000000e+00 : f32
    %64 = vector.broadcast %cst_26 : f32 to vector<2x128xf32>
    %65 = arith.addf %64, %63 : vector<2x128xf32>
    %66 = arith.divf %64, %65 : vector<2x128xf32>
    %67 = arith.mulf %58, %39 : vector<2x128xf32>
    %68 = arith.mulf %52, %60 : vector<2x128xf32>
    %69 = arith.addf %67, %68 : vector<2x128xf32>
    %70 = math.tanh %69 : vector<2x128xf32>
    %71 = arith.mulf %66, %70 : vector<2x128xf32>
    %c4 = arith.constant 4 : index
    %c0_27 = arith.constant 0 : index
    %72 = vector.load %arg8[%c4, %c0_27] : memref<16x512xf32, #tpu.memory_space<vmem>>, vector<2x512xf32>
    %73 = arith.truncf %71 : vector<2x128xf32> to vector<2x128xbf16>
    %c0_28 = arith.constant 0 : index
    %c0_29 = arith.constant 0 : index
    %74 = vector.load %arg3[%c0_28, %c0_29] : memref<128x512xbf16, #tpu.memory_space<vmem>>, vector<128x512xbf16>
    %cst_30 = arith.constant dense<0.000000e+00> : vector<2x512xf32>
    %75 = tpu.matmul %73, %74, %cst_30 {dimension_numbers = #tpu.dot_dimension_numbers<[1], [0], [0], [1], [0, 0, 1, 1], [], []>} : vector<2x128xbf16>, vector<128x512xbf16>, vector<2x512xf32> -> vector<2x512xf32>
    %76 = arith.addf %72, %75 : vector<2x512xf32>
    %77 = vector.extract_strided_slice %76 {offsets = [0, 0], sizes = [2, 128], strides = [1, 1]} : vector<2x512xf32> to vector<2x128xf32>
    %78 = arith.negf %77 : vector<2x128xf32>
    %79 = math.exp %78 : vector<2x128xf32>
    %cst_31 = arith.constant 1.000000e+00 : f32
    %80 = vector.broadcast %cst_31 : f32 to vector<2x128xf32>
    %81 = arith.addf %80, %79 : vector<2x128xf32>
    %82 = arith.divf %80, %81 : vector<2x128xf32>
    %83 = vector.extract_strided_slice %76 {offsets = [0, 128], sizes = [2, 128], strides = [1, 1]} : vector<2x512xf32> to vector<2x128xf32>
    %84 = arith.negf %83 : vector<2x128xf32>
    %85 = math.exp %84 : vector<2x128xf32>
    %cst_32 = arith.constant 1.000000e+00 : f32
    %86 = vector.broadcast %cst_32 : f32 to vector<2x128xf32>
    %87 = arith.addf %86, %85 : vector<2x128xf32>
    %88 = arith.divf %86, %87 : vector<2x128xf32>
    %89 = vector.extract_strided_slice %76 {offsets = [0, 256], sizes = [2, 128], strides = [1, 1]} : vector<2x512xf32> to vector<2x128xf32>
    %90 = math.tanh %89 : vector<2x128xf32>
    %91 = vector.extract_strided_slice %76 {offsets = [0, 384], sizes = [2, 128], strides = [1, 1]} : vector<2x512xf32> to vector<2x128xf32>
    %92 = arith.negf %91 : vector<2x128xf32>
    %93 = math.exp %92 : vector<2x128xf32>
    %cst_33 = arith.constant 1.000000e+00 : f32
    %94 = vector.broadcast %cst_33 : f32 to vector<2x128xf32>
    %95 = arith.addf %94, %93 : vector<2x128xf32>
    %96 = arith.divf %94, %95 : vector<2x128xf32>
    %97 = arith.mulf %88, %69 : vector<2x128xf32>
    %98 = arith.mulf %82, %90 : vector<2x128xf32>
    %99 = arith.addf %97, %98 : vector<2x128xf32>
    %100 = math.tanh %99 : vector<2x128xf32>
    %101 = arith.mulf %96, %100 : vector<2x128xf32>
    %c6 = arith.constant 6 : index
    %c0_34 = arith.constant 0 : index
    %102 = vector.load %arg8[%c6, %c0_34] : memref<16x512xf32, #tpu.memory_space<vmem>>, vector<2x512xf32>
    %103 = arith.truncf %101 : vector<2x128xf32> to vector<2x128xbf16>
    %c0_35 = arith.constant 0 : index
    %c0_36 = arith.constant 0 : index
    %104 = vector.load %arg3[%c0_35, %c0_36] : memref<128x512xbf16, #tpu.memory_space<vmem>>, vector<128x512xbf16>
    %cst_37 = arith.constant dense<0.000000e+00> : vector<2x512xf32>
    %105 = tpu.matmul %103, %104, %cst_37 {dimension_numbers = #tpu.dot_dimension_numbers<[1], [0], [0], [1], [0, 0, 1, 1], [], []>} : vector<2x128xbf16>, vector<128x512xbf16>, vector<2x512xf32> -> vector<2x512xf32>
    %106 = arith.addf %102, %105 : vector<2x512xf32>
    %107 = vector.extract_strided_slice %106 {offsets = [0, 0], sizes = [2, 128], strides = [1, 1]} : vector<2x512xf32> to vector<2x128xf32>
    %108 = arith.negf %107 : vector<2x128xf32>
    %109 = math.exp %108 : vector<2x128xf32>
    %cst_38 = arith.constant 1.000000e+00 : f32
    %110 = vector.broadcast %cst_38 : f32 to vector<2x128xf32>
    %111 = arith.addf %110, %109 : vector<2x128xf32>
    %112 = arith.divf %110, %111 : vector<2x128xf32>
    %113 = vector.extract_strided_slice %106 {offsets = [0, 128], sizes = [2, 128], strides = [1, 1]} : vector<2x512xf32> to vector<2x128xf32>
    %114 = arith.negf %113 : vector<2x128xf32>
    %115 = math.exp %114 : vector<2x128xf32>
    %cst_39 = arith.constant 1.000000e+00 : f32
    %116 = vector.broadcast %cst_39 : f32 to vector<2x128xf32>
    %117 = arith.addf %116, %115 : vector<2x128xf32>
    %118 = arith.divf %116, %117 : vector<2x128xf32>
    %119 = vector.extract_strided_slice %106 {offsets = [0, 256], sizes = [2, 128], strides = [1, 1]} : vector<2x512xf32> to vector<2x128xf32>
    %120 = math.tanh %119 : vector<2x128xf32>
    %121 = vector.extract_strided_slice %106 {offsets = [0, 384], sizes = [2, 128], strides = [1, 1]} : vector<2x512xf32> to vector<2x128xf32>
    %122 = arith.negf %121 : vector<2x128xf32>
    %123 = math.exp %122 : vector<2x128xf32>
    %cst_40 = arith.constant 1.000000e+00 : f32
    %124 = vector.broadcast %cst_40 : f32 to vector<2x128xf32>
    %125 = arith.addf %124, %123 : vector<2x128xf32>
    %126 = arith.divf %124, %125 : vector<2x128xf32>
    %127 = arith.mulf %118, %99 : vector<2x128xf32>
    %128 = arith.mulf %112, %120 : vector<2x128xf32>
    %129 = arith.addf %127, %128 : vector<2x128xf32>
    %130 = math.tanh %129 : vector<2x128xf32>
    %131 = arith.mulf %126, %130 : vector<2x128xf32>
    %c8 = arith.constant 8 : index
    %c0_41 = arith.constant 0 : index
    %132 = vector.load %arg8[%c8, %c0_41] : memref<16x512xf32, #tpu.memory_space<vmem>>, vector<2x512xf32>
    %133 = arith.truncf %131 : vector<2x128xf32> to vector<2x128xbf16>
    %c0_42 = arith.constant 0 : index
    %c0_43 = arith.constant 0 : index
    %134 = vector.load %arg3[%c0_42, %c0_43] : memref<128x512xbf16, #tpu.memory_space<vmem>>, vector<128x512xbf16>
    %cst_44 = arith.constant dense<0.000000e+00> : vector<2x512xf32>
    %135 = tpu.matmul %133, %134, %cst_44 {dimension_numbers = #tpu.dot_dimension_numbers<[1], [0], [0], [1], [0, 0, 1, 1], [], []>} : vector<2x128xbf16>, vector<128x512xbf16>, vector<2x512xf32> -> vector<2x512xf32>
    %136 = arith.addf %132, %135 : vector<2x512xf32>
    %137 = vector.extract_strided_slice %136 {offsets = [0, 0], sizes = [2, 128], strides = [1, 1]} : vector<2x512xf32> to vector<2x128xf32>
    %138 = arith.negf %137 : vector<2x128xf32>
    %139 = math.exp %138 : vector<2x128xf32>
    %cst_45 = arith.constant 1.000000e+00 : f32
    %140 = vector.broadcast %cst_45 : f32 to vector<2x128xf32>
    %141 = arith.addf %140, %139 : vector<2x128xf32>
    %142 = arith.divf %140, %141 : vector<2x128xf32>
    %143 = vector.extract_strided_slice %136 {offsets = [0, 128], sizes = [2, 128], strides = [1, 1]} : vector<2x512xf32> to vector<2x128xf32>
    %144 = arith.negf %143 : vector<2x128xf32>
    %145 = math.exp %144 : vector<2x128xf32>
    %cst_46 = arith.constant 1.000000e+00 : f32
    %146 = vector.broadcast %cst_46 : f32 to vector<2x128xf32>
    %147 = arith.addf %146, %145 : vector<2x128xf32>
    %148 = arith.divf %146, %147 : vector<2x128xf32>
    %149 = vector.extract_strided_slice %136 {offsets = [0, 256], sizes = [2, 128], strides = [1, 1]} : vector<2x512xf32> to vector<2x128xf32>
    %150 = math.tanh %149 : vector<2x128xf32>
    %151 = vector.extract_strided_slice %136 {offsets = [0, 384], sizes = [2, 128], strides = [1, 1]} : vector<2x512xf32> to vector<2x128xf32>
    %152 = arith.negf %151 : vector<2x128xf32>
    %153 = math.exp %152 : vector<2x128xf32>
    %cst_47 = arith.constant 1.000000e+00 : f32
    %154 = vector.broadcast %cst_47 : f32 to vector<2x128xf32>
    %155 = arith.addf %154, %153 : vector<2x128xf32>
    %156 = arith.divf %154, %155 : vector<2x128xf32>
    %157 = arith.mulf %148, %129 : vector<2x128xf32>
    %158 = arith.mulf %142, %150 : vector<2x128xf32>
    %159 = arith.addf %157, %158 : vector<2x128xf32>
    %160 = math.tanh %159 : vector<2x128xf32>
    %161 = arith.mulf %156, %160 : vector<2x128xf32>
    %c10 = arith.constant 10 : index
    %c0_48 = arith.constant 0 : index
    %162 = vector.load %arg8[%c10, %c0_48] : memref<16x512xf32, #tpu.memory_space<vmem>>, vector<2x512xf32>
    %163 = arith.truncf %161 : vector<2x128xf32> to vector<2x128xbf16>
    %c0_49 = arith.constant 0 : index
    %c0_50 = arith.constant 0 : index
    %164 = vector.load %arg3[%c0_49, %c0_50] : memref<128x512xbf16, #tpu.memory_space<vmem>>, vector<128x512xbf16>
    %cst_51 = arith.constant dense<0.000000e+00> : vector<2x512xf32>
    %165 = tpu.matmul %163, %164, %cst_51 {dimension_numbers = #tpu.dot_dimension_numbers<[1], [0], [0], [1], [0, 0, 1, 1], [], []>} : vector<2x128xbf16>, vector<128x512xbf16>, vector<2x512xf32> -> vector<2x512xf32>
    %166 = arith.addf %162, %165 : vector<2x512xf32>
    %167 = vector.extract_strided_slice %166 {offsets = [0, 0], sizes = [2, 128], strides = [1, 1]} : vector<2x512xf32> to vector<2x128xf32>
    %168 = arith.negf %167 : vector<2x128xf32>
    %169 = math.exp %168 : vector<2x128xf32>
    %cst_52 = arith.constant 1.000000e+00 : f32
    %170 = vector.broadcast %cst_52 : f32 to vector<2x128xf32>
    %171 = arith.addf %170, %169 : vector<2x128xf32>
    %172 = arith.divf %170, %171 : vector<2x128xf32>
    %173 = vector.extract_strided_slice %166 {offsets = [0, 128], sizes = [2, 128], strides = [1, 1]} : vector<2x512xf32> to vector<2x128xf32>
    %174 = arith.negf %173 : vector<2x128xf32>
    %175 = math.exp %174 : vector<2x128xf32>
    %cst_53 = arith.constant 1.000000e+00 : f32
    %176 = vector.broadcast %cst_53 : f32 to vector<2x128xf32>
    %177 = arith.addf %176, %175 : vector<2x128xf32>
    %178 = arith.divf %176, %177 : vector<2x128xf32>
    %179 = vector.extract_strided_slice %166 {offsets = [0, 256], sizes = [2, 128], strides = [1, 1]} : vector<2x512xf32> to vector<2x128xf32>
    %180 = math.tanh %179 : vector<2x128xf32>
    %181 = vector.extract_strided_slice %166 {offsets = [0, 384], sizes = [2, 128], strides = [1, 1]} : vector<2x512xf32> to vector<2x128xf32>
    %182 = arith.negf %181 : vector<2x128xf32>
    %183 = math.exp %182 : vector<2x128xf32>
    %cst_54 = arith.constant 1.000000e+00 : f32
    %184 = vector.broadcast %cst_54 : f32 to vector<2x128xf32>
    %185 = arith.addf %184, %183 : vector<2x128xf32>
    %186 = arith.divf %184, %185 : vector<2x128xf32>
    %187 = arith.mulf %178, %159 : vector<2x128xf32>
    %188 = arith.mulf %172, %180 : vector<2x128xf32>
    %189 = arith.addf %187, %188 : vector<2x128xf32>
    %190 = math.tanh %189 : vector<2x128xf32>
    %191 = arith.mulf %186, %190 : vector<2x128xf32>
    %c12 = arith.constant 12 : index
    %c0_55 = arith.constant 0 : index
    %192 = vector.load %arg8[%c12, %c0_55] : memref<16x512xf32, #tpu.memory_space<vmem>>, vector<2x512xf32>
    %193 = arith.truncf %191 : vector<2x128xf32> to vector<2x128xbf16>
    %c0_56 = arith.constant 0 : index
    %c0_57 = arith.constant 0 : index
    %194 = vector.load %arg3[%c0_56, %c0_57] : memref<128x512xbf16, #tpu.memory_space<vmem>>, vector<128x512xbf16>
    %cst_58 = arith.constant dense<0.000000e+00> : vector<2x512xf32>
    %195 = tpu.matmul %193, %194, %cst_58 {dimension_numbers = #tpu.dot_dimension_numbers<[1], [0], [0], [1], [0, 0, 1, 1], [], []>} : vector<2x128xbf16>, vector<128x512xbf16>, vector<2x512xf32> -> vector<2x512xf32>
    %196 = arith.addf %192, %195 : vector<2x512xf32>
    %197 = vector.extract_strided_slice %196 {offsets = [0, 0], sizes = [2, 128], strides = [1, 1]} : vector<2x512xf32> to vector<2x128xf32>
    %198 = arith.negf %197 : vector<2x128xf32>
    %199 = math.exp %198 : vector<2x128xf32>
    %cst_59 = arith.constant 1.000000e+00 : f32
    %200 = vector.broadcast %cst_59 : f32 to vector<2x128xf32>
    %201 = arith.addf %200, %199 : vector<2x128xf32>
    %202 = arith.divf %200, %201 : vector<2x128xf32>
    %203 = vector.extract_strided_slice %196 {offsets = [0, 128], sizes = [2, 128], strides = [1, 1]} : vector<2x512xf32> to vector<2x128xf32>
    %204 = arith.negf %203 : vector<2x128xf32>
    %205 = math.exp %204 : vector<2x128xf32>
    %cst_60 = arith.constant 1.000000e+00 : f32
    %206 = vector.broadcast %cst_60 : f32 to vector<2x128xf32>
    %207 = arith.addf %206, %205 : vector<2x128xf32>
    %208 = arith.divf %206, %207 : vector<2x128xf32>
    %209 = vector.extract_strided_slice %196 {offsets = [0, 256], sizes = [2, 128], strides = [1, 1]} : vector<2x512xf32> to vector<2x128xf32>
    %210 = math.tanh %209 : vector<2x128xf32>
    %211 = vector.extract_strided_slice %196 {offsets = [0, 384], sizes = [2, 128], strides = [1, 1]} : vector<2x512xf32> to vector<2x128xf32>
    %212 = arith.negf %211 : vector<2x128xf32>
    %213 = math.exp %212 : vector<2x128xf32>
    %cst_61 = arith.constant 1.000000e+00 : f32
    %214 = vector.broadcast %cst_61 : f32 to vector<2x128xf32>
    %215 = arith.addf %214, %213 : vector<2x128xf32>
    %216 = arith.divf %214, %215 : vector<2x128xf32>
    %217 = arith.mulf %208, %189 : vector<2x128xf32>
    %218 = arith.mulf %202, %210 : vector<2x128xf32>
    %219 = arith.addf %217, %218 : vector<2x128xf32>
    %220 = math.tanh %219 : vector<2x128xf32>
    %221 = arith.mulf %216, %220 : vector<2x128xf32>
    %c14 = arith.constant 14 : index
    %c0_62 = arith.constant 0 : index
    %222 = vector.load %arg8[%c14, %c0_62] : memref<16x512xf32, #tpu.memory_space<vmem>>, vector<2x512xf32>
    %223 = arith.truncf %221 : vector<2x128xf32> to vector<2x128xbf16>
    %c0_63 = arith.constant 0 : index
    %c0_64 = arith.constant 0 : index
    %224 = vector.load %arg3[%c0_63, %c0_64] : memref<128x512xbf16, #tpu.memory_space<vmem>>, vector<128x512xbf16>
    %cst_65 = arith.constant dense<0.000000e+00> : vector<2x512xf32>
    %225 = tpu.matmul %223, %224, %cst_65 {dimension_numbers = #tpu.dot_dimension_numbers<[1], [0], [0], [1], [0, 0, 1, 1], [], []>} : vector<2x128xbf16>, vector<128x512xbf16>, vector<2x512xf32> -> vector<2x512xf32>
    %226 = arith.addf %222, %225 : vector<2x512xf32>
    %227 = vector.extract_strided_slice %226 {offsets = [0, 0], sizes = [2, 128], strides = [1, 1]} : vector<2x512xf32> to vector<2x128xf32>
    %228 = arith.negf %227 : vector<2x128xf32>
    %229 = math.exp %228 : vector<2x128xf32>
    %cst_66 = arith.constant 1.000000e+00 : f32
    %230 = vector.broadcast %cst_66 : f32 to vector<2x128xf32>
    %231 = arith.addf %230, %229 : vector<2x128xf32>
    %232 = arith.divf %230, %231 : vector<2x128xf32>
    %233 = vector.extract_strided_slice %226 {offsets = [0, 128], sizes = [2, 128], strides = [1, 1]} : vector<2x512xf32> to vector<2x128xf32>
    %234 = arith.negf %233 : vector<2x128xf32>
    %235 = math.exp %234 : vector<2x128xf32>
    %cst_67 = arith.constant 1.000000e+00 : f32
    %236 = vector.broadcast %cst_67 : f32 to vector<2x128xf32>
    %237 = arith.addf %236, %235 : vector<2x128xf32>
    %238 = arith.divf %236, %237 : vector<2x128xf32>
    %239 = vector.extract_strided_slice %226 {offsets = [0, 256], sizes = [2, 128], strides = [1, 1]} : vector<2x512xf32> to vector<2x128xf32>
    %240 = math.tanh %239 : vector<2x128xf32>
    %241 = vector.extract_strided_slice %226 {offsets = [0, 384], sizes = [2, 128], strides = [1, 1]} : vector<2x512xf32> to vector<2x128xf32>
    %242 = arith.negf %241 : vector<2x128xf32>
    %243 = math.exp %242 : vector<2x128xf32>
    %cst_68 = arith.constant 1.000000e+00 : f32
    %244 = vector.broadcast %cst_68 : f32 to vector<2x128xf32>
    %245 = arith.addf %244, %243 : vector<2x128xf32>
    %246 = arith.divf %244, %245 : vector<2x128xf32>
    %247 = arith.mulf %238, %219 : vector<2x128xf32>
    %248 = arith.mulf %232, %240 : vector<2x128xf32>
    %249 = arith.addf %247, %248 : vector<2x128xf32>
    %250 = math.tanh %249 : vector<2x128xf32>
    %251 = arith.mulf %246, %250 : vector<2x128xf32>
    %252 = tpu.concatenate %41, %71, %101, %131, %161, %191, %221, %251 in 0 : vector<2x128xf32>, vector<2x128xf32>, vector<2x128xf32>, vector<2x128xf32>, vector<2x128xf32>, vector<2x128xf32>, vector<2x128xf32>, vector<2x128xf32> -> vector<16x128xf32>
    %253 = arith.truncf %252 : vector<16x128xf32> to vector<16x128xbf16>
    %c0_69 = arith.constant 0 : index
    %c0_70 = arith.constant 0 : index
    %254 = vector.load %arg5[%c0_69, %c0_70] : memref<16x128xbf16, #tpu.memory_space<vmem>>, vector<16x128xbf16>
    tpu.vector_store %arg5[%c0_69, %c0_70], %253 {strides = array<i32>} : memref<16x128xbf16, #tpu.memory_space<vmem>>, vector<16x128xbf16>,
    %c0_71 = arith.constant 0 : index
    %c0_72 = arith.constant 0 : index
    %255 = vector.load %arg6[%c0_71, %c0_72] : memref<2x128xf32, #tpu.memory_space<vmem>>, vector<2x128xf32>
    tpu.vector_store %arg6[%c0_71, %c0_72], %251 {strides = array<i32>} : memref<2x128xf32, #tpu.memory_space<vmem>>, vector<2x128xf32>,
    %c0_73 = arith.constant 0 : index
    %c0_74 = arith.constant 0 : index
    %256 = vector.load %arg7[%c0_73, %c0_74] : memref<2x128xf32, #tpu.memory_space<vmem>>, vector<2x128xf32>
    tpu.vector_store %arg7[%c0_73, %c0_74], %249 {strides = array<i32>} : memref<2x128xf32, #tpu.memory_space<vmem>>, vector<2x128xf32>,
    return
  }
  func.func @transform_0(%arg0: i32) -> (i32, i32) {
    %c0_i32 = arith.constant 0 : i32
    %c0_i32_0 = arith.constant 0 : i32
    return %arg0, %c0_i32 : i32, i32
  }
  func.func @transform_1(%arg0: i32) -> (i32, i32) {
    %c0_i32 = arith.constant 0 : i32
    %c0_i32_0 = arith.constant 0 : i32
    %c0_i32_1 = arith.constant 0 : i32
    return %c0_i32, %c0_i32_0 : i32, i32
  }
  func.func @transform_2(%arg0: i32) -> (i32, i32) {
    %c0_i32 = arith.constant 0 : i32
    %c0_i32_0 = arith.constant 0 : i32
    %c0_i32_1 = arith.constant 0 : i32
    return %c0_i32, %c0_i32_0 : i32, i32
  }
  func.func @transform_3(%arg0: i32) -> (i32, i32) {
    %c0_i32 = arith.constant 0 : i32
    %c0_i32_0 = arith.constant 0 : i32
    %c0_i32_1 = arith.constant 0 : i32
    return %c0_i32, %c0_i32_0 : i32, i32
  }
  func.func @transform_4(%arg0: i32) -> (i32, i32) {
    %c0_i32 = arith.constant 0 : i32
    %c0_i32_0 = arith.constant 0 : i32
    return %arg0, %c0_i32 : i32, i32
  }
}

module attributes {stable_mosaic.version = 11 : i64} {
  func.func @_matmul_bias_kernel(%arg0: i32, %arg1: i32, %arg2: memref<8x128xbf16, #tpu.memory_space<vmem>>, %arg3: memref<128x128xbf16, #tpu.memory_space<vmem>>, %arg4: memref<1x128xf32, #tpu.memory_space<vmem>>, %arg5: memref<8x128xf32, #tpu.memory_space<vmem>>) attributes {dimension_semantics = [#tpu.dimension_semantics<parallel>, #tpu.dimension_semantics<parallel>], iteration_bounds = array<i64: 1, 1>, scalar_prefetch = 0 : i64, scratch_operands = 0 : i64, tpu.core_type = #tpu.core_type<tc>, window_params = [{transform_indices = @transform_0, window_bounds = array<i64: 8, 128>}, {transform_indices = @transform_1, window_bounds = array<i64: 128, 128>}, {transform_indices = @transform_2, window_bounds = array<i64: 1, 128>}, {transform_indices = @transform_3, window_bounds = array<i64: 8, 128>}]} {
    %c0 = arith.constant 0 : index
    %c0_0 = arith.constant 0 : index
    %0 = vector.load %arg2[%c0, %c0_0] : memref<8x128xbf16, #tpu.memory_space<vmem>>, vector<8x128xbf16>
    %c0_1 = arith.constant 0 : index
    %c0_2 = arith.constant 0 : index
    %1 = vector.load %arg3[%c0_1, %c0_2] : memref<128x128xbf16, #tpu.memory_space<vmem>>, vector<128x128xbf16>
    %cst = arith.constant dense<0.000000e+00> : vector<8x128xf32>
    %2 = tpu.matmul %0, %1, %cst {dimension_numbers = #tpu.dot_dimension_numbers<[1], [0], [0], [1], [0, 0, 1, 1], [], []>} : vector<8x128xbf16>, vector<128x128xbf16>, vector<8x128xf32> -> vector<8x128xf32>
    %c0_3 = arith.constant 0 : index
    %c0_4 = arith.constant 0 : index
    %3 = vector.load %arg4[%c0_3, %c0_4] : memref<1x128xf32, #tpu.memory_space<vmem>>, vector<1x128xf32>
    %4 = vector.broadcast %3 : vector<1x128xf32> to vector<8x128xf32>
    %5 = arith.addf %2, %4 : vector<8x128xf32>
    %c0_5 = arith.constant 0 : index
    %c0_6 = arith.constant 0 : index
    %6 = vector.load %arg5[%c0_5, %c0_6] : memref<8x128xf32, #tpu.memory_space<vmem>>, vector<8x128xf32>
    tpu.vector_store %arg5[%c0_5, %c0_6], %5 {strides = array<i32>} : memref<8x128xf32, #tpu.memory_space<vmem>>, vector<8x128xf32>,
    return
  }
  func.func @transform_0(%arg0: i32, %arg1: i32) -> (i32, i32) {
    %c0_i32 = arith.constant 0 : i32
    %c0_i32_0 = arith.constant 0 : i32
    return %arg0, %c0_i32 : i32, i32
  }
  func.func @transform_1(%arg0: i32, %arg1: i32) -> (i32, i32) {
    %c0_i32 = arith.constant 0 : i32
    %c0_i32_0 = arith.constant 0 : i32
    return %c0_i32, %arg1 : i32, i32
  }
  func.func @transform_2(%arg0: i32, %arg1: i32) -> (i32, i32) {
    %c0_i32 = arith.constant 0 : i32
    %c0_i32_0 = arith.constant 0 : i32
    return %c0_i32, %arg1 : i32, i32
  }
  func.func @transform_3(%arg0: i32, %arg1: i32) -> (i32, i32) {
    %c0_i32 = arith.constant 0 : i32
    return %arg0, %arg1 : i32, i32
  }
}

module attributes {stable_mosaic.version = 11 : i64} {
  func.func @_lstm_layer_kernel(%arg0: i32, %arg1: memref<16x4xf32, #tpu.memory_space<vmem>>, %arg2: memref<4x512xbf16, #tpu.memory_space<vmem>>, %arg3: memref<128x512xbf16, #tpu.memory_space<vmem>>, %arg4: memref<1x512xf32, #tpu.memory_space<vmem>>, %arg5: memref<16x128xbf16, #tpu.memory_space<vmem>>, %arg6: memref<2x128xf32, #tpu.memory_space<vmem>>, %arg7: memref<2x128xf32, #tpu.memory_space<vmem>>, %arg8: memref<16x512xf32, #tpu.memory_space<vmem>>) attributes {dimension_semantics = [#tpu.dimension_semantics<arbitrary>], iteration_bounds = array<i64: 1>, scalar_prefetch = 0 : i64, scratch_operands = 3 : i64, tpu.core_type = #tpu.core_type<tc>, window_params = [{transform_indices = @transform_0, window_bounds = array<i64: 16, 4>}, {pipeline_mode = #tpu.pipeline_mode<synchronous>, transform_indices = @transform_1, window_bounds = array<i64: 4, 512>}, {pipeline_mode = #tpu.pipeline_mode<synchronous>, transform_indices = @transform_2, window_bounds = array<i64: 128, 512>}, {pipeline_mode = #tpu.pipeline_mode<synchronous>, transform_indices = @transform_3, window_bounds = array<i64: 1, 512>}, {transform_indices = @transform_4, window_bounds = array<i64: 16, 128>}]} {
    %c0_i32 = arith.constant 0 : i32
    %0 = arith.cmpi eq, %arg0, %c0_i32 : i32
    %1 = arith.extui %0 : i1 to i32
    %c0_i32_0 = arith.constant 0 : i32
    %2 = arith.cmpi ne, %1, %c0_i32_0 : i32
    scf.if %2 {
      %cst_75 = arith.constant 0.000000e+00 : f32
      %258 = vector.broadcast %cst_75 : f32 to vector<2x128xf32>
      %c0_76 = arith.constant 0 : index
      %c0_77 = arith.constant 0 : index
      %259 = vector.load %arg6[%c0_76, %c0_77] : memref<2x128xf32, #tpu.memory_space<vmem>>, vector<2x128xf32>
      tpu.vector_store %arg6[%c0_76, %c0_77], %258 {strides = array<i32>} : memref<2x128xf32, #tpu.memory_space<vmem>>, vector<2x128xf32>,
      %cst_78 = arith.constant 0.000000e+00 : f32
      %260 = vector.broadcast %cst_78 : f32 to vector<2x128xf32>
      %c0_79 = arith.constant 0 : index
      %c0_80 = arith.constant 0 : index
      %261 = vector.load %arg7[%c0_79, %c0_80] : memref<2x128xf32, #tpu.memory_space<vmem>>, vector<2x128xf32>
      tpu.vector_store %arg7[%c0_79, %c0_80], %260 {strides = array<i32>} : memref<2x128xf32, #tpu.memory_space<vmem>>, vector<2x128xf32>,
    } else {
    }
    %c0 = arith.constant 0 : index
    %c0_1 = arith.constant 0 : index
    %3 = vector.load %arg1[%c0, %c0_1] : memref<16x4xf32, #tpu.memory_space<vmem>>, vector<16x4xf32>
    %4 = arith.truncf %3 : vector<16x4xf32> to vector<16x4xbf16>
    %c0_2 = arith.constant 0 : index
    %c0_3 = arith.constant 0 : index
    %5 = vector.load %arg2[%c0_2, %c0_3] : memref<4x512xbf16, #tpu.memory_space<vmem>>, vector<4x512xbf16>
    %cst = arith.constant dense<0.000000e+00> : vector<16x512xf32>
    %6 = tpu.matmul %4, %5, %cst {dimension_numbers = #tpu.dot_dimension_numbers<[1], [0], [0], [1], [0, 0, 1, 1], [], []>} : vector<16x4xbf16>, vector<4x512xbf16>, vector<16x512xf32> -> vector<16x512xf32>
    %c0_4 = arith.constant 0 : index
    %c0_5 = arith.constant 0 : index
    %7 = vector.load %arg4[%c0_4, %c0_5] : memref<1x512xf32, #tpu.memory_space<vmem>>, vector<1x512xf32>
    %8 = vector.broadcast %7 : vector<1x512xf32> to vector<16x512xf32>
    %9 = arith.addf %6, %8 : vector<16x512xf32>
    %c0_6 = arith.constant 0 : index
    %c0_7 = arith.constant 0 : index
    %10 = vector.load %arg8[%c0_6, %c0_7] : memref<16x512xf32, #tpu.memory_space<vmem>>, vector<16x512xf32>
    tpu.vector_store %arg8[%c0_6, %c0_7], %9 {strides = array<i32>} : memref<16x512xf32, #tpu.memory_space<vmem>>, vector<16x512xf32>,
    %c0_8 = arith.constant 0 : index
    %c0_9 = arith.constant 0 : index
    %11 = vector.load %arg6[%c0_8, %c0_9] : memref<2x128xf32, #tpu.memory_space<vmem>>, vector<2x128xf32>
    %c0_10 = arith.constant 0 : index
    %c0_11 = arith.constant 0 : index
    %12 = vector.load %arg7[%c0_10, %c0_11] : memref<2x128xf32, #tpu.memory_space<vmem>>, vector<2x128xf32>
    %c0_12 = arith.constant 0 : index
    %c0_13 = arith.constant 0 : index
    %13 = vector.load %arg8[%c0_12, %c0_13] : memref<16x512xf32, #tpu.memory_space<vmem>>, vector<2x512xf32>
    %14 = arith.truncf %11 : vector<2x128xf32> to vector<2x128xbf16>
    %c0_14 = arith.constant 0 : index
    %c0_15 = arith.constant 0 : index
    %15 = vector.load %arg3[%c0_14, %c0_15] : memref<128x512xbf16, #tpu.memory_space<vmem>>, vector<128x512xbf16>
    %cst_16 = arith.constant dense<0.000000e+00> : vector<2x512xf32>
    %16 = tpu.matmul %14, %15, %cst_16 {dimension_numbers = #tpu.dot_dimension_numbers<[1], [0], [0], [1], [0, 0, 1, 1], [], []>} : vector<2x128xbf16>, vector<128x512xbf16>, vector<2x512xf32> -> vector<2x512xf32>
    %17 = arith.addf %13, %16 : vector<2x512xf32>
    %18 = vector.extract_strided_slice %17 {offsets = [0, 0], sizes = [2, 128], strides = [1, 1]} : vector<2x512xf32> to vector<2x128xf32>
    %19 = arith.negf %18 : vector<2x128xf32>
    %20 = math.exp %19 : vector<2x128xf32>
    %cst_17 = arith.constant 1.000000e+00 : f32
    %21 = vector.broadcast %cst_17 : f32 to vector<2x128xf32>
    %22 = arith.addf %21, %20 : vector<2x128xf32>
    %23 = arith.divf %21, %22 : vector<2x128xf32>
    %24 = vector.extract_strided_slice %17 {offsets = [0, 128], sizes = [2, 128], strides = [1, 1]} : vector<2x512xf32> to vector<2x128xf32>
    %25 = arith.negf %24 : vector<2x128xf32>
    %26 = math.exp %25 : vector<2x128xf32>
    %cst_18 = arith.constant 1.000000e+00 : f32
    %27 = vector.broadcast %cst_18 : f32 to vector<2x128xf32>
    %28 = arith.addf %27, %26 : vector<2x128xf32>
    %29 = arith.divf %27, %28 : vector<2x128xf32>
    %30 = vector.extract_strided_slice %17 {offsets = [0, 256], sizes = [2, 128], strides = [1, 1]} : vector<2x512xf32> to vector<2x128xf32>
    %31 = math.tanh %30 : vector<2x128xf32>
    %32 = vector.extract_strided_slice %17 {offsets = [0, 384], sizes = [2, 128], strides = [1, 1]} : vector<2x512xf32> to vector<2x128xf32>
    %33 = arith.negf %32 : vector<2x128xf32>
    %34 = math.exp %33 : vector<2x128xf32>
    %cst_19 = arith.constant 1.000000e+00 : f32
    %35 = vector.broadcast %cst_19 : f32 to vector<2x128xf32>
    %36 = arith.addf %35, %34 : vector<2x128xf32>
    %37 = arith.divf %35, %36 : vector<2x128xf32>
    %38 = arith.mulf %29, %12 : vector<2x128xf32>
    %39 = arith.mulf %23, %31 : vector<2x128xf32>
    %40 = arith.addf %38, %39 : vector<2x128xf32>
    %41 = math.tanh %40 : vector<2x128xf32>
    %42 = arith.mulf %37, %41 : vector<2x128xf32>
    %c2 = arith.constant 2 : index
    %c0_20 = arith.constant 0 : index
    %43 = vector.load %arg8[%c2, %c0_20] : memref<16x512xf32, #tpu.memory_space<vmem>>, vector<2x512xf32>
    %44 = arith.truncf %42 : vector<2x128xf32> to vector<2x128xbf16>
    %c0_21 = arith.constant 0 : index
    %c0_22 = arith.constant 0 : index
    %45 = vector.load %arg3[%c0_21, %c0_22] : memref<128x512xbf16, #tpu.memory_space<vmem>>, vector<128x512xbf16>
    %cst_23 = arith.constant dense<0.000000e+00> : vector<2x512xf32>
    %46 = tpu.matmul %44, %45, %cst_23 {dimension_numbers = #tpu.dot_dimension_numbers<[1], [0], [0], [1], [0, 0, 1, 1], [], []>} : vector<2x128xbf16>, vector<128x512xbf16>, vector<2x512xf32> -> vector<2x512xf32>
    %47 = arith.addf %43, %46 : vector<2x512xf32>
    %48 = vector.extract_strided_slice %47 {offsets = [0, 0], sizes = [2, 128], strides = [1, 1]} : vector<2x512xf32> to vector<2x128xf32>
    %49 = arith.negf %48 : vector<2x128xf32>
    %50 = math.exp %49 : vector<2x128xf32>
    %cst_24 = arith.constant 1.000000e+00 : f32
    %51 = vector.broadcast %cst_24 : f32 to vector<2x128xf32>
    %52 = arith.addf %51, %50 : vector<2x128xf32>
    %53 = arith.divf %51, %52 : vector<2x128xf32>
    %54 = vector.extract_strided_slice %47 {offsets = [0, 128], sizes = [2, 128], strides = [1, 1]} : vector<2x512xf32> to vector<2x128xf32>
    %55 = arith.negf %54 : vector<2x128xf32>
    %56 = math.exp %55 : vector<2x128xf32>
    %cst_25 = arith.constant 1.000000e+00 : f32
    %57 = vector.broadcast %cst_25 : f32 to vector<2x128xf32>
    %58 = arith.addf %57, %56 : vector<2x128xf32>
    %59 = arith.divf %57, %58 : vector<2x128xf32>
    %60 = vector.extract_strided_slice %47 {offsets = [0, 256], sizes = [2, 128], strides = [1, 1]} : vector<2x512xf32> to vector<2x128xf32>
    %61 = math.tanh %60 : vector<2x128xf32>
    %62 = vector.extract_strided_slice %47 {offsets = [0, 384], sizes = [2, 128], strides = [1, 1]} : vector<2x512xf32> to vector<2x128xf32>
    %63 = arith.negf %62 : vector<2x128xf32>
    %64 = math.exp %63 : vector<2x128xf32>
    %cst_26 = arith.constant 1.000000e+00 : f32
    %65 = vector.broadcast %cst_26 : f32 to vector<2x128xf32>
    %66 = arith.addf %65, %64 : vector<2x128xf32>
    %67 = arith.divf %65, %66 : vector<2x128xf32>
    %68 = arith.mulf %59, %40 : vector<2x128xf32>
    %69 = arith.mulf %53, %61 : vector<2x128xf32>
    %70 = arith.addf %68, %69 : vector<2x128xf32>
    %71 = math.tanh %70 : vector<2x128xf32>
    %72 = arith.mulf %67, %71 : vector<2x128xf32>
    %c4 = arith.constant 4 : index
    %c0_27 = arith.constant 0 : index
    %73 = vector.load %arg8[%c4, %c0_27] : memref<16x512xf32, #tpu.memory_space<vmem>>, vector<2x512xf32>
    %74 = arith.truncf %72 : vector<2x128xf32> to vector<2x128xbf16>
    %c0_28 = arith.constant 0 : index
    %c0_29 = arith.constant 0 : index
    %75 = vector.load %arg3[%c0_28, %c0_29] : memref<128x512xbf16, #tpu.memory_space<vmem>>, vector<128x512xbf16>
    %cst_30 = arith.constant dense<0.000000e+00> : vector<2x512xf32>
    %76 = tpu.matmul %74, %75, %cst_30 {dimension_numbers = #tpu.dot_dimension_numbers<[1], [0], [0], [1], [0, 0, 1, 1], [], []>} : vector<2x128xbf16>, vector<128x512xbf16>, vector<2x512xf32> -> vector<2x512xf32>
    %77 = arith.addf %73, %76 : vector<2x512xf32>
    %78 = vector.extract_strided_slice %77 {offsets = [0, 0], sizes = [2, 128], strides = [1, 1]} : vector<2x512xf32> to vector<2x128xf32>
    %79 = arith.negf %78 : vector<2x128xf32>
    %80 = math.exp %79 : vector<2x128xf32>
    %cst_31 = arith.constant 1.000000e+00 : f32
    %81 = vector.broadcast %cst_31 : f32 to vector<2x128xf32>
    %82 = arith.addf %81, %80 : vector<2x128xf32>
    %83 = arith.divf %81, %82 : vector<2x128xf32>
    %84 = vector.extract_strided_slice %77 {offsets = [0, 128], sizes = [2, 128], strides = [1, 1]} : vector<2x512xf32> to vector<2x128xf32>
    %85 = arith.negf %84 : vector<2x128xf32>
    %86 = math.exp %85 : vector<2x128xf32>
    %cst_32 = arith.constant 1.000000e+00 : f32
    %87 = vector.broadcast %cst_32 : f32 to vector<2x128xf32>
    %88 = arith.addf %87, %86 : vector<2x128xf32>
    %89 = arith.divf %87, %88 : vector<2x128xf32>
    %90 = vector.extract_strided_slice %77 {offsets = [0, 256], sizes = [2, 128], strides = [1, 1]} : vector<2x512xf32> to vector<2x128xf32>
    %91 = math.tanh %90 : vector<2x128xf32>
    %92 = vector.extract_strided_slice %77 {offsets = [0, 384], sizes = [2, 128], strides = [1, 1]} : vector<2x512xf32> to vector<2x128xf32>
    %93 = arith.negf %92 : vector<2x128xf32>
    %94 = math.exp %93 : vector<2x128xf32>
    %cst_33 = arith.constant 1.000000e+00 : f32
    %95 = vector.broadcast %cst_33 : f32 to vector<2x128xf32>
    %96 = arith.addf %95, %94 : vector<2x128xf32>
    %97 = arith.divf %95, %96 : vector<2x128xf32>
    %98 = arith.mulf %89, %70 : vector<2x128xf32>
    %99 = arith.mulf %83, %91 : vector<2x128xf32>
    %100 = arith.addf %98, %99 : vector<2x128xf32>
    %101 = math.tanh %100 : vector<2x128xf32>
    %102 = arith.mulf %97, %101 : vector<2x128xf32>
    %c6 = arith.constant 6 : index
    %c0_34 = arith.constant 0 : index
    %103 = vector.load %arg8[%c6, %c0_34] : memref<16x512xf32, #tpu.memory_space<vmem>>, vector<2x512xf32>
    %104 = arith.truncf %102 : vector<2x128xf32> to vector<2x128xbf16>
    %c0_35 = arith.constant 0 : index
    %c0_36 = arith.constant 0 : index
    %105 = vector.load %arg3[%c0_35, %c0_36] : memref<128x512xbf16, #tpu.memory_space<vmem>>, vector<128x512xbf16>
    %cst_37 = arith.constant dense<0.000000e+00> : vector<2x512xf32>
    %106 = tpu.matmul %104, %105, %cst_37 {dimension_numbers = #tpu.dot_dimension_numbers<[1], [0], [0], [1], [0, 0, 1, 1], [], []>} : vector<2x128xbf16>, vector<128x512xbf16>, vector<2x512xf32> -> vector<2x512xf32>
    %107 = arith.addf %103, %106 : vector<2x512xf32>
    %108 = vector.extract_strided_slice %107 {offsets = [0, 0], sizes = [2, 128], strides = [1, 1]} : vector<2x512xf32> to vector<2x128xf32>
    %109 = arith.negf %108 : vector<2x128xf32>
    %110 = math.exp %109 : vector<2x128xf32>
    %cst_38 = arith.constant 1.000000e+00 : f32
    %111 = vector.broadcast %cst_38 : f32 to vector<2x128xf32>
    %112 = arith.addf %111, %110 : vector<2x128xf32>
    %113 = arith.divf %111, %112 : vector<2x128xf32>
    %114 = vector.extract_strided_slice %107 {offsets = [0, 128], sizes = [2, 128], strides = [1, 1]} : vector<2x512xf32> to vector<2x128xf32>
    %115 = arith.negf %114 : vector<2x128xf32>
    %116 = math.exp %115 : vector<2x128xf32>
    %cst_39 = arith.constant 1.000000e+00 : f32
    %117 = vector.broadcast %cst_39 : f32 to vector<2x128xf32>
    %118 = arith.addf %117, %116 : vector<2x128xf32>
    %119 = arith.divf %117, %118 : vector<2x128xf32>
    %120 = vector.extract_strided_slice %107 {offsets = [0, 256], sizes = [2, 128], strides = [1, 1]} : vector<2x512xf32> to vector<2x128xf32>
    %121 = math.tanh %120 : vector<2x128xf32>
    %122 = vector.extract_strided_slice %107 {offsets = [0, 384], sizes = [2, 128], strides = [1, 1]} : vector<2x512xf32> to vector<2x128xf32>
    %123 = arith.negf %122 : vector<2x128xf32>
    %124 = math.exp %123 : vector<2x128xf32>
    %cst_40 = arith.constant 1.000000e+00 : f32
    %125 = vector.broadcast %cst_40 : f32 to vector<2x128xf32>
    %126 = arith.addf %125, %124 : vector<2x128xf32>
    %127 = arith.divf %125, %126 : vector<2x128xf32>
    %128 = arith.mulf %119, %100 : vector<2x128xf32>
    %129 = arith.mulf %113, %121 : vector<2x128xf32>
    %130 = arith.addf %128, %129 : vector<2x128xf32>
    %131 = math.tanh %130 : vector<2x128xf32>
    %132 = arith.mulf %127, %131 : vector<2x128xf32>
    %c8 = arith.constant 8 : index
    %c0_41 = arith.constant 0 : index
    %133 = vector.load %arg8[%c8, %c0_41] : memref<16x512xf32, #tpu.memory_space<vmem>>, vector<2x512xf32>
    %134 = arith.truncf %132 : vector<2x128xf32> to vector<2x128xbf16>
    %c0_42 = arith.constant 0 : index
    %c0_43 = arith.constant 0 : index
    %135 = vector.load %arg3[%c0_42, %c0_43] : memref<128x512xbf16, #tpu.memory_space<vmem>>, vector<128x512xbf16>
    %cst_44 = arith.constant dense<0.000000e+00> : vector<2x512xf32>
    %136 = tpu.matmul %134, %135, %cst_44 {dimension_numbers = #tpu.dot_dimension_numbers<[1], [0], [0], [1], [0, 0, 1, 1], [], []>} : vector<2x128xbf16>, vector<128x512xbf16>, vector<2x512xf32> -> vector<2x512xf32>
    %137 = arith.addf %133, %136 : vector<2x512xf32>
    %138 = vector.extract_strided_slice %137 {offsets = [0, 0], sizes = [2, 128], strides = [1, 1]} : vector<2x512xf32> to vector<2x128xf32>
    %139 = arith.negf %138 : vector<2x128xf32>
    %140 = math.exp %139 : vector<2x128xf32>
    %cst_45 = arith.constant 1.000000e+00 : f32
    %141 = vector.broadcast %cst_45 : f32 to vector<2x128xf32>
    %142 = arith.addf %141, %140 : vector<2x128xf32>
    %143 = arith.divf %141, %142 : vector<2x128xf32>
    %144 = vector.extract_strided_slice %137 {offsets = [0, 128], sizes = [2, 128], strides = [1, 1]} : vector<2x512xf32> to vector<2x128xf32>
    %145 = arith.negf %144 : vector<2x128xf32>
    %146 = math.exp %145 : vector<2x128xf32>
    %cst_46 = arith.constant 1.000000e+00 : f32
    %147 = vector.broadcast %cst_46 : f32 to vector<2x128xf32>
    %148 = arith.addf %147, %146 : vector<2x128xf32>
    %149 = arith.divf %147, %148 : vector<2x128xf32>
    %150 = vector.extract_strided_slice %137 {offsets = [0, 256], sizes = [2, 128], strides = [1, 1]} : vector<2x512xf32> to vector<2x128xf32>
    %151 = math.tanh %150 : vector<2x128xf32>
    %152 = vector.extract_strided_slice %137 {offsets = [0, 384], sizes = [2, 128], strides = [1, 1]} : vector<2x512xf32> to vector<2x128xf32>
    %153 = arith.negf %152 : vector<2x128xf32>
    %154 = math.exp %153 : vector<2x128xf32>
    %cst_47 = arith.constant 1.000000e+00 : f32
    %155 = vector.broadcast %cst_47 : f32 to vector<2x128xf32>
    %156 = arith.addf %155, %154 : vector<2x128xf32>
    %157 = arith.divf %155, %156 : vector<2x128xf32>
    %158 = arith.mulf %149, %130 : vector<2x128xf32>
    %159 = arith.mulf %143, %151 : vector<2x128xf32>
    %160 = arith.addf %158, %159 : vector<2x128xf32>
    %161 = math.tanh %160 : vector<2x128xf32>
    %162 = arith.mulf %157, %161 : vector<2x128xf32>
    %c10 = arith.constant 10 : index
    %c0_48 = arith.constant 0 : index
    %163 = vector.load %arg8[%c10, %c0_48] : memref<16x512xf32, #tpu.memory_space<vmem>>, vector<2x512xf32>
    %164 = arith.truncf %162 : vector<2x128xf32> to vector<2x128xbf16>
    %c0_49 = arith.constant 0 : index
    %c0_50 = arith.constant 0 : index
    %165 = vector.load %arg3[%c0_49, %c0_50] : memref<128x512xbf16, #tpu.memory_space<vmem>>, vector<128x512xbf16>
    %cst_51 = arith.constant dense<0.000000e+00> : vector<2x512xf32>
    %166 = tpu.matmul %164, %165, %cst_51 {dimension_numbers = #tpu.dot_dimension_numbers<[1], [0], [0], [1], [0, 0, 1, 1], [], []>} : vector<2x128xbf16>, vector<128x512xbf16>, vector<2x512xf32> -> vector<2x512xf32>
    %167 = arith.addf %163, %166 : vector<2x512xf32>
    %168 = vector.extract_strided_slice %167 {offsets = [0, 0], sizes = [2, 128], strides = [1, 1]} : vector<2x512xf32> to vector<2x128xf32>
    %169 = arith.negf %168 : vector<2x128xf32>
    %170 = math.exp %169 : vector<2x128xf32>
    %cst_52 = arith.constant 1.000000e+00 : f32
    %171 = vector.broadcast %cst_52 : f32 to vector<2x128xf32>
    %172 = arith.addf %171, %170 : vector<2x128xf32>
    %173 = arith.divf %171, %172 : vector<2x128xf32>
    %174 = vector.extract_strided_slice %167 {offsets = [0, 128], sizes = [2, 128], strides = [1, 1]} : vector<2x512xf32> to vector<2x128xf32>
    %175 = arith.negf %174 : vector<2x128xf32>
    %176 = math.exp %175 : vector<2x128xf32>
    %cst_53 = arith.constant 1.000000e+00 : f32
    %177 = vector.broadcast %cst_53 : f32 to vector<2x128xf32>
    %178 = arith.addf %177, %176 : vector<2x128xf32>
    %179 = arith.divf %177, %178 : vector<2x128xf32>
    %180 = vector.extract_strided_slice %167 {offsets = [0, 256], sizes = [2, 128], strides = [1, 1]} : vector<2x512xf32> to vector<2x128xf32>
    %181 = math.tanh %180 : vector<2x128xf32>
    %182 = vector.extract_strided_slice %167 {offsets = [0, 384], sizes = [2, 128], strides = [1, 1]} : vector<2x512xf32> to vector<2x128xf32>
    %183 = arith.negf %182 : vector<2x128xf32>
    %184 = math.exp %183 : vector<2x128xf32>
    %cst_54 = arith.constant 1.000000e+00 : f32
    %185 = vector.broadcast %cst_54 : f32 to vector<2x128xf32>
    %186 = arith.addf %185, %184 : vector<2x128xf32>
    %187 = arith.divf %185, %186 : vector<2x128xf32>
    %188 = arith.mulf %179, %160 : vector<2x128xf32>
    %189 = arith.mulf %173, %181 : vector<2x128xf32>
    %190 = arith.addf %188, %189 : vector<2x128xf32>
    %191 = math.tanh %190 : vector<2x128xf32>
    %192 = arith.mulf %187, %191 : vector<2x128xf32>
    %c12 = arith.constant 12 : index
    %c0_55 = arith.constant 0 : index
    %193 = vector.load %arg8[%c12, %c0_55] : memref<16x512xf32, #tpu.memory_space<vmem>>, vector<2x512xf32>
    %194 = arith.truncf %192 : vector<2x128xf32> to vector<2x128xbf16>
    %c0_56 = arith.constant 0 : index
    %c0_57 = arith.constant 0 : index
    %195 = vector.load %arg3[%c0_56, %c0_57] : memref<128x512xbf16, #tpu.memory_space<vmem>>, vector<128x512xbf16>
    %cst_58 = arith.constant dense<0.000000e+00> : vector<2x512xf32>
    %196 = tpu.matmul %194, %195, %cst_58 {dimension_numbers = #tpu.dot_dimension_numbers<[1], [0], [0], [1], [0, 0, 1, 1], [], []>} : vector<2x128xbf16>, vector<128x512xbf16>, vector<2x512xf32> -> vector<2x512xf32>
    %197 = arith.addf %193, %196 : vector<2x512xf32>
    %198 = vector.extract_strided_slice %197 {offsets = [0, 0], sizes = [2, 128], strides = [1, 1]} : vector<2x512xf32> to vector<2x128xf32>
    %199 = arith.negf %198 : vector<2x128xf32>
    %200 = math.exp %199 : vector<2x128xf32>
    %cst_59 = arith.constant 1.000000e+00 : f32
    %201 = vector.broadcast %cst_59 : f32 to vector<2x128xf32>
    %202 = arith.addf %201, %200 : vector<2x128xf32>
    %203 = arith.divf %201, %202 : vector<2x128xf32>
    %204 = vector.extract_strided_slice %197 {offsets = [0, 128], sizes = [2, 128], strides = [1, 1]} : vector<2x512xf32> to vector<2x128xf32>
    %205 = arith.negf %204 : vector<2x128xf32>
    %206 = math.exp %205 : vector<2x128xf32>
    %cst_60 = arith.constant 1.000000e+00 : f32
    %207 = vector.broadcast %cst_60 : f32 to vector<2x128xf32>
    %208 = arith.addf %207, %206 : vector<2x128xf32>
    %209 = arith.divf %207, %208 : vector<2x128xf32>
    %210 = vector.extract_strided_slice %197 {offsets = [0, 256], sizes = [2, 128], strides = [1, 1]} : vector<2x512xf32> to vector<2x128xf32>
    %211 = math.tanh %210 : vector<2x128xf32>
    %212 = vector.extract_strided_slice %197 {offsets = [0, 384], sizes = [2, 128], strides = [1, 1]} : vector<2x512xf32> to vector<2x128xf32>
    %213 = arith.negf %212 : vector<2x128xf32>
    %214 = math.exp %213 : vector<2x128xf32>
    %cst_61 = arith.constant 1.000000e+00 : f32
    %215 = vector.broadcast %cst_61 : f32 to vector<2x128xf32>
    %216 = arith.addf %215, %214 : vector<2x128xf32>
    %217 = arith.divf %215, %216 : vector<2x128xf32>
    %218 = arith.mulf %209, %190 : vector<2x128xf32>
    %219 = arith.mulf %203, %211 : vector<2x128xf32>
    %220 = arith.addf %218, %219 : vector<2x128xf32>
    %221 = math.tanh %220 : vector<2x128xf32>
    %222 = arith.mulf %217, %221 : vector<2x128xf32>
    %c14 = arith.constant 14 : index
    %c0_62 = arith.constant 0 : index
    %223 = vector.load %arg8[%c14, %c0_62] : memref<16x512xf32, #tpu.memory_space<vmem>>, vector<2x512xf32>
    %224 = arith.truncf %222 : vector<2x128xf32> to vector<2x128xbf16>
    %c0_63 = arith.constant 0 : index
    %c0_64 = arith.constant 0 : index
    %225 = vector.load %arg3[%c0_63, %c0_64] : memref<128x512xbf16, #tpu.memory_space<vmem>>, vector<128x512xbf16>
    %cst_65 = arith.constant dense<0.000000e+00> : vector<2x512xf32>
    %226 = tpu.matmul %224, %225, %cst_65 {dimension_numbers = #tpu.dot_dimension_numbers<[1], [0], [0], [1], [0, 0, 1, 1], [], []>} : vector<2x128xbf16>, vector<128x512xbf16>, vector<2x512xf32> -> vector<2x512xf32>
    %227 = arith.addf %223, %226 : vector<2x512xf32>
    %228 = vector.extract_strided_slice %227 {offsets = [0, 0], sizes = [2, 128], strides = [1, 1]} : vector<2x512xf32> to vector<2x128xf32>
    %229 = arith.negf %228 : vector<2x128xf32>
    %230 = math.exp %229 : vector<2x128xf32>
    %cst_66 = arith.constant 1.000000e+00 : f32
    %231 = vector.broadcast %cst_66 : f32 to vector<2x128xf32>
    %232 = arith.addf %231, %230 : vector<2x128xf32>
    %233 = arith.divf %231, %232 : vector<2x128xf32>
    %234 = vector.extract_strided_slice %227 {offsets = [0, 128], sizes = [2, 128], strides = [1, 1]} : vector<2x512xf32> to vector<2x128xf32>
    %235 = arith.negf %234 : vector<2x128xf32>
    %236 = math.exp %235 : vector<2x128xf32>
    %cst_67 = arith.constant 1.000000e+00 : f32
    %237 = vector.broadcast %cst_67 : f32 to vector<2x128xf32>
    %238 = arith.addf %237, %236 : vector<2x128xf32>
    %239 = arith.divf %237, %238 : vector<2x128xf32>
    %240 = vector.extract_strided_slice %227 {offsets = [0, 256], sizes = [2, 128], strides = [1, 1]} : vector<2x512xf32> to vector<2x128xf32>
    %241 = math.tanh %240 : vector<2x128xf32>
    %242 = vector.extract_strided_slice %227 {offsets = [0, 384], sizes = [2, 128], strides = [1, 1]} : vector<2x512xf32> to vector<2x128xf32>
    %243 = arith.negf %242 : vector<2x128xf32>
    %244 = math.exp %243 : vector<2x128xf32>
    %cst_68 = arith.constant 1.000000e+00 : f32
    %245 = vector.broadcast %cst_68 : f32 to vector<2x128xf32>
    %246 = arith.addf %245, %244 : vector<2x128xf32>
    %247 = arith.divf %245, %246 : vector<2x128xf32>
    %248 = arith.mulf %239, %220 : vector<2x128xf32>
    %249 = arith.mulf %233, %241 : vector<2x128xf32>
    %250 = arith.addf %248, %249 : vector<2x128xf32>
    %251 = math.tanh %250 : vector<2x128xf32>
    %252 = arith.mulf %247, %251 : vector<2x128xf32>
    %253 = tpu.concatenate %42, %72, %102, %132, %162, %192, %222, %252 in 0 : vector<2x128xf32>, vector<2x128xf32>, vector<2x128xf32>, vector<2x128xf32>, vector<2x128xf32>, vector<2x128xf32>, vector<2x128xf32>, vector<2x128xf32> -> vector<16x128xf32>
    %254 = arith.truncf %253 : vector<16x128xf32> to vector<16x128xbf16>
    %c0_69 = arith.constant 0 : index
    %c0_70 = arith.constant 0 : index
    %255 = vector.load %arg5[%c0_69, %c0_70] : memref<16x128xbf16, #tpu.memory_space<vmem>>, vector<16x128xbf16>
    tpu.vector_store %arg5[%c0_69, %c0_70], %254 {strides = array<i32>} : memref<16x128xbf16, #tpu.memory_space<vmem>>, vector<16x128xbf16>,
    %c0_71 = arith.constant 0 : index
    %c0_72 = arith.constant 0 : index
    %256 = vector.load %arg6[%c0_71, %c0_72] : memref<2x128xf32, #tpu.memory_space<vmem>>, vector<2x128xf32>
    tpu.vector_store %arg6[%c0_71, %c0_72], %252 {strides = array<i32>} : memref<2x128xf32, #tpu.memory_space<vmem>>, vector<2x128xf32>,
    %c0_73 = arith.constant 0 : index
    %c0_74 = arith.constant 0 : index
    %257 = vector.load %arg7[%c0_73, %c0_74] : memref<2x128xf32, #tpu.memory_space<vmem>>, vector<2x128xf32>
    tpu.vector_store %arg7[%c0_73, %c0_74], %250 {strides = array<i32>} : memref<2x128xf32, #tpu.memory_space<vmem>>, vector<2x128xf32>,
    return
  }
  func.func @transform_0(%arg0: i32) -> (i32, i32) {
    %c0_i32 = arith.constant 0 : i32
    %c0_i32_0 = arith.constant 0 : i32
    return %arg0, %c0_i32 : i32, i32
  }
  func.func @transform_1(%arg0: i32) -> (i32, i32) {
    %c0_i32 = arith.constant 0 : i32
    %c0_i32_0 = arith.constant 0 : i32
    %c0_i32_1 = arith.constant 0 : i32
    return %c0_i32, %c0_i32_0 : i32, i32
  }
  func.func @transform_2(%arg0: i32) -> (i32, i32) {
    %c0_i32 = arith.constant 0 : i32
    %c0_i32_0 = arith.constant 0 : i32
    %c0_i32_1 = arith.constant 0 : i32
    return %c0_i32, %c0_i32_0 : i32, i32
  }
  func.func @transform_3(%arg0: i32) -> (i32, i32) {
    %c0_i32 = arith.constant 0 : i32
    %c0_i32_0 = arith.constant 0 : i32
    %c0_i32_1 = arith.constant 0 : i32
    return %c0_i32, %c0_i32_0 : i32, i32
  }
  func.func @transform_4(%arg0: i32) -> (i32, i32) {
    %c0_i32 = arith.constant 0 : i32
    %c0_i32_0 = arith.constant 0 : i32
    return %arg0, %c0_i32 : i32, i32
  }
}

</mosaic_0001>

<bundles_post_ra>
// kernel: lstm_model_forward.5
= control target key start
LH: loop header
LB: loop body
LE: loop exit
PB: predicated region body
PF: predicated region fallthrough
CT: control target
= control target key end

     0   :  { %v180_v0 = vmov 0.0   ;;  %vm181_vm0 = vmmov 0   ;;  %s235_s1 = inlined_call_operand.vmem [shape: bf16[128,128], index: 1, kind: input, shape index: {}]   ;;  %s236_s0 = inlined_call_operand.vmem [shape: bf16[8,128], index: 0, kind: input, shape index: {}]   ;;  %s237_s2 = inlined_call_operand.vmem [shape: f32[1,128], index: 2, kind: input, shape index: {}]   ;;  %s238_s3 = inlined_call_operand.vmem [shape: f32[8,128], index: 3, kind: output, shape index: {}]  }
   0x1   :  { %150 = vmatprep.subr.bf16.mxu0 %v180_v0  ;;  %v172_v1 = vld [vmem:[%s235_s1 + $0x38] sm:$0xff]   ;;  %166 = vmatprep.mubr.msk.bf16.mxu0 %vm181_vm0, %v180_v0  ;;  %v173_v2 = vld [vmem:[%s235_s1 + $0x30] sm:$0xff]   ;;  %v174_v3 = vld [vmem:[%s235_s1 + $0x28] sm:$0xff]  }
   0x2   :  { %151 = vmatpush3.bf16.msra.mxu0 %v172_v1  ;;  %v175_v4 = vld [vmem:[%s235_s1 + $0x20] sm:$0xff]   ;;  %v176_v5 = vld [vmem:[%s235_s1 + $0x18] sm:$0xff]   ;;  %v177_v6 = vld [vmem:[%s235_s1 + $0x10] sm:$0xff]  }
   0x3   :  { %152 = vmatprep.subr.bf16.mxu0 %v180_v0  ;;  %v178_v7 = vld [vmem:[%s235_s1 + $0x8] sm:$0xff]   ;;  %v179_v8 = vld [vmem:[%s235_s1] sm:$0xff]  }
   0x4   :  { %v15_v9 = vld [vmem:[%s236_s0] sm:$0xf] }
   0x5   :  { %v132_v10 = vld [vmem:[%s237_s2] ss:$0 sm:$0xff] }
   0x6   :  { %153 = vmatpush3.bf16.msra.mxu0 %v173_v2 }
   0x7   :  { %154 = vmatprep.subr.bf16.mxu0 %v180_v0 }
   0xa   :  { %155 = vmatpush3.bf16.msra.mxu0 %v174_v3 }
   0xb   :  { %156 = vmatprep.subr.bf16.mxu0 %v180_v0 }
   0xe   :  { %157 = vmatpush3.bf16.msra.mxu0 %v175_v4 }
   0xf   :  { %158 = vmatprep.subr.bf16.mxu0 %v180_v0 }
  0x12   :  { %159 = vmatpush3.bf16.msra.mxu0 %v176_v5 }
  0x13   :  { %160 = vmatprep.subr.bf16.mxu0 %v180_v0 }
  0x16   :  { %161 = vmatpush3.bf16.msra.mxu0 %v177_v6 }
  0x17   :  { %162 = vmatprep.subr.bf16.mxu0 %v180_v0 }
  0x1a   :  { %163 = vmatpush3.bf16.msra.mxu0 %v178_v7 }
  0x1b   :  { %164 = vmatprep.subr.bf16.mxu0 %v180_v0 }
  0x1e   :  { %165 = vmatpush3.bf16.msra.mxu0 %v179_v8 }
  0x21   :  { %167 = vmatmul.mubr.bf16.vlgmr.msra.gmra.mxu0 %v15_v9 }
  0xe1   :  { %v121_v11 = vpop.f32.mrf.mxu0 }
  0xe2   :  { %v122_v12 = vadd.f32 %v132_v10, %v121_v11 }
  0xe3   :  { %v168_v13 = vpop.f32.mrf.mxu0 }
  0xe4   :  { %127 = vst [vmem:[%s238_s3] sm:$0xff] %v122_v12 }
  0xe5   :  { %v124_v14 = vpop.f32.mrf.mxu0 }
  0xe7   :  { %v169_v15 = vpop.f32.mrf.mxu0 }

// kernel: lstm_model_forward.3
= control target key start
LH: loop header
LB: loop body
LE: loop exit
PB: predicated region body
PF: predicated region fallthrough
CT: control target
= control target key end

     0   :  { %9 = vsyncpa [#allocation6], 0  ;;  %s2286_s0 = inlined_call_operand.vmem [shape: f32[16,4], index: 0, kind: input, shape index: {}]   ;;  %s2287_s1 = inlined_call_operand.hbm [shape: bf16[4,512], index: 1, kind: input, shape index: {}]   ;;  %s2288_s2 = inlined_call_operand.hbm [shape: bf16[128,512], index: 2, kind: input, shape index: {}]   ;;  %s2289_s3 = inlined_call_operand.hbm [shape: f32[1,512], index: 3, kind: input, shape index: {}]   ;;  %s2290_s4 = inlined_call_operand.vmem [shape: bf16[16,128], index: 4, kind: output, shape index: {}]  }
   0x1   :  { %10 = vsyncpa [#allocation8], 0  ;;  %s1814_s15 = smov [#allocation7]  }
   0x2   :  { %s28_s16 = sshll.u32 %s1814_s15, 4  ;;  %s29_s16 = int_to_ptr.vmem [resolvable:$true] %s28_s16 }
   0x3   :  { %s1758_s17 = scalar_lea.vmem %s29_s16, 4096  ;;  %p1763_p1 = scmp.lt.s32.totalorder %s29_s16, %s29_s16 }
   0x4   :  { %p1759_p0 = scmp.ne.s32.totalorder %s29_s16, %s1758_s17  ;;  %p1764_p2 = scmp.lt.s32.totalorder %s1758_s17, %s1758_s17 }
   0x6   :  { %p1765_p3 = por %p1764_p2, %p1763_p1 }
   0x8   :  { %p1766_p4 = pnand %p1765_p3, %p1759_p0 }
   0xa   :  { %1769 = shalt.err (!%p1766_p4)
}
   0xb   :  { %s1815_s18 = smov 256   ;;  %s1816_s19 = smov 16  }
   0xc   :  { %34 = dma.hbm_to_vmem [thread:$0]  %s2288_s2, 4096, %s29_s16, [#allocation8], %s1815_s18, %s1815_s18, %s1816_s19  }
   0xd   :  { %s1817_s22 = smov [#allocation5]   ;;  %s1818_s24 = smov [#allocation9]  }
   0xe   :  { %s19_s23 = sshll.u32 %s1817_s22, 4  ;;  %s41_s25 = sshll.u32 %s1818_s24, 4  ;;  %s20_s23 = int_to_ptr.vmem [resolvable:$true] %s19_s23  ;;  %s42_s25 = int_to_ptr.vmem [resolvable:$true] %s41_s25 }
   0xf   :  { %s1778_s26 = scalar_lea.vmem %s20_s23, 128  ;;  %p1783_p6 = scmp.lt.s32.totalorder %s20_s23, %s20_s23 }
  0x10   :  { %p1779_p5 = scmp.ne.s32.totalorder %s20_s23, %s1778_s26  ;;  %p1784_p7 = scmp.lt.s32.totalorder %s1778_s26, %s1778_s26 }
  0x12   :  { %p1785_p8 = por %p1784_p7, %p1783_p6 }
  0x14   :  { %p1786_p9 = pnand %p1785_p8, %p1779_p5 }
  0x16   :  { %1789 = shalt.err (!%p1786_p9)
}
  0x17   :  { %22 = dma.hbm_to_vmem [thread:$0]  %s2287_s1, 128, %s20_s23, [#allocation6]  }
  0x18   :  { %s1798_s29 = scalar_lea.vmem %s42_s25, 64  ;;  %p1803_p11 = scmp.lt.s32.totalorder %s42_s25, %s42_s25 }
  0x19   :  { %p1799_p10 = scmp.ne.s32.totalorder %s42_s25, %s1798_s29  ;;  %p1804_p12 = scmp.lt.s32.totalorder %s1798_s29, %s1798_s29 }
  0x1b   :  { %p1805_p13 = por %p1804_p12, %p1803_p11 }
  0x1d   :  { %p1806_p0 = pnand %p1805_p13, %p1799_p10 }
  0x1f   :  { %1809 = shalt.err (!%p1806_p0)
}
  0x20   :  { %44 = dma.hbm_to_vmem [thread:$0]  %s2289_s3, 64, %s42_s25, [#allocation8]  }
  0x21   :  { %1810 = dma.done.wait [#allocation6], 128  }
  0x22   :  { %1811 = vsyncadd [#allocation6], 4294967168 }
  0x23   :  { %1812 = dma.done.wait [#allocation8], 4160  }
  0x24   :  { %1813 = vsyncadd [#allocation8], 4294963136  ;;  %v67_v0 = vlaneseq  ;;  %v1819_v1 = vmov 1983009808   ;;  %v1820_v3 = vmov 0   ;;  %v1821_v5 = vmov 0.0  }
  0x25   :  { %v90_v2 = vunpack.c.l.s4 %v1819_v1  ;;  %154 = vmatprep.mubr.bf16.mxu0 %v1820_v3  ;;  %197 = vmatprep.mubr.bf16.mxu1 %v1820_v3  ;;  %59 = vst [vmem:[#allocation2] sm:$0x3] %v1821_v5  ;;  %60 = vst [vmem:[#allocation3] sm:$0x3] %v1821_v5  ;;  %v64_v8 = vld [vmem:[#allocation5] sm:$0xff]  ;;  %vm109_vm0 = vcmask 1041408  }
  0x26   :  { %v1858_v4 = vshrl.u32 %v67_v0, 7  ;;  %v88_v10 = vcombine.high %v64_v8, %v64_v8  ;;  %v61_v11 = vld [vmem:[%s2286_s0] sm:$0xff]  ;;  %v62_v12 = vld [vmem:[%s2286_s0 + $0x8] sm:$0xff]  ;;  %vm105_vm1 = vcmask 31744   ;;  %vm1439_vm2 = vcmask 1043456  }
  0x27   :  { %v91_v6 = vunpack.c.0.s8 %v90_v2  ;;  %v1868_v16 = vld [vmem:[#allocation7 + $0xe4] ss:$16 sps:$4 sm:$0xff]   ;;  %v63_v19 = vpack.c.bf16 %v62_v12, %v61_v11  ;;  %v1872_v20 = vld [vmem:[#allocation7 + $0xec] ss:$16 sps:$4 sm:$0xff]   ;;  %v1874_v21 = vld [vmem:[#allocation7 + $0xe0] ss:$16 sps:$4 sm:$0xff]  }
  0x28   :  { %v1878_v22 = vld [vmem:[#allocation7 + $0xc4] ss:$16 sps:$4 sm:$0xff]   ;;  %v1880_v23 = vld [vmem:[#allocation7 + $0xe8] ss:$16 sps:$4 sm:$0xff]   ;;  %v1883_v24 = vld [vmem:[#allocation7 + $0xcc] ss:$16 sps:$4 sm:$0xff]  }
  0x29   :  { %v94_v7 = vsub.s32 %v91_v6, %v1858_v4  ;;  %v1886_v25 = vld [vmem:[#allocation7 + $0xc0] ss:$16 sps:$4 sm:$0xff]   ;;  %v1890_v26 = vld [vmem:[#allocation7 + $0xa4] ss:$16 sps:$4 sm:$0xff]   ;;  %v1893_v27 = vld [vmem:[#allocation7 + $0xc8] ss:$16 sps:$4 sm:$0xff]  }
  0x2a   :  { %v1897_v28 = vld [vmem:[#allocation7 + $0xac] ss:$16 sps:$4 sm:$0xff]   ;;  %v1900_v29 = vld [vmem:[#allocation7 + $0xa0] ss:$16 sps:$4 sm:$0xff]   ;;  %v1903_v30 = vld [vmem:[#allocation7 + $0x84] ss:$16 sps:$4 sm:$0xff]  }
  0x2b   :  { %v95_v9 = vrot.slane %v64_v8, %v94_v7  ;;  %v102_v15 = vrot.slane %v88_v10, %v94_v7  ;;  %v1906_v31 = vld [vmem:[#allocation7 + $0xa8] ss:$16 sps:$4 sm:$0xff]   ;;  %v1909_v32 = vld [vmem:[#allocation7 + $0x8c] ss:$16 sps:$4 sm:$0xff]   ;;  %v1912_v33 = vld [vmem:[#allocation7 + $0x80] ss:$16 sps:$4 sm:$0xff]  }
  0x2c   :  { %v1915_v34 = vld [vmem:[#allocation7 + $0x64] ss:$16 sps:$4 sm:$0xff]   ;;  %v1918_v35 = vld [vmem:[#allocation7 + $0x88] ss:$16 sps:$4 sm:$0xff]   ;;  %v1921_v36 = vld [vmem:[#allocation7 + $0x6c] ss:$16 sps:$4 sm:$0xff]  }
  0x2d   :  { %v103_v13 = vcombine.high %v95_v9, %v95_v9  ;;  %v111_v14 = vsel %vm109_vm0, %v95_v9, 0  ;;  %v104_v17 = vcombine.high %v102_v15, %v102_v15  ;;  %v117_v18 = vsel %vm109_vm0, %v102_v15, 0  ;;  %v1924_v37 = vld [vmem:[#allocation7 + $0x60] ss:$16 sps:$4 sm:$0xff]   ;;  %v1927_v38 = vld [vmem:[#allocation7 + $0x44] ss:$16 sps:$4 sm:$0xff]  }
  0x2e   :  { %v1930_v39 = vld [vmem:[#allocation7 + $0x68] ss:$16 sps:$4 sm:$0xff]   ;;  %v1933_v40 = vld [vmem:[#allocation7 + $0x4c] ss:$16 sps:$4 sm:$0xff]   ;;  %v1936_v41 = vld [vmem:[#allocation7 + $0x40] ss:$16 sps:$4 sm:$0xff]  }
  0x2f   :  { %1464 = vmatprep.subr.msk.bf16.mxu0 %vm109_vm0, %v103_v13  ;;  %1466 = vmatprep.subr.msk.bf16.mxu1 %vm109_vm0, %v104_v17  ;;  %v1939_v42 = vld [vmem:[#allocation7 + $0x24] ss:$16 sps:$4 sm:$0xff]   ;;  %v1942_v43 = vld [vmem:[#allocation7 + $0x48] ss:$16 sps:$4 sm:$0xff]   ;;  %v1945_v44 = vld [vmem:[#allocation7 + $0x2c] ss:$16 sps:$4 sm:$0xff]  }
  0x30   :  { %137 = vmatpush1.bf16.msra.mxu0 %v111_v14  ;;  %180 = vmatpush1.bf16.msra.mxu1 %v117_v18  ;;  %v1948_v45 = vld [vmem:[#allocation7 + $0x20] ss:$16 sps:$4 sm:$0xff]   ;;  %v1951_v46 = vld [vmem:[#allocation7 + $0x4] ss:$16 sps:$4 sm:$0xff]   ;;  %v1954_v47 = vld [vmem:[#allocation7 + $0x28] ss:$16 sps:$4 sm:$0xff]  }
  0x31   :  { %415 = vmatprep.subr.bf16.mxu0 %v1868_v16  ;;  %456 = vmatprep.subr.bf16.mxu1 %v1872_v20  ;;  %v1957_v48 = vld [vmem:[#allocation7 + $0xc] ss:$16 sps:$4 sm:$0xff]   ;;  %v1960_v49 = vld [vmem:[#allocation7] ss:$16 sps:$4 sm:$0xff]   ;;  %v216_v50 = vld [vmem:[#allocation2] sm:$0x3] }
  0x32   :  { %v1964_v51 = vld [vmem:[#allocation7 + $0x8] ss:$16 sps:$4 sm:$0xff]   ;;  %v222_v52 = vpack.c.bf16 %v216_v50, %v216_v50  ;;  %v69_v53 = vsub.s32 0, %v1858_v4  ;;  %v65_v54 = vld [vmem:[#allocation9] sm:$0xf]  ;;  %v73_v55 = vsub.s32 1, %v1858_v4 }
  0x33   :  { %1465 = vmatmul.mubr.msk.bf16.vlgmr.msra.gmra.mxu0 %vm105_vm1, %v63_v19  ;;  %1467 = vmatmul.mubr.msk.bf16.vlgmr.msra.gmra.mxu1 %vm105_vm1, %v63_v19  ;;  %v77_v56 = vsub.s32 2, %v1858_v4  ;;  %v81_v58 = vsub.s32 3, %v1858_v4  ;;  %vm1441_vm3 = vcmask 1045504  }
  0x34   :  { %416 = vmatpush1.bf16.msra.mxu0 %v1874_v21  ;;  %447 = vmatprep.mubr.bf16.mxu0 %v1820_v3  ;;  %v70_v57 = vrot.slane %v65_v54, %v69_v53  ;;  %v74_v59 = vrot.slane %v65_v54, %v73_v55 }
  0x35   :  { %417 = vmatprep.subr.bf16.mxu0 %v1878_v22  ;;  %457 = vmatpush1.bf16.msra.mxu1 %v1880_v23  ;;  %v78_v60 = vrot.slane %v65_v54, %v77_v56  ;;  %v82_v63 = vrot.slane %v65_v54, %v81_v58 }
  0x36   :  { %488 = vmatprep.mubr.bf16.mxu1 %v1820_v3  ;;  %458 = vmatprep.subr.bf16.mxu1 %v1883_v24 }
  0x38   :  { %418 = vmatpush1.bf16.msra.mxu0 %v1886_v25 }
  0x39   :  { %419 = vmatprep.subr.bf16.mxu0 %v1890_v26  ;;  %459 = vmatpush1.bf16.msra.mxu1 %v1893_v27 }
  0x3a   :  { %460 = vmatprep.subr.bf16.mxu1 %v1897_v28 }
  0x3c   :  { %420 = vmatpush1.bf16.msra.mxu0 %v1900_v29 }
  0x3d   :  { %421 = vmatprep.subr.bf16.mxu0 %v1903_v30  ;;  %461 = vmatpush1.bf16.msra.mxu1 %v1906_v31 }
  0x3e   :  { %462 = vmatprep.subr.bf16.mxu1 %v1909_v32 }
  0x40   :  { %422 = vmatpush1.bf16.msra.mxu0 %v1912_v33 }
  0x41   :  { %423 = vmatprep.subr.bf16.mxu0 %v1915_v34  ;;  %463 = vmatpush1.bf16.msra.mxu1 %v1918_v35 }
  0x42   :  { %464 = vmatprep.subr.bf16.mxu1 %v1921_v36 }
  0x44   :  { %424 = vmatpush1.bf16.msra.mxu0 %v1924_v37 }
  0x45   :  { %425 = vmatprep.subr.bf16.mxu0 %v1927_v38  ;;  %465 = vmatpush1.bf16.msra.mxu1 %v1930_v39 }
  0x46   :  { %466 = vmatprep.subr.bf16.mxu1 %v1933_v40 }
  0x48   :  { %426 = vmatpush1.bf16.msra.mxu0 %v1936_v41 }
  0x49   :  { %427 = vmatprep.subr.bf16.mxu0 %v1939_v42  ;;  %467 = vmatpush1.bf16.msra.mxu1 %v1942_v43 }
  0x4a   :  { %468 = vmatprep.subr.bf16.mxu1 %v1945_v44 }
  0x4c   :  { %428 = vmatpush1.bf16.msra.mxu0 %v1948_v45 }
  0x4d   :  { %429 = vmatprep.subr.bf16.mxu0 %v1951_v46  ;;  %469 = vmatpush1.bf16.msra.mxu1 %v1954_v47 }
  0x4e   :  { %470 = vmatprep.subr.bf16.mxu1 %v1957_v48 }
  0x50   :  { %430 = vmatpush1.bf16.msra.mxu0 %v1960_v49 }
  0x51   :  { %530 = vmatprep.subr.bf16.mxu0 %v1868_v16  ;;  %471 = vmatpush1.bf16.msra.mxu1 %v1964_v51 }
  0x52   :  { %571 = vmatprep.subr.bf16.mxu1 %v1872_v20 }
  0x53   :  { %448 = vmatmul.mubr.bf16.vlgmr.msra.gmra.mxu0 %v222_v52 }
  0x54   :  { %531 = vmatpush1.bf16.msra.mxu0 %v1874_v21  ;;  %562 = vmatprep.mubr.bf16.mxu0 %v1820_v3 }
  0x55   :  { %489 = vmatmul.mubr.bf16.vlgmr.msra.gmra.mxu1 %v222_v52  ;;  %532 = vmatprep.subr.bf16.mxu0 %v1878_v22 }
  0x56   :  { %572 = vmatpush1.bf16.msra.mxu1 %v1880_v23  ;;  %603 = vmatprep.mubr.bf16.mxu1 %v1820_v3 }
  0x57   :  { %573 = vmatprep.subr.bf16.mxu1 %v1883_v24 }
  0x58   :  { %533 = vmatpush1.bf16.msra.mxu0 %v1886_v25 }
  0x59   :  { %534 = vmatprep.subr.bf16.mxu0 %v1890_v26 }
  0x5a   :  { %574 = vmatpush1.bf16.msra.mxu1 %v1893_v27 }
  0x5b   :  { %575 = vmatprep.subr.bf16.mxu1 %v1897_v28 }
  0x5c   :  { %535 = vmatpush1.bf16.msra.mxu0 %v1900_v29 }
  0x5d   :  { %536 = vmatprep.subr.bf16.mxu0 %v1903_v30 }
  0x5e   :  { %576 = vmatpush1.bf16.msra.mxu1 %v1906_v31 }
  0x5f   :  { %577 = vmatprep.subr.bf16.mxu1 %v1909_v32 }
  0x60   :  { %537 = vmatpush1.bf16.msra.mxu0 %v1912_v33 }
  0x61   :  { %538 = vmatprep.subr.bf16.mxu0 %v1915_v34 }
  0x62   :  { %578 = vmatpush1.bf16.msra.mxu1 %v1918_v35 }
  0x63   :  { %579 = vmatprep.subr.bf16.mxu1 %v1921_v36 }
  0x64   :  { %539 = vmatpush1.bf16.msra.mxu0 %v1924_v37 }
  0x65   :  { %540 = vmatprep.subr.bf16.mxu0 %v1927_v38 }
  0x66   :  { %580 = vmatpush1.bf16.msra.mxu1 %v1930_v39 }
  0x67   :  { %581 = vmatprep.subr.bf16.mxu1 %v1933_v40 }
  0x68   :  { %541 = vmatpush1.bf16.msra.mxu0 %v1936_v41 }
  0x69   :  { %542 = vmatprep.subr.bf16.mxu0 %v1939_v42 }
  0x6a   :  { %582 = vmatpush1.bf16.msra.mxu1 %v1942_v43 }
  0x6b   :  { %583 = vmatprep.subr.bf16.mxu1 %v1945_v44 }
  0x6c   :  { %543 = vmatpush1.bf16.msra.mxu0 %v1948_v45 }
  0x6d   :  { %544 = vmatprep.subr.bf16.mxu0 %v1951_v46 }
  0x6e   :  { %584 = vmatpush1.bf16.msra.mxu1 %v1954_v47 }
  0x6f   :  { %585 = vmatprep.subr.bf16.mxu1 %v1957_v48 }
  0x70   :  { %545 = vmatpush1.bf16.msra.mxu0 %v1960_v49 }
  0x71   :  { %663 = vmatprep.subr.bf16.mxu0 %v1868_v16 }
  0x72   :  { %586 = vmatpush1.bf16.msra.mxu1 %v1964_v51 }
  0x73   :  { %704 = vmatprep.subr.bf16.mxu1 %v1872_v20 }
  0xf3   :  { %v156_v61 = vpop.f32.mrf.mxu0  ;;  %v199_v1 = vpop.f32.mrf.mxu1 }
  0xf4   :  { %v157_v62 = vadd.f32 %v156_v61, %v70_v57  ;;  %v200_v5 = vadd.f32 %v199_v1, %v78_v60 }
  0xf5   :  { %v158_v0 = vpop.f32.mrf.mxu0  ;;  %v201_v7 = vpop.f32.mrf.mxu1 }
  0xf6   :  { %208 = vst [vmem:[#allocation4 + $0x30] sm:$0xff] %v157_v62  ;;  %v159_v2 = vadd.f32 %v158_v0, %v74_v59  ;;  %210 = vst [vmem:[#allocation4 + $0x18] sm:$0xff] %v200_v5  ;;  %v202_v9 = vadd.f32 %v201_v7, %v82_v63 }
  0xf7   :  { %v160_v6 = vpop.f32.mrf.mxu0  ;;  %v203_v11 = vpop.f32.mrf.mxu1 }
  0xf8   :  { %209 = vst [vmem:[#allocation4] sm:$0xff] %v159_v2  ;;  %v161_v8 = vadd.f32 %v160_v6, %v70_v57  ;;  %211 = vst [vmem:[#allocation4 + $0x10] sm:$0xff] %v202_v9  ;;  %v204_v12 = vadd.f32 %v203_v11, %v78_v60 }
  0xf9   :  { %v162_v10 = vpop.f32.mrf.mxu0  ;;  %v205_v13 = vpop.f32.mrf.mxu1 }
  0xfa   :  { %212 = vst [vmem:[#allocation4 + $0x8] sm:$0xff] %v161_v8  ;;  %v163_v4 = vadd.f32 %v162_v10, %v74_v59  ;;  %214 = vst [vmem:[#allocation4 + $0x28] sm:$0xff] %v204_v12  ;;  %v206_v14 = vadd.f32 %v205_v13, %v82_v63  ;;  %v217_v10 = vld [vmem:[#allocation3] sm:$0x3] }
  0xfc   :  { %213 = vst [vmem:[#allocation4 + $0x20] sm:$0xff] %v163_v4  ;;  %215 = vst [vmem:[#allocation4 + $0x38] sm:$0xff] %v206_v14 }
  0xfd   :  { %v218_v15 = vld [vmem:[#allocation4 + $0x30] sm:$0x3]  ;;  %v220_v0 = vld [vmem:[#allocation4 + $0x18] sm:$0x3] }
  0xff   :  { %v219_v19 = vld [vmem:[#allocation4] sm:$0x3]  ;;  %v221_v61 = vld [vmem:[#allocation4 + $0x10] sm:$0x3] }
 0x113   :  { %v449_v17 = vpop.f32.mrf.mxu0 }
 0x114   :  { %v497_v18 = vadd.f32 %v449_v17, %v218_v15 }
 0x115   :  { %v451_v50 = vpop.f32.mrf.mxu0  ;;  %v490_v52 = vpop.f32.mrf.mxu1 }
 0x116   :  { %v1500_v53 = vmul.f32 -1.442695, %v497_v18  ;;  %v498_v54 = vadd.f32 %v451_v50, %v219_v19  ;;  %v499_v2 = vadd.f32 %v490_v52, %v220_v0 }
 0x117   :  { %v453_v55 = vpop.f32.mrf.mxu0  ;;  %v492_v56 = vpop.f32.mrf.mxu1 }
 0x118   :  { %1590 = vpow2.f32 %v1500_v53  ;;  %v1501_v57 = vmul.f32 -1.442695, %v498_v54  ;;  %v500_v62 = vadd.f32 %v492_v56, %v221_v61  ;;  %v525_v55 = vld [vmem:[#allocation4 + $0x30] sm:$0xc] }
 0x119   :  { %v454_v58 = vpop.f32.mrf.mxu0  ;;  %v494_v59 = vpop.f32.mrf.mxu1 }
 0x11a   :  { %1592 = vpow2.f32 %v1501_v57  ;;  %v1502_v63 = vmul.f32 -1.442695, %v500_v62 }
 0x11b   :  { %v495_v60 = vpop.f32.mrf.mxu1 }
 0x11c   :  { %1594 = vpow2.f32 %v1502_v63  ;;  %v526_v60 = vld [vmem:[#allocation4] sm:$0xc] }
 0x125   :  { %v1591_v1 = vpop.eup %1590 }
 0x126   :  { %v504_v5 = vadd.f32 1.0, %v1591_v1 }
 0x127   :  { %v1593_v6 = vpop.eup %1592 }
 0x128   :  { %1596 = vrcp.f32 %v504_v5  ;;  %v510_v7 = vadd.f32 1.0, %v1593_v6 }
 0x129   :  { %1598 = vtanh.f32 %v499_v2  ;;  %v1595_v8 = vpop.eup %1594 }
 0x12a   :  { %1600 = vrcp.f32 %v510_v7  ;;  %v517_v12 = vadd.f32 1.0, %v1595_v8  ;;  %v528_v7 = vld [vmem:[#allocation4 + $0x10] sm:$0xc] }
 0x12c   :  { %1602 = vrcp.f32 %v517_v12 }
 0x135   :  { %v1597_v9 = vpop.eup %1596 }
 0x136   :  { %v1599_v11 = vpop.eup %1598 }
 0x137   :  { %v1601_v4 = vpop.eup %1600  ;;  %v521_v14 = vmul.f32 %v1599_v11, %v1597_v9  ;;  %v527_v11 = vld [vmem:[#allocation4 + $0x18] sm:$0xc] }
 0x138   :  { %v520_v13 = vmul.f32 %v1601_v4, %v217_v10 }
 0x139   :  { %v1603_v17 = vpop.eup %1602 }
 0x13a   :  { %v2009_v15 = vadd.f32 %v521_v14, %v520_v13 }
 0x13c   :  { %1604 = vtanh.f32 %v2009_v15 }
 0x149   :  { %v1605_v18 = vpop.eup %1604 }
 0x14a   :  { %v2012_v19 = vmul.f32 %v1605_v18, %v1603_v17 }
 0x14c   :  { %v529_v50 = vpack.c.bf16 %v2012_v19, %v2012_v19 }
 0x14e   :  { %563 = vmatmul.mubr.bf16.vlgmr.msra.gmra.mxu0 %v529_v50  ;;  %604 = vmatmul.mubr.bf16.vlgmr.msra.gmra.mxu1 %v529_v50 }
 0x14f   :  { %664 = vmatpush1.bf16.msra.mxu0 %v1874_v21  ;;  %705 = vmatpush1.bf16.msra.mxu1 %v1880_v23 }
 0x150   :  { %665 = vmatprep.subr.bf16.mxu0 %v1878_v22  ;;  %706 = vmatprep.subr.bf16.mxu1 %v1883_v24 }
 0x151   :  { %695 = vmatprep.mubr.bf16.mxu0 %v1820_v3  ;;  %736 = vmatprep.mubr.bf16.mxu1 %v1820_v3 }
 0x153   :  { %666 = vmatpush1.bf16.msra.mxu0 %v1886_v25  ;;  %707 = vmatpush1.bf16.msra.mxu1 %v1893_v27 }
 0x154   :  { %667 = vmatprep.subr.bf16.mxu0 %v1890_v26  ;;  %708 = vmatprep.subr.bf16.mxu1 %v1897_v28 }
 0x157   :  { %668 = vmatpush1.bf16.msra.mxu0 %v1900_v29  ;;  %709 = vmatpush1.bf16.msra.mxu1 %v1906_v31 }
 0x158   :  { %669 = vmatprep.subr.bf16.mxu0 %v1903_v30  ;;  %710 = vmatprep.subr.bf16.mxu1 %v1909_v32 }
 0x15b   :  { %670 = vmatpush1.bf16.msra.mxu0 %v1912_v33  ;;  %711 = vmatpush1.bf16.msra.mxu1 %v1918_v35 }
 0x15c   :  { %671 = vmatprep.subr.bf16.mxu0 %v1915_v34  ;;  %712 = vmatprep.subr.bf16.mxu1 %v1921_v36 }
 0x15f   :  { %672 = vmatpush1.bf16.msra.mxu0 %v1924_v37  ;;  %713 = vmatpush1.bf16.msra.mxu1 %v1930_v39 }
 0x160   :  { %673 = vmatprep.subr.bf16.mxu0 %v1927_v38  ;;  %714 = vmatprep.subr.bf16.mxu1 %v1933_v40 }
 0x163   :  { %674 = vmatpush1.bf16.msra.mxu0 %v1936_v41  ;;  %715 = vmatpush1.bf16.msra.mxu1 %v1942_v43 }
 0x164   :  { %675 = vmatprep.subr.bf16.mxu0 %v1939_v42  ;;  %716 = vmatprep.subr.bf16.mxu1 %v1945_v44 }
 0x167   :  { %676 = vmatpush1.bf16.msra.mxu0 %v1948_v45  ;;  %717 = vmatpush1.bf16.msra.mxu1 %v1954_v47 }
 0x168   :  { %677 = vmatprep.subr.bf16.mxu0 %v1951_v46  ;;  %718 = vmatprep.subr.bf16.mxu1 %v1957_v48 }
 0x16b   :  { %678 = vmatpush1.bf16.msra.mxu0 %v1960_v49  ;;  %719 = vmatpush1.bf16.msra.mxu1 %v1964_v51 }
 0x16c   :  { %796 = vmatprep.subr.bf16.mxu0 %v1868_v16  ;;  %837 = vmatprep.subr.bf16.mxu1 %v1872_v20 }
 0x20e   :  { %v564_v52 = vpop.f32.mrf.mxu0  ;;  %v605_v53 = vpop.f32.mrf.mxu1 }
 0x20f   :  { %v616_v54 = vrot.slane %v564_v52, 6  ;;  %v618_v9 = vrot.slane %v605_v53, 6 }
 0x210   :  { %v566_v56 = vpop.f32.mrf.mxu0  ;;  %v607_v57 = vpop.f32.mrf.mxu1 }
 0x211   :  { %v624_v58 = vadd.f32 %v616_v54, %v525_v55  ;;  %v617_v59 = vrot.slane %v566_v56, 6  ;;  %v619_v6 = vrot.slane %v607_v57, 6  ;;  %v626_v12 = vadd.f32 %v618_v9, %v527_v11  ;;  %v656_v9 = vld [vmem:[#allocation4] sm:$0x30] }
 0x212   :  { %v568_v61 = vpop.f32.mrf.mxu0  ;;  %v609_v62 = vpop.f32.mrf.mxu1  ;;  %v648_v54 = vrot.slane %v2009_v15, 6 }
 0x213   :  { %v1503_v63 = vmul.f32 -1.442695, %v624_v58  ;;  %v625_v0 = vadd.f32 %v617_v59, %v526_v60  ;;  %v627_v8 = vadd.f32 %v619_v6, %v528_v7 }
 0x214   :  { %v569_v1 = vpop.f32.mrf.mxu0  ;;  %v610_v2 = vpop.f32.mrf.mxu1 }
 0x215   :  { %1606 = vpow2.f32 %v1503_v63  ;;  %v1504_v5 = vmul.f32 -1.442695, %v625_v0  ;;  %v1505_v10 = vmul.f32 -1.442695, %v627_v8  ;;  %v655_v2 = vld [vmem:[#allocation4 + $0x30] sm:$0x30] }
 0x217   :  { %1608 = vpow2.f32 %v1504_v5 }
 0x218   :  { %1610 = vpow2.f32 %v1505_v10 }
 0x222   :  { %v1607_v4 = vpop.eup %1606 }
 0x223   :  { %v631_v13 = vadd.f32 1.0, %v1607_v4 }
 0x224   :  { %v1609_v14 = vpop.eup %1608 }
 0x225   :  { %1612 = vrcp.f32 %v631_v13  ;;  %v637_v17 = vadd.f32 1.0, %v1609_v14  ;;  %v1611_v18 = vpop.eup %1610 }
 0x226   :  { %1614 = vtanh.f32 %v626_v12  ;;  %v644_v56 = vadd.f32 1.0, %v1611_v18 }
 0x227   :  { %1616 = vrcp.f32 %v637_v17 }
 0x228   :  { %1618 = vrcp.f32 %v644_v56  ;;  %v657_v56 = vld [vmem:[#allocation4 + $0x18] sm:$0x30] }
 0x232   :  { %v1613_v50 = vpop.eup %1612 }
 0x233   :  { %v1615_v52 = vpop.eup %1614 }
 0x234   :  { %v1617_v55 = vpop.eup %1616  ;;  %v651_v57 = vmul.f32 %v1615_v52, %v1613_v50  ;;  %v658_v50 = vld [vmem:[#allocation4 + $0x10] sm:$0x30] }
 0x235   :  { %v650_v53 = vmul.f32 %v1617_v55, %v648_v54  ;;  %v1619_v59 = vpop.eup %1618 }
 0x237   :  { %v2051_v58 = vadd.f32 %v651_v57, %v650_v53 }
 0x239   :  { %1620 = vtanh.f32 %v2051_v58 }
 0x246   :  { %v1621_v60 = vpop.eup %1620 }
 0x247   :  { %v2054_v61 = vmul.f32 %v1621_v60, %v1619_v59 }
 0x249   :  { %v659_v62 = vpack.c.bf16 %v2054_v61, %v2054_v61 }
 0x24b   :  { %v661_v63 = vrot.slane %v659_v62, 1 }
 0x24d   :  { %696 = vmatmul.mubr.bf16.vlgmr.msra.gmra.mxu0 %v661_v63  ;;  %737 = vmatmul.mubr.bf16.vlgmr.msra.gmra.mxu1 %v661_v63 }
 0x24e   :  { %797 = vmatpush1.bf16.msra.mxu0 %v1874_v21  ;;  %838 = vmatpush1.bf16.msra.mxu1 %v1880_v23 }
 0x24f   :  { %798 = vmatprep.subr.bf16.mxu0 %v1878_v22  ;;  %839 = vmatprep.subr.bf16.mxu1 %v1883_v24 }
 0x250   :  { %828 = vmatprep.mubr.bf16.mxu0 %v1820_v3  ;;  %869 = vmatprep.mubr.bf16.mxu1 %v1820_v3 }
 0x252   :  { %799 = vmatpush1.bf16.msra.mxu0 %v1886_v25  ;;  %840 = vmatpush1.bf16.msra.mxu1 %v1893_v27 }
 0x253   :  { %800 = vmatprep.subr.bf16.mxu0 %v1890_v26  ;;  %841 = vmatprep.subr.bf16.mxu1 %v1897_v28 }
 0x256   :  { %801 = vmatpush1.bf16.msra.mxu0 %v1900_v29  ;;  %842 = vmatpush1.bf16.msra.mxu1 %v1906_v31 }
 0x257   :  { %802 = vmatprep.subr.bf16.mxu0 %v1903_v30  ;;  %843 = vmatprep.subr.bf16.mxu1 %v1909_v32 }
 0x25a   :  { %803 = vmatpush1.bf16.msra.mxu0 %v1912_v33  ;;  %844 = vmatpush1.bf16.msra.mxu1 %v1918_v35 }
 0x25b   :  { %804 = vmatprep.subr.bf16.mxu0 %v1915_v34  ;;  %845 = vmatprep.subr.bf16.mxu1 %v1921_v36 }
 0x25e   :  { %805 = vmatpush1.bf16.msra.mxu0 %v1924_v37  ;;  %846 = vmatpush1.bf16.msra.mxu1 %v1930_v39 }
 0x25f   :  { %806 = vmatprep.subr.bf16.mxu0 %v1927_v38  ;;  %847 = vmatprep.subr.bf16.mxu1 %v1933_v40 }
 0x262   :  { %807 = vmatpush1.bf16.msra.mxu0 %v1936_v41  ;;  %848 = vmatpush1.bf16.msra.mxu1 %v1942_v43 }
 0x263   :  { %808 = vmatprep.subr.bf16.mxu0 %v1939_v42  ;;  %849 = vmatprep.subr.bf16.mxu1 %v1945_v44 }
 0x266   :  { %809 = vmatpush1.bf16.msra.mxu0 %v1948_v45  ;;  %850 = vmatpush1.bf16.msra.mxu1 %v1954_v47 }
 0x267   :  { %810 = vmatprep.subr.bf16.mxu0 %v1951_v46  ;;  %851 = vmatprep.subr.bf16.mxu1 %v1957_v48 }
 0x26a   :  { %811 = vmatpush1.bf16.msra.mxu0 %v1960_v49  ;;  %852 = vmatpush1.bf16.msra.mxu1 %v1964_v51 }
 0x26b   :  { %929 = vmatprep.subr.bf16.mxu0 %v1868_v16  ;;  %970 = vmatprep.subr.bf16.mxu1 %v1872_v20 }
 0x30d   :  { %v697_v15 = vpop.f32.mrf.mxu0  ;;  %v738_v0 = vpop.f32.mrf.mxu1 }
 0x30e   :  { %v749_v1 = vrot.slane %v697_v15, 4  ;;  %v751_v54 = vrot.slane %v738_v0, 4 }
 0x30f   :  { %v699_v5 = vpop.f32.mrf.mxu0  ;;  %v740_v6 = vpop.f32.mrf.mxu1 }
 0x310   :  { %v757_v7 = vadd.f32 %v749_v1, %v655_v2  ;;  %v750_v8 = vrot.slane %v699_v5, 4  ;;  %v752_v18 = vrot.slane %v740_v6, 4  ;;  %v759_v53 = vadd.f32 %v751_v54, %v657_v56 }
 0x311   :  { %v701_v10 = vpop.f32.mrf.mxu0  ;;  %v742_v11 = vpop.f32.mrf.mxu1  ;;  %v781_v2 = vrot.slane %v2051_v58, 6 }
 0x312   :  { %v1506_v4 = vmul.f32 -1.442695, %v757_v7  ;;  %v758_v12 = vadd.f32 %v750_v8, %v656_v9  ;;  %v760_v52 = vadd.f32 %v752_v18, %v658_v50 }
 0x313   :  { %v702_v13 = vpop.f32.mrf.mxu0  ;;  %v743_v14 = vpop.f32.mrf.mxu1 }
 0x314   :  { %1622 = vpow2.f32 %v1506_v4  ;;  %v1507_v17 = vmul.f32 -1.442695, %v758_v12  ;;  %v1508_v55 = vmul.f32 -1.442695, %v760_v52  ;;  %v1438_v4 = vsel %vm109_vm0, %v2012_v19, %v2054_v61 }
 0x316   :  { %1624 = vpow2.f32 %v1507_v17  ;;  %v788_v17 = vld [vmem:[#allocation4 + $0x30] sm:$0xc0] }
 0x317   :  { %1626 = vpow2.f32 %v1508_v55  ;;  %v789_v55 = vld [vmem:[#allocation4] sm:$0xc0] }
 0x321   :  { %v1623_v57 = vpop.eup %1622 }
 0x322   :  { %v764_v59 = vadd.f32 1.0, %v1623_v57 }
 0x323   :  { %v1625_v60 = vpop.eup %1624 }
 0x324   :  { %1628 = vrcp.f32 %v764_v59  ;;  %v770_v62 = vadd.f32 1.0, %v1625_v60  ;;  %v1627_v63 = vpop.eup %1626 }
 0x325   :  { %1630 = vtanh.f32 %v759_v53  ;;  %v777_v6 = vadd.f32 1.0, %v1627_v63 }
 0x326   :  { %1632 = vrcp.f32 %v770_v62 }
 0x327   :  { %1634 = vrcp.f32 %v777_v6  ;;  %v790_v6 = vld [vmem:[#allocation4 + $0x18] sm:$0xc0] }
 0x331   :  { %v1629_v15 = vpop.eup %1628 }
 0x332   :  { %v1631_v1 = vpop.eup %1630 }
 0x333   :  { %v1633_v5 = vpop.eup %1632  ;;  %v784_v7 = vmul.f32 %v1631_v1, %v1629_v15  ;;  %v791_v15 = vld [vmem:[#allocation4 + $0x10] sm:$0xc0] }
 0x334   :  { %v783_v0 = vmul.f32 %v1633_v5, %v781_v2  ;;  %v1635_v9 = vpop.eup %1634 }
 0x336   :  { %v2093_v8 = vadd.f32 %v784_v7, %v783_v0 }
 0x338   :  { %1636 = vtanh.f32 %v2093_v8 }
 0x345   :  { %v1637_v10 = vpop.eup %1636 }
 0x346   :  { %v787_v11 = vmul.f32 %v1637_v10, %v1635_v9 }
 0x348   :  { %v792_v12 = vpack.c.bf16 %v787_v11, %v787_v11  ;;  %v2100_v58 = vsel %vm1439_vm2, %v1438_v4, %v787_v11 }
 0x34a   :  { %v794_v13 = vrot.slane %v792_v12, 2 }
 0x34c   :  { %829 = vmatmul.mubr.bf16.vlgmr.msra.gmra.mxu0 %v794_v13  ;;  %870 = vmatmul.mubr.bf16.vlgmr.msra.gmra.mxu1 %v794_v13 }
 0x34d   :  { %930 = vmatpush1.bf16.msra.mxu0 %v1874_v21  ;;  %971 = vmatpush1.bf16.msra.mxu1 %v1880_v23 }
 0x34e   :  { %931 = vmatprep.subr.bf16.mxu0 %v1878_v22  ;;  %972 = vmatprep.subr.bf16.mxu1 %v1883_v24 }
 0x34f   :  { %961 = vmatprep.mubr.bf16.mxu0 %v1820_v3  ;;  %1002 = vmatprep.mubr.bf16.mxu1 %v1820_v3 }
 0x351   :  { %932 = vmatpush1.bf16.msra.mxu0 %v1886_v25  ;;  %973 = vmatpush1.bf16.msra.mxu1 %v1893_v27 }
 0x352   :  { %933 = vmatprep.subr.bf16.mxu0 %v1890_v26  ;;  %974 = vmatprep.subr.bf16.mxu1 %v1897_v28 }
 0x355   :  { %934 = vmatpush1.bf16.msra.mxu0 %v1900_v29  ;;  %975 = vmatpush1.bf16.msra.mxu1 %v1906_v31 }
 0x356   :  { %935 = vmatprep.subr.bf16.mxu0 %v1903_v30  ;;  %976 = vmatprep.subr.bf16.mxu1 %v1909_v32 }
 0x359   :  { %936 = vmatpush1.bf16.msra.mxu0 %v1912_v33  ;;  %977 = vmatpush1.bf16.msra.mxu1 %v1918_v35 }
 0x35a   :  { %937 = vmatprep.subr.bf16.mxu0 %v1915_v34  ;;  %978 = vmatprep.subr.bf16.mxu1 %v1921_v36 }
 0x35d   :  { %938 = vmatpush1.bf16.msra.mxu0 %v1924_v37  ;;  %979 = vmatpush1.bf16.msra.mxu1 %v1930_v39 }
 0x35e   :  { %939 = vmatprep.subr.bf16.mxu0 %v1927_v38  ;;  %980 = vmatprep.subr.bf16.mxu1 %v1933_v40 }
 0x361   :  { %940 = vmatpush1.bf16.msra.mxu0 %v1936_v41  ;;  %981 = vmatpush1.bf16.msra.mxu1 %v1942_v43 }
 0x362   :  { %941 = vmatprep.subr.bf16.mxu0 %v1939_v42  ;;  %982 = vmatprep.subr.bf16.mxu1 %v1945_v44 }
 0x365   :  { %942 = vmatpush1.bf16.msra.mxu0 %v1948_v45  ;;  %983 = vmatpush1.bf16.msra.mxu1 %v1954_v47 }
 0x366   :  { %943 = vmatprep.subr.bf16.mxu0 %v1951_v46  ;;  %984 = vmatprep.subr.bf16.mxu1 %v1957_v48 }
 0x369   :  { %944 = vmatpush1.bf16.msra.mxu0 %v1960_v49  ;;  %985 = vmatpush1.bf16.msra.mxu1 %v1964_v51 }
 0x36a   :  { %1047 = vmatprep.subr.bf16.mxu0 %v1868_v16  ;;  %1088 = vmatprep.subr.bf16.mxu1 %v1872_v20 }
 0x40c   :  { %v830_v19 = vpop.f32.mrf.mxu0  ;;  %v871_v61 = vpop.f32.mrf.mxu1 }
 0x40d   :  { %v882_v14 = vrot.slane %v830_v19, 2  ;;  %v884_v2 = vrot.slane %v871_v61, 2  ;;  %v914_v19 = vrot.slane %v2093_v8, 6  ;;  %v924_v8 = vld [vmem:[#allocation4 + $0x38] sm:$0x3] }
 0x40e   :  { %v832_v18 = vpop.f32.mrf.mxu0  ;;  %v873_v50 = vpop.f32.mrf.mxu1 }
 0x40f   :  { %v890_v52 = vadd.f32 %v882_v14, %v788_v17  ;;  %v883_v54 = vrot.slane %v832_v18, 2  ;;  %v885_v16 = vrot.slane %v873_v50, 2  ;;  %v892_v0 = vadd.f32 %v884_v2, %v790_v6 }
 0x410   :  { %v834_v56 = vpop.f32.mrf.mxu0  ;;  %v875_v57 = vpop.f32.mrf.mxu1 }
 0x411   :  { %v1509_v53 = vmul.f32 -1.442695, %v890_v52  ;;  %v891_v59 = vadd.f32 %v883_v54, %v789_v55  ;;  %v893_v1 = vadd.f32 %v885_v16, %v791_v15 }
 0x412   :  { %v835_v60 = vpop.f32.mrf.mxu0  ;;  %v876_v62 = vpop.f32.mrf.mxu1 }
 0x413   :  { %1638 = vpow2.f32 %v1509_v53  ;;  %v1510_v63 = vmul.f32 -1.442695, %v891_v59  ;;  %v1511_v5 = vmul.f32 -1.442695, %v893_v1 }
 0x415   :  { %1640 = vpow2.f32 %v1510_v63 }
 0x416   :  { %1642 = vpow2.f32 %v1511_v5 }
 0x420   :  { %v1639_v7 = vpop.eup %1638 }
 0x421   :  { %v897_v9 = vadd.f32 1.0, %v1639_v7 }
 0x422   :  { %v1641_v10 = vpop.eup %1640 }
 0x423   :  { %1644 = vrcp.f32 %v897_v9  ;;  %v903_v11 = vadd.f32 1.0, %v1641_v10  ;;  %v1643_v4 = vpop.eup %1642 }
 0x424   :  { %1646 = vtanh.f32 %v892_v0  ;;  %v910_v17 = vadd.f32 1.0, %v1643_v4 }
 0x425   :  { %1648 = vrcp.f32 %v903_v11 }
 0x426   :  { %1650 = vrcp.f32 %v910_v17  ;;  %v2191_v17 = vld [vmem:[#allocation7 + $0xe8] ss:$16 sps:$4 sm:$0xff]  }
 0x430   :  { %v1645_v12 = vpop.eup %1644 }
 0x431   :  { %v1647_v13 = vpop.eup %1646 }
 0x432   :  { %v1649_v14 = vpop.eup %1648  ;;  %v917_v18 = vmul.f32 %v1647_v13, %v1645_v12 }
 0x433   :  { %v916_v61 = vmul.f32 %v1649_v14, %v914_v19  ;;  %v1651_v52 = vpop.eup %1650  ;;  %v2188_v14 = vld [vmem:[#allocation7 + $0xe0] ss:$16 sps:$4 sm:$0xff]  }
 0x435   :  { %v2137_v50 = vadd.f32 %v917_v18, %v916_v61  ;;  %v2194_v18 = vld [vmem:[#allocation7 + $0xc4] ss:$16 sps:$4 sm:$0xff]   ;;  %v2197_v61 = vld [vmem:[#allocation7 + $0xcc] ss:$16 sps:$4 sm:$0xff]  }
 0x437   :  { %1652 = vtanh.f32 %v2137_v50  ;;  %v1035_v6 = vrot.slane %v2137_v50, 6  ;;  %v2202_v50 = vld [vmem:[#allocation7 + $0xc0] ss:$16 sps:$4 sm:$0xff]  }
 0x444   :  { %v1653_v54 = vpop.eup %1652 }
 0x445   :  { %v920_v55 = vmul.f32 %v1653_v54, %v1651_v52  ;;  %v2205_v52 = vld [vmem:[#allocation7 + $0xc8] ss:$16 sps:$4 sm:$0xff]   ;;  %v2208_v54 = vld [vmem:[#allocation7 + $0xa4] ss:$16 sps:$4 sm:$0xff]  }
 0x447   :  { %v925_v56 = vpack.c.bf16 %v920_v55, %v920_v55  ;;  %v2142_v57 = vsel %vm1441_vm3, %v2100_v58, %v920_v55  ;;  %v2211_v55 = vld [vmem:[#allocation7 + $0xac] ss:$16 sps:$4 sm:$0xff]  }
 0x449   :  { %v927_v53 = vrot.slane %v925_v56, 3  ;;  %v2214_v56 = vld [vmem:[#allocation7 + $0xa0] ss:$16 sps:$4 sm:$0xff]  }
 0x44b   :  { %962 = vmatmul.mubr.bf16.vlgmr.msra.gmra.mxu0 %v927_v53  ;;  %1003 = vmatmul.mubr.bf16.vlgmr.msra.gmra.mxu1 %v927_v53  ;;  %v2217_v53 = vld [vmem:[#allocation7 + $0xa8] ss:$16 sps:$4 sm:$0xff]  }
 0x44c   :  { %1048 = vmatpush1.bf16.msra.mxu0 %v1874_v21  ;;  %1089 = vmatpush1.bf16.msra.mxu1 %v1880_v23  ;;  %v2176_v21 = vld [vmem:[#allocation7 + $0xe4] ss:$16 sps:$4 sm:$0xff]  }
 0x44d   :  { %1049 = vmatprep.subr.bf16.mxu0 %v1878_v22  ;;  %1090 = vmatprep.subr.bf16.mxu1 %v1883_v24  ;;  %v921_v22 = vld [vmem:[#allocation4 + $0x8] sm:$0x3] }
 0x44e   :  { %1079 = vmatprep.mubr.bf16.mxu0 %v1820_v3  ;;  %1120 = vmatprep.mubr.bf16.mxu1 %v1820_v3 }
 0x450   :  { %1050 = vmatpush1.bf16.msra.mxu0 %v1886_v25  ;;  %1091 = vmatpush1.bf16.msra.mxu1 %v1893_v27 }
 0x451   :  { %1051 = vmatprep.subr.bf16.mxu0 %v1890_v26  ;;  %1092 = vmatprep.subr.bf16.mxu1 %v1897_v28  ;;  %v922_v26 = vld [vmem:[#allocation4 + $0x20] sm:$0x3] }
 0x454   :  { %1052 = vmatpush1.bf16.msra.mxu0 %v1900_v29  ;;  %1093 = vmatpush1.bf16.msra.mxu1 %v1906_v31 }
 0x455   :  { %1053 = vmatprep.subr.bf16.mxu0 %v1903_v30  ;;  %1094 = vmatprep.subr.bf16.mxu1 %v1909_v32 }
 0x458   :  { %1054 = vmatpush1.bf16.msra.mxu0 %v1912_v33  ;;  %1095 = vmatpush1.bf16.msra.mxu1 %v1918_v35 }
 0x459   :  { %1055 = vmatprep.subr.bf16.mxu0 %v1915_v34  ;;  %1096 = vmatprep.subr.bf16.mxu1 %v1921_v36 }
 0x45c   :  { %1056 = vmatpush1.bf16.msra.mxu0 %v1924_v37  ;;  %1097 = vmatpush1.bf16.msra.mxu1 %v1930_v39 }
 0x45d   :  { %1057 = vmatprep.subr.bf16.mxu0 %v1927_v38  ;;  %1098 = vmatprep.subr.bf16.mxu1 %v1933_v40 }
 0x460   :  { %1058 = vmatpush1.bf16.msra.mxu0 %v1936_v41  ;;  %1099 = vmatpush1.bf16.msra.mxu1 %v1942_v43 }
 0x461   :  { %1059 = vmatprep.subr.bf16.mxu0 %v1939_v42  ;;  %1100 = vmatprep.subr.bf16.mxu1 %v1945_v44 }
 0x464   :  { %1060 = vmatpush1.bf16.msra.mxu0 %v1948_v45  ;;  %1101 = vmatpush1.bf16.msra.mxu1 %v1954_v47 }
 0x465   :  { %1061 = vmatprep.subr.bf16.mxu0 %v1951_v46  ;;  %1102 = vmatprep.subr.bf16.mxu1 %v1957_v48 }
 0x468   :  { %1062 = vmatpush1.bf16.msra.mxu0 %v1960_v49  ;;  %1103 = vmatpush1.bf16.msra.mxu1 %v1964_v51 }
 0x469   :  { %1180 = vmatprep.subr.bf16.mxu0 %v2176_v21  ;;  %1221 = vmatprep.subr.bf16.mxu1 %v1872_v20  ;;  %v923_v20 = vld [vmem:[#allocation4 + $0x28] sm:$0x3] }
 0x50b   :  { %v963_v23 = vpop.f32.mrf.mxu0  ;;  %v1004_v24 = vpop.f32.mrf.mxu1 }
 0x50c   :  { %v1011_v25 = vadd.f32 %v963_v23, %v921_v22  ;;  %v1013_v62 = vadd.f32 %v1004_v24, %v923_v20  ;;  %v2220_v22 = vld [vmem:[#allocation7 + $0x84] ss:$16 sps:$4 sm:$0xff]   ;;  %v2223_v23 = vld [vmem:[#allocation7 + $0x8c] ss:$16 sps:$4 sm:$0xff]   ;;  %v2226_v24 = vld [vmem:[#allocation7 + $0x80] ss:$16 sps:$4 sm:$0xff]  }
 0x50d   :  { %v965_v27 = vpop.f32.mrf.mxu0  ;;  %v1006_v28 = vpop.f32.mrf.mxu1 }
 0x50e   :  { %v1512_v29 = vmul.f32 -1.442695, %v1011_v25  ;;  %v1012_v30 = vadd.f32 %v965_v27, %v922_v26  ;;  %v1014_v58 = vadd.f32 %v1006_v28, %v924_v8  ;;  %v2229_v25 = vld [vmem:[#allocation7 + $0x88] ss:$16 sps:$4 sm:$0xff]   ;;  %v2232_v26 = vld [vmem:[#allocation7 + $0x64] ss:$16 sps:$4 sm:$0xff]  }
 0x50f   :  { %v967_v31 = vpop.f32.mrf.mxu0  ;;  %v1008_v32 = vpop.f32.mrf.mxu1 }
 0x510   :  { %1654 = vpow2.f32 %v1512_v29  ;;  %v1513_v33 = vmul.f32 -1.442695, %v1012_v30  ;;  %v1514_v59 = vmul.f32 -1.442695, %v1014_v58  ;;  %v1045_v29 = vld [vmem:[#allocation4 + $0x38] sm:$0xc] }
 0x511   :  { %v968_v34 = vpop.f32.mrf.mxu0  ;;  %v1009_v35 = vpop.f32.mrf.mxu1 }
 0x512   :  { %1656 = vpow2.f32 %v1513_v33  ;;  %v1044_v33 = vld [vmem:[#allocation4 + $0x28] sm:$0xc] }
 0x513   :  { %1658 = vpow2.f32 %v1514_v59 }
 0x51d   :  { %v1655_v60 = vpop.eup %1654 }
 0x51e   :  { %v1018_v63 = vadd.f32 1.0, %v1655_v60 }
 0x51f   :  { %v1657_v16 = vpop.eup %1656 }
 0x520   :  { %1660 = vrcp.f32 %v1018_v63  ;;  %v1024_v15 = vadd.f32 1.0, %v1657_v16  ;;  %v1659_v1 = vpop.eup %1658 }
 0x521   :  { %1662 = vtanh.f32 %v1013_v62  ;;  %v1031_v0 = vadd.f32 1.0, %v1659_v1 }
 0x522   :  { %1664 = vrcp.f32 %v1024_v15 }
 0x523   :  { %1666 = vrcp.f32 %v1031_v0 }
 0x52d   :  { %v1661_v2 = vpop.eup %1660 }
 0x52e   :  { %v1663_v5 = vpop.eup %1662 }
 0x52f   :  { %v1665_v7 = vpop.eup %1664  ;;  %v1038_v9 = vmul.f32 %v1663_v5, %v1661_v2 }
 0x530   :  { %v1037_v10 = vmul.f32 %v1665_v7, %v1035_v6  ;;  %v1667_v4 = vpop.eup %1666 }
 0x532   :  { %v2181_v11 = vadd.f32 %v1038_v9, %v1037_v10 }
 0x534   :  { %1668 = vtanh.f32 %v2181_v11  ;;  %v1165_v63 = vrot.slane %v2181_v11, 6  ;;  %v1736_v11 = vld [vmem:[#allocation7 + $0x60] ss:$16 sps:$4 sm:$0xff]  }
 0x541   :  { %v1669_v12 = vpop.eup %1668 }
 0x542   :  { %v2184_v13 = vmul.f32 %v1669_v12, %v1667_v4  ;;  %v1737_v4 = vld [vmem:[#allocation7 + $0x68] ss:$16 sps:$4 sm:$0xff]   ;;  %v1738_v12 = vld [vmem:[#allocation7 + $0x44] ss:$16 sps:$4 sm:$0xff]  }
 0x544   :  { %v1046_v19 = vpack.c.bf16 %v2184_v13, %v2184_v13 }
 0x546   :  { %1080 = vmatmul.mubr.bf16.vlgmr.msra.gmra.mxu0 %v1046_v19  ;;  %1121 = vmatmul.mubr.bf16.vlgmr.msra.gmra.mxu1 %v1046_v19  ;;  %v1739_v19 = vld [vmem:[#allocation7 + $0x4c] ss:$16 sps:$4 sm:$0xff]  }
 0x547   :  { %1181 = vmatpush1.bf16.msra.mxu0 %v2188_v14  ;;  %1222 = vmatpush1.bf16.msra.mxu1 %v2191_v17 }
 0x548   :  { %1182 = vmatprep.subr.bf16.mxu0 %v2194_v18  ;;  %1223 = vmatprep.subr.bf16.mxu1 %v2197_v61 }
 0x549   :  { %1212 = vmatprep.mubr.bf16.mxu0 %v1820_v3  ;;  %1253 = vmatprep.mubr.bf16.mxu1 %v1820_v3 }
 0x54b   :  { %1183 = vmatpush1.bf16.msra.mxu0 %v2202_v50  ;;  %1224 = vmatpush1.bf16.msra.mxu1 %v2205_v52 }
 0x54c   :  { %1184 = vmatprep.subr.bf16.mxu0 %v2208_v54  ;;  %1225 = vmatprep.subr.bf16.mxu1 %v2211_v55 }
 0x54f   :  { %1185 = vmatpush1.bf16.msra.mxu0 %v2214_v56  ;;  %1226 = vmatpush1.bf16.msra.mxu1 %v2217_v53 }
 0x550   :  { %1186 = vmatprep.subr.bf16.mxu0 %v2220_v22  ;;  %1227 = vmatprep.subr.bf16.mxu1 %v2223_v23 }
 0x553   :  { %1187 = vmatpush1.bf16.msra.mxu0 %v2226_v24  ;;  %1228 = vmatpush1.bf16.msra.mxu1 %v2229_v25 }
 0x554   :  { %1188 = vmatprep.subr.bf16.mxu0 %v2232_v26  ;;  %1229 = vmatprep.subr.bf16.mxu1 %v1921_v36  ;;  %v1734_v36 = vld [vmem:[#allocation7 + $0xec] ss:$16 sps:$4 sm:$0xff]  }
 0x557   :  { %1189 = vmatpush1.bf16.msra.mxu0 %v1924_v37  ;;  %1230 = vmatpush1.bf16.msra.mxu1 %v1930_v39 }
 0x558   :  { %1190 = vmatprep.subr.bf16.mxu0 %v1927_v38  ;;  %1231 = vmatprep.subr.bf16.mxu1 %v1933_v40  ;;  %v1042_v40 = vld [vmem:[#allocation4 + $0x8] sm:$0xc] }
 0x55b   :  { %1191 = vmatpush1.bf16.msra.mxu0 %v1936_v41  ;;  %1232 = vmatpush1.bf16.msra.mxu1 %v1942_v43 }
 0x55c   :  { %1192 = vmatprep.subr.bf16.mxu0 %v1939_v42  ;;  %1233 = vmatprep.subr.bf16.mxu1 %v1945_v44 }
 0x55f   :  { %1193 = vmatpush1.bf16.msra.mxu0 %v1948_v45  ;;  %1234 = vmatpush1.bf16.msra.mxu1 %v1954_v47  ;;  %v1043_v45 = vld [vmem:[#allocation4 + $0x20] sm:$0xc] }
 0x560   :  { %1194 = vmatprep.subr.bf16.mxu0 %v1951_v46  ;;  %1235 = vmatprep.subr.bf16.mxu1 %v1957_v48 }
 0x563   :  { %1195 = vmatpush1.bf16.msra.mxu0 %v1960_v49  ;;  %1236 = vmatpush1.bf16.msra.mxu1 %v1964_v51 }
 0x564   :  { %1313 = vmatprep.subr.bf16.mxu0 %v2176_v21  ;;  %1354 = vmatprep.subr.bf16.mxu1 %v1734_v36 }
 0x606   :  { %v1081_v37 = vpop.f32.mrf.mxu0  ;;  %v1122_v38 = vpop.f32.mrf.mxu1 }
 0x607   :  { %v1133_v39 = vrot.slane %v1081_v37, 6  ;;  %v1135_v31 = vrot.slane %v1122_v38, 6 }
 0x608   :  { %v1083_v41 = vpop.f32.mrf.mxu0  ;;  %v1124_v42 = vpop.f32.mrf.mxu1 }
 0x609   :  { %v1141_v43 = vadd.f32 %v1133_v39, %v1042_v40  ;;  %v1134_v44 = vrot.slane %v1083_v41, 6  ;;  %v1136_v21 = vrot.slane %v1124_v42, 6  ;;  %v1143_v35 = vadd.f32 %v1135_v31, %v1044_v33  ;;  %v1173_v39 = vld [vmem:[#allocation4 + $0x20] sm:$0x30] }
 0x60a   :  { %v1085_v46 = vpop.f32.mrf.mxu0  ;;  %v1126_v47 = vpop.f32.mrf.mxu1 }
 0x60b   :  { %v1515_v48 = vmul.f32 -1.442695, %v1141_v43  ;;  %v1142_v27 = vadd.f32 %v1134_v44, %v1043_v45  ;;  %v1144_v30 = vadd.f32 %v1136_v21, %v1045_v29 }
 0x60c   :  { %v1086_v49 = vpop.f32.mrf.mxu0  ;;  %v1127_v28 = vpop.f32.mrf.mxu1 }
 0x60d   :  { %1670 = vpow2.f32 %v1515_v48  ;;  %v1516_v51 = vmul.f32 -1.442695, %v1142_v27  ;;  %v1517_v32 = vmul.f32 -1.442695, %v1144_v30  ;;  %v1175_v48 = vld [vmem:[#allocation4 + $0x38] sm:$0x30] }
 0x60f   :  { %1672 = vpow2.f32 %v1516_v51  ;;  %v1174_v51 = vld [vmem:[#allocation4 + $0x28] sm:$0x30] }
 0x610   :  { %1674 = vpow2.f32 %v1517_v32 }
 0x61a   :  { %v1671_v34 = vpop.eup %1670 }
 0x61b   :  { %v1148_v8 = vadd.f32 1.0, %v1671_v34 }
 0x61c   :  { %v1673_v58 = vpop.eup %1672 }
 0x61d   :  { %1676 = vrcp.f32 %v1148_v8  ;;  %v1154_v59 = vadd.f32 1.0, %v1673_v58  ;;  %v1675_v20 = vpop.eup %1674 }
 0x61e   :  { %1678 = vtanh.f32 %v1143_v35  ;;  %v1161_v15 = vadd.f32 1.0, %v1675_v20 }
 0x61f   :  { %1680 = vrcp.f32 %v1154_v59 }
 0x620   :  { %1682 = vrcp.f32 %v1161_v15 }
 0x62a   :  { %v1677_v60 = vpop.eup %1676 }
 0x62b   :  { %v1679_v62 = vpop.eup %1678 }
 0x62c   :  { %v1681_v16 = vpop.eup %1680  ;;  %v1168_v1 = vmul.f32 %v1679_v62, %v1677_v60 }
 0x62d   :  { %v1167_v2 = vmul.f32 %v1681_v16, %v1165_v63  ;;  %v1683_v6 = vpop.eup %1682 }
 0x62f   :  { %v2252_v5 = vadd.f32 %v1168_v1, %v1167_v2 }
 0x631   :  { %1684 = vtanh.f32 %v2252_v5  ;;  %v1298_v8 = vrot.slane %v2252_v5, 6 }
 0x63e   :  { %v1685_v7 = vpop.eup %1684 }
 0x63f   :  { %v2255_v0 = vmul.f32 %v1685_v7, %v1683_v6 }
 0x641   :  { %v1176_v9 = vpack.c.bf16 %v2255_v0, %v2255_v0  ;;  %v1443_v1 = vsel %vm109_vm0, %v2184_v13, %v2255_v0 }
 0x643   :  { %v1178_v10 = vrot.slane %v1176_v9, 1 }
 0x645   :  { %1213 = vmatmul.mubr.bf16.vlgmr.msra.gmra.mxu0 %v1178_v10  ;;  %1254 = vmatmul.mubr.bf16.vlgmr.msra.gmra.mxu1 %v1178_v10 }
 0x646   :  { %1314 = vmatpush1.bf16.msra.mxu0 %v2188_v14  ;;  %1355 = vmatpush1.bf16.msra.mxu1 %v2191_v17  ;;  %v1740_v14 = vld [vmem:[#allocation7 + $0x40] ss:$16 sps:$4 sm:$0xff]   ;;  %v1741_v17 = vld [vmem:[#allocation7 + $0x48] ss:$16 sps:$4 sm:$0xff]  }
 0x647   :  { %1315 = vmatprep.subr.bf16.mxu0 %v2194_v18  ;;  %1356 = vmatprep.subr.bf16.mxu1 %v2197_v61  ;;  %v1742_v18 = vld [vmem:[#allocation7 + $0x24] ss:$16 sps:$4 sm:$0xff]   ;;  %v1743_v61 = vld [vmem:[#allocation7 + $0x2c] ss:$16 sps:$4 sm:$0xff]  }
 0x648   :  { %1345 = vmatprep.mubr.bf16.mxu0 %v1820_v3  ;;  %1386 = vmatprep.mubr.bf16.mxu1 %v1820_v3  ;;  %v1735_v3 = vld [vmem:[#allocation7 + $0x6c] ss:$16 sps:$4 sm:$0xff]  }
 0x64a   :  { %1316 = vmatpush1.bf16.msra.mxu0 %v2202_v50  ;;  %1357 = vmatpush1.bf16.msra.mxu1 %v2205_v52  ;;  %v1744_v50 = vld [vmem:[#allocation7 + $0x20] ss:$16 sps:$4 sm:$0xff]   ;;  %v1745_v52 = vld [vmem:[#allocation7 + $0x28] ss:$16 sps:$4 sm:$0xff]  }
 0x64b   :  { %1317 = vmatprep.subr.bf16.mxu0 %v2208_v54  ;;  %1358 = vmatprep.subr.bf16.mxu1 %v2211_v55  ;;  %v1746_v54 = vld [vmem:[#allocation7 + $0x4] ss:$16 sps:$4 sm:$0xff]   ;;  %v1747_v55 = vld [vmem:[#allocation7 + $0xc] ss:$16 sps:$4 sm:$0xff]  }
 0x64e   :  { %1318 = vmatpush1.bf16.msra.mxu0 %v2214_v56  ;;  %1359 = vmatpush1.bf16.msra.mxu1 %v2217_v53  ;;  %v1748_v56 = vld [vmem:[#allocation7] ss:$16 sps:$4 sm:$0xff]   ;;  %v1749_v53 = vld [vmem:[#allocation7 + $0x8] ss:$16 sps:$4 sm:$0xff]  }
 0x64f   :  { %1319 = vmatprep.subr.bf16.mxu0 %v2220_v22  ;;  %1360 = vmatprep.subr.bf16.mxu1 %v2223_v23 }
 0x652   :  { %1320 = vmatpush1.bf16.msra.mxu0 %v2226_v24  ;;  %1361 = vmatpush1.bf16.msra.mxu1 %v2229_v25  ;;  %v1172_v25 = vld [vmem:[#allocation4 + $0x8] sm:$0x30] }
 0x653   :  { %1321 = vmatprep.subr.bf16.mxu0 %v2232_v26  ;;  %1362 = vmatprep.subr.bf16.mxu1 %v1735_v3  ;;  %v1305_v3 = vld [vmem:[#allocation4 + $0x8] sm:$0xc0] }
 0x656   :  { %1322 = vmatpush1.bf16.msra.mxu0 %v1736_v11  ;;  %1363 = vmatpush1.bf16.msra.mxu1 %v1737_v4 }
 0x657   :  { %1323 = vmatprep.subr.bf16.mxu0 %v1738_v12  ;;  %1364 = vmatprep.subr.bf16.mxu1 %v1739_v19 }
 0x65a   :  { %1324 = vmatpush1.bf16.msra.mxu0 %v1740_v14  ;;  %1365 = vmatpush1.bf16.msra.mxu1 %v1741_v17  ;;  %v1306_v14 = vld [vmem:[#allocation4 + $0x20] sm:$0xc0] }
 0x65b   :  { %1325 = vmatprep.subr.bf16.mxu0 %v1742_v18  ;;  %1366 = vmatprep.subr.bf16.mxu1 %v1743_v61 }
 0x65e   :  { %1326 = vmatpush1.bf16.msra.mxu0 %v1744_v50  ;;  %1367 = vmatpush1.bf16.msra.mxu1 %v1745_v52 }
 0x65f   :  { %1327 = vmatprep.subr.bf16.mxu0 %v1746_v54  ;;  %1368 = vmatprep.subr.bf16.mxu1 %v1747_v55  ;;  %v1308_v55 = vld [vmem:[#allocation4 + $0x38] sm:$0xc0] }
 0x662   :  { %1328 = vmatpush1.bf16.msra.mxu0 %v1748_v56  ;;  %1369 = vmatpush1.bf16.msra.mxu1 %v1749_v53 }
 0x705   :  { %v1214_v22 = vpop.f32.mrf.mxu0  ;;  %v1255_v23 = vpop.f32.mrf.mxu1 }
 0x706   :  { %v1266_v24 = vrot.slane %v1214_v22, 4  ;;  %v1268_v49 = vrot.slane %v1255_v23, 4  ;;  %v1307_v23 = vld [vmem:[#allocation4 + $0x28] sm:$0xc0] }
 0x707   :  { %v1216_v26 = vpop.f32.mrf.mxu0  ;;  %v1257_v36 = vpop.f32.mrf.mxu1 }
 0x708   :  { %v1274_v37 = vadd.f32 %v1266_v24, %v1172_v25  ;;  %v1267_v38 = vrot.slane %v1216_v26, 4  ;;  %v1269_v47 = vrot.slane %v1257_v36, 4  ;;  %v1276_v29 = vadd.f32 %v1268_v49, %v1174_v51 }
 0x709   :  { %v1218_v40 = vpop.f32.mrf.mxu0  ;;  %v1259_v41 = vpop.f32.mrf.mxu1 }
 0x70a   :  { %v1518_v42 = vmul.f32 -1.442695, %v1274_v37  ;;  %v1275_v43 = vadd.f32 %v1267_v38, %v1173_v39  ;;  %v1277_v27 = vadd.f32 %v1269_v47, %v1175_v48 }
 0x70b   :  { %v1219_v44 = vpop.f32.mrf.mxu0  ;;  %v1260_v45 = vpop.f32.mrf.mxu1 }
 0x70c   :  { %1686 = vpow2.f32 %v1518_v42  ;;  %v1519_v46 = vmul.f32 -1.442695, %v1275_v43  ;;  %v1520_v28 = vmul.f32 -1.442695, %v1277_v27 }
 0x70e   :  { %1688 = vpow2.f32 %v1519_v46 }
 0x70f   :  { %1690 = vpow2.f32 %v1520_v28 }
 0x719   :  { %v1687_v21 = vpop.eup %1686 }
 0x71a   :  { %v1281_v30 = vadd.f32 1.0, %v1687_v21 }
 0x71b   :  { %v1689_v31 = vpop.eup %1688 }
 0x71c   :  { %1692 = vrcp.f32 %v1281_v30  ;;  %v1287_v32 = vadd.f32 1.0, %v1689_v31  ;;  %v1691_v33 = vpop.eup %1690 }
 0x71d   :  { %1694 = vtanh.f32 %v1276_v29  ;;  %v1294_v59 = vadd.f32 1.0, %v1691_v33 }
 0x71e   :  { %1696 = vrcp.f32 %v1287_v32 }
 0x71f   :  { %1698 = vrcp.f32 %v1294_v59 }
 0x729   :  { %v1693_v34 = vpop.eup %1692 }
 0x72a   :  { %v1695_v35 = vpop.eup %1694 }
 0x72b   :  { %v1697_v58 = vpop.eup %1696  ;;  %v1301_v20 = vmul.f32 %v1695_v35, %v1693_v34 }
 0x72c   :  { %v1300_v60 = vmul.f32 %v1697_v58, %v1298_v8  ;;  %v1699_v63 = vpop.eup %1698 }
 0x72e   :  { %v1302_v62 = vadd.f32 %v1301_v20, %v1300_v60 }
 0x730   :  { %1700 = vtanh.f32 %v1302_v62  ;;  %v1431_v41 = vrot.slane %v1302_v62, 6 }
 0x73d   :  { %v1701_v16 = vpop.eup %1700 }
 0x73e   :  { %v1304_v15 = vmul.f32 %v1701_v16, %v1699_v63 }
 0x740   :  { %v1309_v2 = vpack.c.bf16 %v1304_v15, %v1304_v15  ;;  %v1444_v6 = vsel %vm1439_vm2, %v1443_v1, %v1304_v15 }
 0x742   :  { %v1311_v7 = vrot.slane %v1309_v2, 2 }
 0x744   :  { %1346 = vmatmul.mubr.bf16.vlgmr.msra.gmra.mxu0 %v1311_v7  ;;  %1387 = vmatmul.mubr.bf16.vlgmr.msra.gmra.mxu1 %v1311_v7 }
 0x804   :  { %v1347_v5 = vpop.f32.mrf.mxu0  ;;  %v1388_v9 = vpop.f32.mrf.mxu1 }
 0x805   :  { %v1399_v10 = vrot.slane %v1347_v5, 2  ;;  %v1401_v53 = vrot.slane %v1388_v9, 2 }
 0x806   :  { %v1349_v11 = vpop.f32.mrf.mxu0  ;;  %v1390_v4 = vpop.f32.mrf.mxu1 }
 0x807   :  { %v1407_v12 = vadd.f32 %v1399_v10, %v1305_v3  ;;  %v1400_v19 = vrot.slane %v1349_v11, 2  ;;  %v1402_v54 = vrot.slane %v1390_v4, 2  ;;  %v1409_v25 = vadd.f32 %v1401_v53, %v1307_v23 }
 0x808   :  { %v1351_v17 = vpop.f32.mrf.mxu0  ;;  %v1392_v18 = vpop.f32.mrf.mxu1 }
 0x809   :  { %v1521_v61 = vmul.f32 -1.442695, %v1407_v12  ;;  %v1408_v50 = vadd.f32 %v1400_v19, %v1306_v14  ;;  %v1410_v56 = vadd.f32 %v1402_v54, %v1308_v55 }
 0x80a   :  { %v1352_v13 = vpop.f32.mrf.mxu0  ;;  %v1393_v0 = vpop.f32.mrf.mxu1 }
 0x80b   :  { %1702 = vpow2.f32 %v1521_v61  ;;  %v1522_v52 = vmul.f32 -1.442695, %v1408_v50  ;;  %v1523_v22 = vmul.f32 -1.442695, %v1410_v56 }
 0x80d   :  { %1704 = vpow2.f32 %v1522_v52 }
 0x80e   :  { %1706 = vpow2.f32 %v1523_v22 }
 0x818   :  { %v1703_v24 = vpop.eup %1702 }
 0x819   :  { %v1414_v26 = vadd.f32 1.0, %v1703_v24 }
 0x81a   :  { %v1705_v36 = vpop.eup %1704 }
 0x81b   :  { %1708 = vrcp.f32 %v1414_v26  ;;  %v1420_v37 = vadd.f32 1.0, %v1705_v36  ;;  %v1707_v38 = vpop.eup %1706 }
 0x81c   :  { %1710 = vtanh.f32 %v1409_v25  ;;  %v1427_v43 = vadd.f32 1.0, %v1707_v38 }
 0x81d   :  { %1712 = vrcp.f32 %v1420_v37 }
 0x81e   :  { %1714 = vrcp.f32 %v1427_v43 }
 0x828   :  { %v1709_v39 = vpop.eup %1708 }
 0x829   :  { %v1711_v40 = vpop.eup %1710 }
 0x82a   :  { %v1713_v42 = vpop.eup %1712  ;;  %v1434_v44 = vmul.f32 %v1711_v40, %v1709_v39 }
 0x82b   :  { %v1433_v45 = vmul.f32 %v1713_v42, %v1431_v41  ;;  %v1715_v47 = vpop.eup %1714 }
 0x82d   :  { %v1435_v46 = vadd.f32 %v1434_v44, %v1433_v45 }
 0x82f   :  { %1716 = vtanh.f32 %v1435_v46  ;;  %1457 = vst [vmem:[#allocation3 - $0x6] sm:$0xc0] %v1435_v46 }
 0x83c   :  { %v1717_v48 = vpop.eup %1716 }
 0x83d   :  { %v1437_v27 = vmul.f32 %v1717_v48, %v1715_v47 }
 0x83f   :  { %v1445_v49 = vsel %vm1441_vm3, %v1444_v6, %v1437_v27  ;;  %1456 = vst [vmem:[#allocation2 - $0x6] sm:$0xc0] %v1437_v27 }
 0x840   :  { %v1531_v28 = vpack.c.bf16 %v1445_v49, %v2142_v57 }
 0x842   :  { %1532 = vst [vmem:[%s2290_s4] sm:$0xff] %v1531_v28  }
 0x843   :  { %1462 = vsyncpa [#allocation6], 1 }
 0x844   :  { %1463 = vsyncpa [#allocation8], 1 }

// kernel: lstm_model_forward.4
= control target key start
LH: loop header
LB: loop body
LE: loop exit
PB: predicated region body
PF: predicated region fallthrough
CT: control target
= control target key end

     0   :  { %9 = vsyncpa [#allocation6], 0  ;;  %s1984_s15 = smov [#allocation5]   ;;  %s2532_s0 = inlined_call_operand.vmem [shape: bf16[16,128], index: 0, kind: input, shape index: {}]   ;;  %s2533_s1 = inlined_call_operand.vmem [shape: bf16[128,512], index: 1, kind: input, shape index: {}]   ;;  %s2534_s2 = inlined_call_operand.hbm [shape: bf16[128,512], index: 2, kind: input, shape index: {}]   ;;  %s2535_s3 = inlined_call_operand.vmem [shape: f32[1,512], index: 3, kind: input, shape index: {}]   ;;  %s2536_s4 = inlined_call_operand.vmem [shape: bf16[16,128], index: 4, kind: output, shape index: {}]  }
   0x1   :  { %s19_s16 = sshll.u32 %s1984_s15, 4  ;;  %s20_s16 = int_to_ptr.vmem [resolvable:$true] %s19_s16 }
   0x2   :  { %s1970_s17 = scalar_lea.vmem %s20_s16, 4096  ;;  %p1975_p1 = scmp.lt.s32.totalorder %s20_s16, %s20_s16 }
   0x3   :  { %p1971_p0 = scmp.ne.s32.totalorder %s20_s16, %s1970_s17  ;;  %p1976_p2 = scmp.lt.s32.totalorder %s1970_s17, %s1970_s17 }
   0x5   :  { %p1977_p3 = por %p1976_p2, %p1975_p1 }
   0x7   :  { %p1978_p4 = pnand %p1977_p3, %p1971_p0 }
   0x9   :  { %1981 = shalt.err (!%p1978_p4)
}
   0xa   :  { %s1985_s18 = smov 256   ;;  %s1986_s19 = smov 16  }
   0xb   :  { %25 = dma.hbm_to_vmem [thread:$0]  %s2534_s2, 4096, %s20_s16, [#allocation6], %s1985_s18, %s1985_s18, %s1986_s19  }
   0xc   :  { %1982 = dma.done.wait [#allocation6], 4096  }
   0xd   :  { %1983 = vsyncadd [#allocation6], 4294963200  ;;  %v1987_v0 = vmov 0   ;;  %v1988_v1 = vmov 0.0   ;;  %v1705_v2 = vld [vmem:[%s2533_s1 + $0xe4] ss:$16 sps:$4 sm:$0xff]  }
   0xe   :  { %292 = vmatprep.mubr.bf16.mxu0 %v1987_v0  ;;  %335 = vmatprep.mubr.bf16.mxu1 %v1987_v0  ;;  %36 = vst [vmem:[#allocation2] sm:$0x3] %v1988_v1  ;;  %37 = vst [vmem:[#allocation3] sm:$0x3] %v1988_v1  ;;  %v1707_v3 = vld [vmem:[%s2533_s1 + $0xec] ss:$16 sps:$4 sm:$0xff]  }
   0xf   :  { %260 = vmatprep.subr.bf16.mxu0 %v1705_v2  ;;  %v1709_v4 = vld [vmem:[%s2533_s1 + $0xe0] ss:$16 sps:$4 sm:$0xff]   ;;  %v1710_v5 = vld [vmem:[%s2533_s1 + $0xe8] ss:$16 sps:$4 sm:$0xff]   ;;  %303 = vmatprep.subr.bf16.mxu1 %v1707_v3  ;;  %v1711_v6 = vld [vmem:[%s2533_s1 + $0xc4] ss:$16 sps:$4 sm:$0xff]  }
  0x10   :  { %261 = vmatpush1.bf16.msra.mxu0 %v1709_v4  ;;  %304 = vmatpush1.bf16.msra.mxu1 %v1710_v5  ;;  %v1713_v7 = vld [vmem:[%s2533_s1 + $0xcc] ss:$16 sps:$4 sm:$0xff]   ;;  %v1715_v8 = vld [vmem:[%s2533_s1 + $0xc0] ss:$16 sps:$4 sm:$0xff]   ;;  %v1716_v9 = vld [vmem:[%s2533_s1 + $0xc8] ss:$16 sps:$4 sm:$0xff]  }
  0x11   :  { %262 = vmatprep.subr.bf16.mxu0 %v1711_v6  ;;  %305 = vmatprep.subr.bf16.mxu1 %v1713_v7  ;;  %v1717_v10 = vld [vmem:[%s2533_s1 + $0xa4] ss:$16 sps:$4 sm:$0xff]   ;;  %v1719_v11 = vld [vmem:[%s2533_s1 + $0xac] ss:$16 sps:$4 sm:$0xff]   ;;  %v1721_v12 = vld [vmem:[%s2533_s1 + $0xa0] ss:$16 sps:$4 sm:$0xff]   ;;  %v74_v6 = vlaneseq }
  0x12   :  { %v1722_v13 = vld [vmem:[%s2533_s1 + $0xa8] ss:$16 sps:$4 sm:$0xff]   ;;  %v1723_v14 = vld [vmem:[%s2533_s1 + $0x84] ss:$16 sps:$4 sm:$0xff]   ;;  %v1725_v15 = vld [vmem:[%s2533_s1 + $0x8c] ss:$16 sps:$4 sm:$0xff]  }
  0x13   :  { %v1727_v16 = vld [vmem:[%s2533_s1 + $0x80] ss:$16 sps:$4 sm:$0xff]   ;;  %v1728_v17 = vld [vmem:[%s2533_s1 + $0x88] ss:$16 sps:$4 sm:$0xff]   ;;  %v1729_v18 = vld [vmem:[%s2533_s1 + $0x64] ss:$16 sps:$4 sm:$0xff]  }
  0x14   :  { %263 = vmatpush1.bf16.msra.mxu0 %v1715_v8  ;;  %306 = vmatpush1.bf16.msra.mxu1 %v1716_v9  ;;  %v1731_v19 = vld [vmem:[%s2533_s1 + $0x6c] ss:$16 sps:$4 sm:$0xff]   ;;  %v1733_v20 = vld [vmem:[%s2533_s1 + $0x60] ss:$16 sps:$4 sm:$0xff]   ;;  %v1734_v21 = vld [vmem:[%s2533_s1 + $0x68] ss:$16 sps:$4 sm:$0xff]  }
  0x15   :  { %264 = vmatprep.subr.bf16.mxu0 %v1717_v10  ;;  %307 = vmatprep.subr.bf16.mxu1 %v1719_v11  ;;  %v1735_v22 = vld [vmem:[%s2533_s1 + $0x44] ss:$16 sps:$4 sm:$0xff]   ;;  %v1737_v23 = vld [vmem:[%s2533_s1 + $0x4c] ss:$16 sps:$4 sm:$0xff]   ;;  %v1739_v24 = vld [vmem:[%s2533_s1 + $0x40] ss:$16 sps:$4 sm:$0xff]  }
  0x16   :  { %v1740_v25 = vld [vmem:[%s2533_s1 + $0x48] ss:$16 sps:$4 sm:$0xff]   ;;  %v1741_v26 = vld [vmem:[%s2533_s1 + $0x24] ss:$16 sps:$4 sm:$0xff]   ;;  %v1743_v27 = vld [vmem:[%s2533_s1 + $0x2c] ss:$16 sps:$4 sm:$0xff]  }
  0x17   :  { %v1745_v28 = vld [vmem:[%s2533_s1 + $0x20] ss:$16 sps:$4 sm:$0xff]   ;;  %v1746_v29 = vld [vmem:[%s2533_s1 + $0x28] ss:$16 sps:$4 sm:$0xff]   ;;  %v1747_v30 = vld [vmem:[%s2533_s1 + $0x4] ss:$16 sps:$4 sm:$0xff]  }
  0x18   :  { %265 = vmatpush1.bf16.msra.mxu0 %v1721_v12  ;;  %308 = vmatpush1.bf16.msra.mxu1 %v1722_v13  ;;  %v1749_v31 = vld [vmem:[%s2533_s1 + $0xc] ss:$16 sps:$4 sm:$0xff]   ;;  %v1751_v32 = vld [vmem:[%s2533_s1] ss:$16 sps:$4 sm:$0xff]   ;;  %v1752_v33 = vld [vmem:[%s2533_s1 + $0x8] ss:$16 sps:$4 sm:$0xff]  }
  0x19   :  { %266 = vmatprep.subr.bf16.mxu0 %v1723_v14  ;;  %309 = vmatprep.subr.bf16.mxu1 %v1725_v15  ;;  %v2115_v34 = vld [vmem:[#allocation5 + $0xe4] ss:$16 sps:$4 sm:$0xff]   ;;  %v2117_v35 = vld [vmem:[#allocation5 + $0xec] ss:$16 sps:$4 sm:$0xff]   ;;  %v2122_v37 = vld [vmem:[#allocation5 + $0xe0] ss:$16 sps:$4 sm:$0xff]  }
  0x1a   :  { %v1753_v36 = vld [vmem:[%s2532_s0] sm:$0xff]   ;;  %v2124_v38 = vld [vmem:[#allocation5 + $0xe8] ss:$16 sps:$4 sm:$0xff]   ;;  %v2126_v39 = vld [vmem:[#allocation5 + $0xc4] ss:$16 sps:$4 sm:$0xff]   ;;  %v75_v7 = vshrl.u32 %v74_v6, 7 }
  0x1b   :  { %v2130_v40 = vld [vmem:[#allocation5 + $0xcc] ss:$16 sps:$4 sm:$0xff]   ;;  %v2132_v41 = vld [vmem:[#allocation5 + $0xc0] ss:$16 sps:$4 sm:$0xff]   ;;  %v2136_v42 = vld [vmem:[#allocation5 + $0xc8] ss:$16 sps:$4 sm:$0xff]  }
  0x1c   :  { %267 = vmatpush1.bf16.msra.mxu0 %v1727_v16  ;;  %310 = vmatpush1.bf16.msra.mxu1 %v1728_v17  ;;  %v2140_v43 = vld [vmem:[#allocation5 + $0xa4] ss:$16 sps:$4 sm:$0xff]   ;;  %v2142_v44 = vld [vmem:[#allocation5 + $0xac] ss:$16 sps:$4 sm:$0xff]   ;;  %v2148_v45 = vld [vmem:[#allocation5 + $0xa0] ss:$16 sps:$4 sm:$0xff]  }
  0x1d   :  { %268 = vmatprep.subr.bf16.mxu0 %v1729_v18  ;;  %311 = vmatprep.subr.bf16.mxu1 %v1731_v19  ;;  %v2150_v46 = vld [vmem:[#allocation5 + $0xa8] ss:$16 sps:$4 sm:$0xff]   ;;  %v2152_v47 = vld [vmem:[#allocation5 + $0x84] ss:$16 sps:$4 sm:$0xff]   ;;  %v2156_v48 = vld [vmem:[#allocation5 + $0x8c] ss:$16 sps:$4 sm:$0xff]  }
  0x1e   :  { %v2160_v49 = vld [vmem:[#allocation5 + $0x80] ss:$16 sps:$4 sm:$0xff]   ;;  %v2162_v50 = vld [vmem:[#allocation5 + $0x88] ss:$16 sps:$4 sm:$0xff]   ;;  %v2166_v51 = vld [vmem:[#allocation5 + $0x64] ss:$16 sps:$4 sm:$0xff]  }
  0x1f   :  { %v2168_v52 = vld [vmem:[#allocation5 + $0x6c] ss:$16 sps:$4 sm:$0xff]   ;;  %v2172_v53 = vld [vmem:[#allocation5 + $0x60] ss:$16 sps:$4 sm:$0xff]   ;;  %v2174_v54 = vld [vmem:[#allocation5 + $0x68] ss:$16 sps:$4 sm:$0xff]  }
  0x20   :  { %269 = vmatpush1.bf16.msra.mxu0 %v1733_v20  ;;  %312 = vmatpush1.bf16.msra.mxu1 %v1734_v21  ;;  %v2178_v55 = vld [vmem:[#allocation5 + $0x44] ss:$16 sps:$4 sm:$0xff]   ;;  %v2180_v56 = vld [vmem:[#allocation5 + $0x4c] ss:$16 sps:$4 sm:$0xff]   ;;  %v2184_v57 = vld [vmem:[#allocation5 + $0x40] ss:$16 sps:$4 sm:$0xff]  }
  0x21   :  { %270 = vmatprep.subr.bf16.mxu0 %v1735_v22  ;;  %313 = vmatprep.subr.bf16.mxu1 %v1737_v23  ;;  %v2186_v58 = vld [vmem:[#allocation5 + $0x48] ss:$16 sps:$4 sm:$0xff]   ;;  %v2190_v59 = vld [vmem:[#allocation5 + $0x24] ss:$16 sps:$4 sm:$0xff]   ;;  %v2192_v60 = vld [vmem:[#allocation5 + $0x2c] ss:$16 sps:$4 sm:$0xff]  }
  0x22   :  { %v2196_v61 = vld [vmem:[#allocation5 + $0x20] ss:$16 sps:$4 sm:$0xff]   ;;  %v2198_v62 = vld [vmem:[#allocation5 + $0x28] ss:$16 sps:$4 sm:$0xff]   ;;  %v2202_v63 = vld [vmem:[#allocation5 + $0x4] ss:$16 sps:$4 sm:$0xff]  }
  0x23   :  { %v2204_v1 = vld [vmem:[#allocation5 + $0xc] ss:$16 sps:$4 sm:$0xff]   ;;  %v2208_v2 = vld [vmem:[#allocation5] ss:$16 sps:$4 sm:$0xff]   ;;  %v2210_v3 = vld [vmem:[#allocation5 + $0x8] ss:$16 sps:$4 sm:$0xff]  }
  0x24   :  { %271 = vmatpush1.bf16.msra.mxu0 %v1739_v24  ;;  %314 = vmatpush1.bf16.msra.mxu1 %v1740_v25  ;;  %v354_v4 = vld [vmem:[#allocation2] sm:$0x3]  ;;  %v76_v8 = vsub.s32 0, %v75_v7  ;;  %v84_v9 = vsub.s32 2, %v75_v7  ;;  %v80_v11 = vsub.s32 1, %v75_v7  ;;  %v88_v12 = vsub.s32 3, %v75_v7 }
  0x25   :  { %272 = vmatprep.subr.bf16.mxu0 %v1741_v26  ;;  %315 = vmatprep.subr.bf16.mxu1 %v1743_v27  ;;  %v360_v5 = vpack.c.bf16 %v354_v4, %v354_v4  ;;  %v72_v10 = vld [vmem:[%s2535_s3] sm:$0xf]  ;;  %vm1576_vm0 = vcmask 1041408   ;;  %vm1578_vm1 = vcmask 1043456   ;;  %vm1580_vm2 = vcmask 1045504  }
  0x26   :  { %v77_v13 = vrot.slane %v72_v10, %v76_v8  ;;  %v85_v14 = vrot.slane %v72_v10, %v84_v9  ;;  %v81_v15 = vrot.slane %v72_v10, %v80_v11  ;;  %v89_v16 = vrot.slane %v72_v10, %v88_v12 }
  0x28   :  { %273 = vmatpush1.bf16.msra.mxu0 %v1745_v28  ;;  %316 = vmatpush1.bf16.msra.mxu1 %v1746_v29 }
  0x29   :  { %274 = vmatprep.subr.bf16.mxu0 %v1747_v30  ;;  %317 = vmatprep.subr.bf16.mxu1 %v1749_v31 }
  0x2c   :  { %275 = vmatpush1.bf16.msra.mxu0 %v1751_v32  ;;  %318 = vmatpush1.bf16.msra.mxu1 %v1752_v33 }
  0x2d   :  { %553 = vmatprep.subr.bf16.mxu0 %v2115_v34  ;;  %594 = vmatprep.subr.bf16.mxu1 %v2117_v35 }
  0x2f   :  { %293 = vmatmul.mubr.bf16.vlgmr.msra.gmra.mxu0 %v1753_v36  ;;  %336 = vmatmul.mubr.bf16.vlgmr.msra.gmra.mxu1 %v1753_v36 }
  0x30   :  { %554 = vmatpush1.bf16.msra.mxu0 %v2122_v37  ;;  %595 = vmatpush1.bf16.msra.mxu1 %v2124_v38 }
  0x31   :  { %555 = vmatprep.subr.bf16.mxu0 %v2126_v39  ;;  %596 = vmatprep.subr.bf16.mxu1 %v2130_v40 }
  0x32   :  { %585 = vmatprep.mubr.bf16.mxu0 %v1987_v0  ;;  %626 = vmatprep.mubr.bf16.mxu1 %v1987_v0 }
  0x34   :  { %556 = vmatpush1.bf16.msra.mxu0 %v2132_v41  ;;  %597 = vmatpush1.bf16.msra.mxu1 %v2136_v42 }
  0x35   :  { %557 = vmatprep.subr.bf16.mxu0 %v2140_v43  ;;  %598 = vmatprep.subr.bf16.mxu1 %v2142_v44 }
  0x38   :  { %558 = vmatpush1.bf16.msra.mxu0 %v2148_v45  ;;  %599 = vmatpush1.bf16.msra.mxu1 %v2150_v46 }
  0x39   :  { %559 = vmatprep.subr.bf16.mxu0 %v2152_v47  ;;  %600 = vmatprep.subr.bf16.mxu1 %v2156_v48 }
  0x3c   :  { %560 = vmatpush1.bf16.msra.mxu0 %v2160_v49  ;;  %601 = vmatpush1.bf16.msra.mxu1 %v2162_v50 }
  0x3d   :  { %561 = vmatprep.subr.bf16.mxu0 %v2166_v51  ;;  %602 = vmatprep.subr.bf16.mxu1 %v2168_v52 }
  0x40   :  { %562 = vmatpush1.bf16.msra.mxu0 %v2172_v53  ;;  %603 = vmatpush1.bf16.msra.mxu1 %v2174_v54 }
  0x41   :  { %563 = vmatprep.subr.bf16.mxu0 %v2178_v55  ;;  %604 = vmatprep.subr.bf16.mxu1 %v2180_v56 }
  0x44   :  { %564 = vmatpush1.bf16.msra.mxu0 %v2184_v57  ;;  %605 = vmatpush1.bf16.msra.mxu1 %v2186_v58 }
  0x45   :  { %565 = vmatprep.subr.bf16.mxu0 %v2190_v59  ;;  %606 = vmatprep.subr.bf16.mxu1 %v2192_v60 }
  0x48   :  { %566 = vmatpush1.bf16.msra.mxu0 %v2196_v61  ;;  %607 = vmatpush1.bf16.msra.mxu1 %v2198_v62 }
  0x49   :  { %567 = vmatprep.subr.bf16.mxu0 %v2202_v63  ;;  %608 = vmatprep.subr.bf16.mxu1 %v2204_v1 }
  0x4c   :  { %568 = vmatpush1.bf16.msra.mxu0 %v2208_v2  ;;  %609 = vmatpush1.bf16.msra.mxu1 %v2210_v3 }
  0x4d   :  { %668 = vmatprep.subr.bf16.mxu0 %v2115_v34  ;;  %709 = vmatprep.subr.bf16.mxu1 %v2117_v35 }
  0x4f   :  { %586 = vmatmul.mubr.bf16.vlgmr.msra.gmra.mxu0 %v360_v5  ;;  %627 = vmatmul.mubr.bf16.vlgmr.msra.gmra.mxu1 %v360_v5 }
  0x50   :  { %669 = vmatpush1.bf16.msra.mxu0 %v2122_v37  ;;  %710 = vmatpush1.bf16.msra.mxu1 %v2124_v38 }
  0x51   :  { %670 = vmatprep.subr.bf16.mxu0 %v2126_v39  ;;  %711 = vmatprep.subr.bf16.mxu1 %v2130_v40 }
  0x52   :  { %700 = vmatprep.mubr.bf16.mxu0 %v1987_v0  ;;  %741 = vmatprep.mubr.bf16.mxu1 %v1987_v0 }
  0x54   :  { %671 = vmatpush1.bf16.msra.mxu0 %v2132_v41  ;;  %712 = vmatpush1.bf16.msra.mxu1 %v2136_v42 }
  0x55   :  { %672 = vmatprep.subr.bf16.mxu0 %v2140_v43  ;;  %713 = vmatprep.subr.bf16.mxu1 %v2142_v44 }
  0x58   :  { %673 = vmatpush1.bf16.msra.mxu0 %v2148_v45  ;;  %714 = vmatpush1.bf16.msra.mxu1 %v2150_v46 }
  0x59   :  { %674 = vmatprep.subr.bf16.mxu0 %v2152_v47  ;;  %715 = vmatprep.subr.bf16.mxu1 %v2156_v48 }
  0x5c   :  { %675 = vmatpush1.bf16.msra.mxu0 %v2160_v49  ;;  %716 = vmatpush1.bf16.msra.mxu1 %v2162_v50 }
  0x5d   :  { %676 = vmatprep.subr.bf16.mxu0 %v2166_v51  ;;  %717 = vmatprep.subr.bf16.mxu1 %v2168_v52 }
  0x60   :  { %677 = vmatpush1.bf16.msra.mxu0 %v2172_v53  ;;  %718 = vmatpush1.bf16.msra.mxu1 %v2174_v54 }
  0x61   :  { %678 = vmatprep.subr.bf16.mxu0 %v2178_v55  ;;  %719 = vmatprep.subr.bf16.mxu1 %v2180_v56 }
  0x64   :  { %679 = vmatpush1.bf16.msra.mxu0 %v2184_v57  ;;  %720 = vmatpush1.bf16.msra.mxu1 %v2186_v58 }
  0x65   :  { %680 = vmatprep.subr.bf16.mxu0 %v2190_v59  ;;  %721 = vmatprep.subr.bf16.mxu1 %v2192_v60 }
  0x68   :  { %681 = vmatpush1.bf16.msra.mxu0 %v2196_v61  ;;  %722 = vmatpush1.bf16.msra.mxu1 %v2198_v62 }
  0x69   :  { %682 = vmatprep.subr.bf16.mxu0 %v2202_v63  ;;  %723 = vmatprep.subr.bf16.mxu1 %v2204_v1 }
  0x6c   :  { %683 = vmatpush1.bf16.msra.mxu0 %v2208_v2  ;;  %724 = vmatpush1.bf16.msra.mxu1 %v2210_v3 }
  0x6d   :  { %801 = vmatprep.subr.bf16.mxu0 %v2115_v34  ;;  %842 = vmatprep.subr.bf16.mxu1 %v2117_v35 }
  0xef   :  { %v294_v17 = vpop.f32.mrf.mxu0  ;;  %v337_v18 = vpop.f32.mrf.mxu1 }
  0xf0   :  { %v295_v19 = vadd.f32 %v294_v17, %v77_v13  ;;  %v338_v20 = vadd.f32 %v337_v18, %v85_v14 }
  0xf1   :  { %v296_v21 = vpop.f32.mrf.mxu0  ;;  %v339_v22 = vpop.f32.mrf.mxu1 }
  0xf2   :  { %346 = vst [vmem:[#allocation4 + $0x30] sm:$0xff] %v295_v19  ;;  %v297_v23 = vadd.f32 %v296_v21, %v81_v15  ;;  %348 = vst [vmem:[#allocation4 + $0x18] sm:$0xff] %v338_v20  ;;  %v340_v24 = vadd.f32 %v339_v22, %v89_v16 }
  0xf3   :  { %v298_v25 = vpop.f32.mrf.mxu0  ;;  %v341_v26 = vpop.f32.mrf.mxu1 }
  0xf4   :  { %347 = vst [vmem:[#allocation4] sm:$0xff] %v297_v23  ;;  %v299_v27 = vadd.f32 %v298_v25, %v77_v13  ;;  %349 = vst [vmem:[#allocation4 + $0x10] sm:$0xff] %v340_v24  ;;  %v342_v28 = vadd.f32 %v341_v26, %v85_v14 }
  0xf5   :  { %v300_v29 = vpop.f32.mrf.mxu0  ;;  %v343_v30 = vpop.f32.mrf.mxu1 }
  0xf6   :  { %350 = vst [vmem:[#allocation4 + $0x8] sm:$0xff] %v299_v27  ;;  %v301_v31 = vadd.f32 %v300_v29, %v81_v15  ;;  %352 = vst [vmem:[#allocation4 + $0x28] sm:$0xff] %v342_v28  ;;  %v344_v32 = vadd.f32 %v343_v30, %v89_v16  ;;  %v355_v27 = vld [vmem:[#allocation3] sm:$0x3] }
  0xf8   :  { %351 = vst [vmem:[#allocation4 + $0x20] sm:$0xff] %v301_v31  ;;  %353 = vst [vmem:[#allocation4 + $0x38] sm:$0xff] %v344_v32 }
  0xf9   :  { %v356_v33 = vld [vmem:[#allocation4 + $0x30] sm:$0x3]  ;;  %v358_v19 = vld [vmem:[#allocation4 + $0x18] sm:$0x3] }
  0xfb   :  { %v357_v6 = vld [vmem:[#allocation4] sm:$0x3]  ;;  %v359_v15 = vld [vmem:[#allocation4 + $0x10] sm:$0x3] }
 0x10f   :  { %v587_v36 = vpop.f32.mrf.mxu0  ;;  %v628_v4 = vpop.f32.mrf.mxu1 }
 0x110   :  { %v635_v5 = vadd.f32 %v587_v36, %v356_v33  ;;  %v637_v21 = vadd.f32 %v628_v4, %v358_v19 }
 0x111   :  { %v589_v7 = vpop.f32.mrf.mxu0  ;;  %v630_v8 = vpop.f32.mrf.mxu1 }
 0x112   :  { %v1667_v9 = vmul.f32 -1.442695, %v635_v5  ;;  %v636_v10 = vadd.f32 %v589_v7, %v357_v6  ;;  %v638_v16 = vadd.f32 %v630_v8, %v359_v15 }
 0x113   :  { %v591_v11 = vpop.f32.mrf.mxu0  ;;  %v632_v12 = vpop.f32.mrf.mxu1 }
 0x114   :  { %1802 = vpow2.f32 %v1667_v9  ;;  %v1668_v13 = vmul.f32 -1.442695, %v636_v10  ;;  %v1669_v18 = vmul.f32 -1.442695, %v638_v16  ;;  %v663_v10 = vld [vmem:[#allocation4 + $0x30] sm:$0xc] }
 0x115   :  { %v592_v14 = vpop.f32.mrf.mxu0  ;;  %v633_v17 = vpop.f32.mrf.mxu1 }
 0x116   :  { %1804 = vpow2.f32 %v1668_v13  ;;  %v664_v17 = vld [vmem:[#allocation4] sm:$0xc] }
 0x117   :  { %1806 = vpow2.f32 %v1669_v18 }
 0x121   :  { %v1803_v20 = vpop.eup %1802 }
 0x122   :  { %v642_v22 = vadd.f32 1.0, %v1803_v20 }
 0x123   :  { %v1805_v23 = vpop.eup %1804 }
 0x124   :  { %1808 = vrcp.f32 %v642_v22  ;;  %v648_v24 = vadd.f32 1.0, %v1805_v23  ;;  %v1807_v25 = vpop.eup %1806 }
 0x125   :  { %1810 = vtanh.f32 %v637_v21  ;;  %v655_v30 = vadd.f32 1.0, %v1807_v25 }
 0x126   :  { %1812 = vrcp.f32 %v648_v24  ;;  %v666_v24 = vld [vmem:[#allocation4 + $0x10] sm:$0xc] }
 0x127   :  { %1814 = vrcp.f32 %v655_v30 }
 0x131   :  { %v1809_v26 = vpop.eup %1808 }
 0x132   :  { %v1811_v28 = vpop.eup %1810 }
 0x133   :  { %v1813_v29 = vpop.eup %1812  ;;  %v659_v31 = vmul.f32 %v1811_v28, %v1809_v26  ;;  %v665_v28 = vld [vmem:[#allocation4 + $0x18] sm:$0xc] }
 0x134   :  { %v658_v32 = vmul.f32 %v1813_v29, %v355_v27  ;;  %v1815_v36 = vpop.eup %1814 }
 0x136   :  { %v2255_v33 = vadd.f32 %v659_v31, %v658_v32 }
 0x138   :  { %1816 = vtanh.f32 %v2255_v33 }
 0x145   :  { %v1817_v4 = vpop.eup %1816 }
 0x146   :  { %v2258_v5 = vmul.f32 %v1817_v4, %v1815_v36 }
 0x148   :  { %v667_v6 = vpack.c.bf16 %v2258_v5, %v2258_v5 }
 0x14a   :  { %701 = vmatmul.mubr.bf16.vlgmr.msra.gmra.mxu0 %v667_v6  ;;  %742 = vmatmul.mubr.bf16.vlgmr.msra.gmra.mxu1 %v667_v6 }
 0x14b   :  { %802 = vmatpush1.bf16.msra.mxu0 %v2122_v37  ;;  %843 = vmatpush1.bf16.msra.mxu1 %v2124_v38 }
 0x14c   :  { %803 = vmatprep.subr.bf16.mxu0 %v2126_v39  ;;  %844 = vmatprep.subr.bf16.mxu1 %v2130_v40 }
 0x14d   :  { %833 = vmatprep.mubr.bf16.mxu0 %v1987_v0  ;;  %874 = vmatprep.mubr.bf16.mxu1 %v1987_v0 }
 0x14f   :  { %804 = vmatpush1.bf16.msra.mxu0 %v2132_v41  ;;  %845 = vmatpush1.bf16.msra.mxu1 %v2136_v42 }
 0x150   :  { %805 = vmatprep.subr.bf16.mxu0 %v2140_v43  ;;  %846 = vmatprep.subr.bf16.mxu1 %v2142_v44 }
 0x153   :  { %806 = vmatpush1.bf16.msra.mxu0 %v2148_v45  ;;  %847 = vmatpush1.bf16.msra.mxu1 %v2150_v46 }
 0x154   :  { %807 = vmatprep.subr.bf16.mxu0 %v2152_v47  ;;  %848 = vmatprep.subr.bf16.mxu1 %v2156_v48 }
 0x157   :  { %808 = vmatpush1.bf16.msra.mxu0 %v2160_v49  ;;  %849 = vmatpush1.bf16.msra.mxu1 %v2162_v50 }
 0x158   :  { %809 = vmatprep.subr.bf16.mxu0 %v2166_v51  ;;  %850 = vmatprep.subr.bf16.mxu1 %v2168_v52 }
 0x15b   :  { %810 = vmatpush1.bf16.msra.mxu0 %v2172_v53  ;;  %851 = vmatpush1.bf16.msra.mxu1 %v2174_v54 }
 0x15c   :  { %811 = vmatprep.subr.bf16.mxu0 %v2178_v55  ;;  %852 = vmatprep.subr.bf16.mxu1 %v2180_v56 }
 0x15f   :  { %812 = vmatpush1.bf16.msra.mxu0 %v2184_v57  ;;  %853 = vmatpush1.bf16.msra.mxu1 %v2186_v58 }
 0x160   :  { %813 = vmatprep.subr.bf16.mxu0 %v2190_v59  ;;  %854 = vmatprep.subr.bf16.mxu1 %v2192_v60 }
 0x163   :  { %814 = vmatpush1.bf16.msra.mxu0 %v2196_v61  ;;  %855 = vmatpush1.bf16.msra.mxu1 %v2198_v62 }
 0x164   :  { %815 = vmatprep.subr.bf16.mxu0 %v2202_v63  ;;  %856 = vmatprep.subr.bf16.mxu1 %v2204_v1 }
 0x167   :  { %816 = vmatpush1.bf16.msra.mxu0 %v2208_v2  ;;  %857 = vmatpush1.bf16.msra.mxu1 %v2210_v3 }
 0x168   :  { %934 = vmatprep.subr.bf16.mxu0 %v2115_v34  ;;  %975 = vmatprep.subr.bf16.mxu1 %v2117_v35 }
 0x20a   :  { %v702_v7 = vpop.f32.mrf.mxu0  ;;  %v743_v8 = vpop.f32.mrf.mxu1 }
 0x20b   :  { %v754_v9 = vrot.slane %v702_v7, 6  ;;  %v756_v26 = vrot.slane %v743_v8, 6 }
 0x20c   :  { %v704_v11 = vpop.f32.mrf.mxu0  ;;  %v745_v12 = vpop.f32.mrf.mxu1 }
 0x20d   :  { %v762_v13 = vadd.f32 %v754_v9, %v663_v10  ;;  %v755_v14 = vrot.slane %v704_v11, 6  ;;  %v757_v23 = vrot.slane %v745_v12, 6  ;;  %v764_v30 = vadd.f32 %v756_v26, %v665_v28  ;;  %v794_v26 = vld [vmem:[#allocation4] sm:$0x30] }
 0x20e   :  { %v706_v15 = vpop.f32.mrf.mxu0  ;;  %v747_v16 = vpop.f32.mrf.mxu1  ;;  %v786_v9 = vrot.slane %v2255_v33, 6 }
 0x20f   :  { %v1670_v18 = vmul.f32 -1.442695, %v762_v13  ;;  %v763_v19 = vadd.f32 %v755_v14, %v664_v17  ;;  %v765_v25 = vadd.f32 %v757_v23, %v666_v24 }
 0x210   :  { %v707_v20 = vpop.f32.mrf.mxu0  ;;  %v748_v21 = vpop.f32.mrf.mxu1 }
 0x211   :  { %1818 = vpow2.f32 %v1670_v18  ;;  %v1671_v22 = vmul.f32 -1.442695, %v763_v19  ;;  %v1672_v27 = vmul.f32 -1.442695, %v765_v25  ;;  %v793_v21 = vld [vmem:[#allocation4 + $0x30] sm:$0x30] }
 0x213   :  { %1820 = vpow2.f32 %v1671_v22 }
 0x214   :  { %1822 = vpow2.f32 %v1672_v27 }
 0x21e   :  { %v1819_v29 = vpop.eup %1818 }
 0x21f   :  { %v769_v31 = vadd.f32 1.0, %v1819_v29 }
 0x220   :  { %v1821_v32 = vpop.eup %1820 }
 0x221   :  { %1824 = vrcp.f32 %v769_v31  ;;  %v775_v36 = vadd.f32 1.0, %v1821_v32  ;;  %v1823_v4 = vpop.eup %1822 }
 0x222   :  { %1826 = vtanh.f32 %v764_v30  ;;  %v782_v11 = vadd.f32 1.0, %v1823_v4 }
 0x223   :  { %1828 = vrcp.f32 %v775_v36 }
 0x224   :  { %1830 = vrcp.f32 %v782_v11  ;;  %v795_v11 = vld [vmem:[#allocation4 + $0x18] sm:$0x30] }
 0x22e   :  { %v1825_v6 = vpop.eup %1824 }
 0x22f   :  { %v1827_v7 = vpop.eup %1826 }
 0x230   :  { %v1829_v10 = vpop.eup %1828  ;;  %v789_v12 = vmul.f32 %v1827_v7, %v1825_v6  ;;  %v796_v6 = vld [vmem:[#allocation4 + $0x10] sm:$0x30] }
 0x231   :  { %v788_v8 = vmul.f32 %v1829_v10, %v786_v9  ;;  %v1831_v14 = vpop.eup %1830 }
 0x233   :  { %v2297_v13 = vadd.f32 %v789_v12, %v788_v8 }
 0x235   :  { %1832 = vtanh.f32 %v2297_v13 }
 0x242   :  { %v1833_v17 = vpop.eup %1832 }
 0x243   :  { %v2300_v15 = vmul.f32 %v1833_v17, %v1831_v14 }
 0x245   :  { %v797_v16 = vpack.c.bf16 %v2300_v15, %v2300_v15 }
 0x247   :  { %v799_v18 = vrot.slane %v797_v16, 1 }
 0x249   :  { %834 = vmatmul.mubr.bf16.vlgmr.msra.gmra.mxu0 %v799_v18  ;;  %875 = vmatmul.mubr.bf16.vlgmr.msra.gmra.mxu1 %v799_v18 }
 0x24a   :  { %935 = vmatpush1.bf16.msra.mxu0 %v2122_v37  ;;  %976 = vmatpush1.bf16.msra.mxu1 %v2124_v38 }
 0x24b   :  { %936 = vmatprep.subr.bf16.mxu0 %v2126_v39  ;;  %977 = vmatprep.subr.bf16.mxu1 %v2130_v40 }
 0x24c   :  { %966 = vmatprep.mubr.bf16.mxu0 %v1987_v0  ;;  %1007 = vmatprep.mubr.bf16.mxu1 %v1987_v0 }
 0x24e   :  { %937 = vmatpush1.bf16.msra.mxu0 %v2132_v41  ;;  %978 = vmatpush1.bf16.msra.mxu1 %v2136_v42 }
 0x24f   :  { %938 = vmatprep.subr.bf16.mxu0 %v2140_v43  ;;  %979 = vmatprep.subr.bf16.mxu1 %v2142_v44 }
 0x252   :  { %939 = vmatpush1.bf16.msra.mxu0 %v2148_v45  ;;  %980 = vmatpush1.bf16.msra.mxu1 %v2150_v46 }
 0x253   :  { %940 = vmatprep.subr.bf16.mxu0 %v2152_v47  ;;  %981 = vmatprep.subr.bf16.mxu1 %v2156_v48 }
 0x256   :  { %941 = vmatpush1.bf16.msra.mxu0 %v2160_v49  ;;  %982 = vmatpush1.bf16.msra.mxu1 %v2162_v50 }
 0x257   :  { %942 = vmatprep.subr.bf16.mxu0 %v2166_v51  ;;  %983 = vmatprep.subr.bf16.mxu1 %v2168_v52 }
 0x25a   :  { %943 = vmatpush1.bf16.msra.mxu0 %v2172_v53  ;;  %984 = vmatpush1.bf16.msra.mxu1 %v2174_v54 }
 0x25b   :  { %944 = vmatprep.subr.bf16.mxu0 %v2178_v55  ;;  %985 = vmatprep.subr.bf16.mxu1 %v2180_v56 }
 0x25e   :  { %945 = vmatpush1.bf16.msra.mxu0 %v2184_v57  ;;  %986 = vmatpush1.bf16.msra.mxu1 %v2186_v58 }
 0x25f   :  { %946 = vmatprep.subr.bf16.mxu0 %v2190_v59  ;;  %987 = vmatprep.subr.bf16.mxu1 %v2192_v60 }
 0x262   :  { %947 = vmatpush1.bf16.msra.mxu0 %v2196_v61  ;;  %988 = vmatpush1.bf16.msra.mxu1 %v2198_v62 }
 0x263   :  { %948 = vmatprep.subr.bf16.mxu0 %v2202_v63  ;;  %989 = vmatprep.subr.bf16.mxu1 %v2204_v1 }
 0x266   :  { %949 = vmatpush1.bf16.msra.mxu0 %v2208_v2  ;;  %990 = vmatpush1.bf16.msra.mxu1 %v2210_v3 }
 0x267   :  { %1067 = vmatprep.subr.bf16.mxu0 %v2115_v34  ;;  %1108 = vmatprep.subr.bf16.mxu1 %v2117_v35 }
 0x309   :  { %v835_v33 = vpop.f32.mrf.mxu0  ;;  %v876_v19 = vpop.f32.mrf.mxu1 }
 0x30a   :  { %v887_v20 = vrot.slane %v835_v33, 4  ;;  %v889_v9 = vrot.slane %v876_v19, 4 }
 0x30b   :  { %v837_v22 = vpop.f32.mrf.mxu0  ;;  %v878_v23 = vpop.f32.mrf.mxu1 }
 0x30c   :  { %v895_v24 = vadd.f32 %v887_v20, %v793_v21  ;;  %v888_v25 = vrot.slane %v837_v22, 4  ;;  %v890_v4 = vrot.slane %v878_v23, 4  ;;  %v897_v8 = vadd.f32 %v889_v9, %v795_v11 }
 0x30d   :  { %v839_v27 = vpop.f32.mrf.mxu0  ;;  %v880_v28 = vpop.f32.mrf.mxu1  ;;  %v919_v21 = vrot.slane %v2297_v13, 6 }
 0x30e   :  { %v1673_v29 = vmul.f32 -1.442695, %v895_v24  ;;  %v896_v30 = vadd.f32 %v888_v25, %v794_v26  ;;  %v898_v7 = vadd.f32 %v890_v4, %v796_v6 }
 0x30f   :  { %v840_v31 = vpop.f32.mrf.mxu0  ;;  %v881_v32 = vpop.f32.mrf.mxu1 }
 0x310   :  { %1834 = vpow2.f32 %v1673_v29  ;;  %v1674_v36 = vmul.f32 -1.442695, %v896_v30  ;;  %v1675_v10 = vmul.f32 -1.442695, %v898_v7  ;;  %v1577_v29 = vsel %vm1576_vm0, %v2258_v5, %v2300_v15 }
 0x312   :  { %1836 = vpow2.f32 %v1674_v36  ;;  %v926_v36 = vld [vmem:[#allocation4 + $0x30] sm:$0xc0] }
 0x313   :  { %1838 = vpow2.f32 %v1675_v10  ;;  %v927_v10 = vld [vmem:[#allocation4] sm:$0xc0] }
 0x31d   :  { %v1835_v12 = vpop.eup %1834 }
 0x31e   :  { %v902_v14 = vadd.f32 1.0, %v1835_v12 }
 0x31f   :  { %v1837_v17 = vpop.eup %1836 }
 0x320   :  { %1840 = vrcp.f32 %v902_v14  ;;  %v908_v16 = vadd.f32 1.0, %v1837_v17  ;;  %v1839_v18 = vpop.eup %1838 }
 0x321   :  { %1842 = vtanh.f32 %v897_v8  ;;  %v915_v23 = vadd.f32 1.0, %v1839_v18 }
 0x322   :  { %1844 = vrcp.f32 %v908_v16 }
 0x323   :  { %1846 = vrcp.f32 %v915_v23 }
 0x32d   :  { %v1841_v33 = vpop.eup %1840 }
 0x32e   :  { %v1843_v20 = vpop.eup %1842 }
 0x32f   :  { %v1845_v22 = vpop.eup %1844  ;;  %v922_v24 = vmul.f32 %v1843_v20, %v1841_v33  ;;  %v929_v20 = vld [vmem:[#allocation4 + $0x10] sm:$0xc0] }
 0x330   :  { %v921_v19 = vmul.f32 %v1845_v22, %v919_v21  ;;  %v1847_v26 = vpop.eup %1846 }
 0x332   :  { %v2339_v25 = vadd.f32 %v922_v24, %v921_v19  ;;  %v928_v24 = vld [vmem:[#allocation4 + $0x18] sm:$0xc0] }
 0x334   :  { %1848 = vtanh.f32 %v2339_v25 }
 0x341   :  { %v1849_v27 = vpop.eup %1848 }
 0x342   :  { %v925_v28 = vmul.f32 %v1849_v27, %v1847_v26 }
 0x344   :  { %v930_v30 = vpack.c.bf16 %v925_v28, %v925_v28  ;;  %v2346_v13 = vsel %vm1578_vm1, %v1577_v29, %v925_v28 }
 0x346   :  { %v932_v31 = vrot.slane %v930_v30, 2 }
 0x348   :  { %967 = vmatmul.mubr.bf16.vlgmr.msra.gmra.mxu0 %v932_v31  ;;  %1008 = vmatmul.mubr.bf16.vlgmr.msra.gmra.mxu1 %v932_v31 }
 0x349   :  { %1068 = vmatpush1.bf16.msra.mxu0 %v2122_v37  ;;  %1109 = vmatpush1.bf16.msra.mxu1 %v2124_v38 }
 0x34a   :  { %1069 = vmatprep.subr.bf16.mxu0 %v2126_v39  ;;  %1110 = vmatprep.subr.bf16.mxu1 %v2130_v40 }
 0x34b   :  { %1099 = vmatprep.mubr.bf16.mxu0 %v1987_v0  ;;  %1140 = vmatprep.mubr.bf16.mxu1 %v1987_v0 }
 0x34d   :  { %1070 = vmatpush1.bf16.msra.mxu0 %v2132_v41  ;;  %1111 = vmatpush1.bf16.msra.mxu1 %v2136_v42 }
 0x34e   :  { %1071 = vmatprep.subr.bf16.mxu0 %v2140_v43  ;;  %1112 = vmatprep.subr.bf16.mxu1 %v2142_v44 }
 0x351   :  { %1072 = vmatpush1.bf16.msra.mxu0 %v2148_v45  ;;  %1113 = vmatpush1.bf16.msra.mxu1 %v2150_v46 }
 0x352   :  { %1073 = vmatprep.subr.bf16.mxu0 %v2152_v47  ;;  %1114 = vmatprep.subr.bf16.mxu1 %v2156_v48 }
 0x355   :  { %1074 = vmatpush1.bf16.msra.mxu0 %v2160_v49  ;;  %1115 = vmatpush1.bf16.msra.mxu1 %v2162_v50 }
 0x356   :  { %1075 = vmatprep.subr.bf16.mxu0 %v2166_v51  ;;  %1116 = vmatprep.subr.bf16.mxu1 %v2168_v52 }
 0x359   :  { %1076 = vmatpush1.bf16.msra.mxu0 %v2172_v53  ;;  %1117 = vmatpush1.bf16.msra.mxu1 %v2174_v54 }
 0x35a   :  { %1077 = vmatprep.subr.bf16.mxu0 %v2178_v55  ;;  %1118 = vmatprep.subr.bf16.mxu1 %v2180_v56 }
 0x35d   :  { %1078 = vmatpush1.bf16.msra.mxu0 %v2184_v57  ;;  %1119 = vmatpush1.bf16.msra.mxu1 %v2186_v58 }
 0x35e   :  { %1079 = vmatprep.subr.bf16.mxu0 %v2190_v59  ;;  %1120 = vmatprep.subr.bf16.mxu1 %v2192_v60 }
 0x361   :  { %1080 = vmatpush1.bf16.msra.mxu0 %v2196_v61  ;;  %1121 = vmatpush1.bf16.msra.mxu1 %v2198_v62 }
 0x362   :  { %1081 = vmatprep.subr.bf16.mxu0 %v2202_v63  ;;  %1122 = vmatprep.subr.bf16.mxu1 %v2204_v1 }
 0x365   :  { %1082 = vmatpush1.bf16.msra.mxu0 %v2208_v2  ;;  %1123 = vmatpush1.bf16.msra.mxu1 %v2210_v3 }
 0x366   :  { %1185 = vmatprep.subr.bf16.mxu0 %v2115_v34  ;;  %1226 = vmatprep.subr.bf16.mxu1 %v2117_v35 }
 0x408   :  { %v968_v5 = vpop.f32.mrf.mxu0  ;;  %v1009_v15 = vpop.f32.mrf.mxu1 }
 0x409   :  { %v1020_v32 = vrot.slane %v968_v5, 2  ;;  %v1022_v22 = vrot.slane %v1009_v15, 2 }
 0x40a   :  { %v970_v4 = vpop.f32.mrf.mxu0  ;;  %v1011_v6 = vpop.f32.mrf.mxu1 }
 0x40b   :  { %v1028_v7 = vadd.f32 %v1020_v32, %v926_v36  ;;  %v1021_v9 = vrot.slane %v970_v4, 2  ;;  %v1023_v33 = vrot.slane %v1011_v6, 2  ;;  %v1030_v26 = vadd.f32 %v1022_v22, %v928_v24 }
 0x40c   :  { %v972_v11 = vpop.f32.mrf.mxu0  ;;  %v1013_v12 = vpop.f32.mrf.mxu1  ;;  %v1052_v32 = vrot.slane %v2339_v25, 6 }
 0x40d   :  { %v1676_v8 = vmul.f32 -1.442695, %v1028_v7  ;;  %v1029_v14 = vadd.f32 %v1021_v9, %v927_v10  ;;  %v1031_v21 = vadd.f32 %v1023_v33, %v929_v20 }
 0x40e   :  { %v973_v17 = vpop.f32.mrf.mxu0  ;;  %v1014_v16 = vpop.f32.mrf.mxu1 }
 0x40f   :  { %1850 = vpow2.f32 %v1676_v8  ;;  %v1677_v18 = vmul.f32 -1.442695, %v1029_v14  ;;  %v1678_v23 = vmul.f32 -1.442695, %v1031_v21 }
 0x411   :  { %1852 = vpow2.f32 %v1677_v18 }
 0x412   :  { %1854 = vpow2.f32 %v1678_v23 }
 0x41c   :  { %v1851_v19 = vpop.eup %1850 }
 0x41d   :  { %v1035_v27 = vadd.f32 1.0, %v1851_v19 }
 0x41e   :  { %v1853_v28 = vpop.eup %1852 }
 0x41f   :  { %1856 = vrcp.f32 %v1035_v27  ;;  %v1041_v29 = vadd.f32 1.0, %v1853_v28  ;;  %v1855_v30 = vpop.eup %1854 }
 0x420   :  { %1858 = vtanh.f32 %v1030_v26  ;;  %v1048_v4 = vadd.f32 1.0, %v1855_v30 }
 0x421   :  { %1860 = vrcp.f32 %v1041_v29 }
 0x422   :  { %1862 = vrcp.f32 %v1048_v4  ;;  %v2441_v4 = vld [vmem:[#allocation5 + $0xcc] ss:$16 sps:$4 sm:$0xff]  }
 0x42c   :  { %v1857_v31 = vpop.eup %1856 }
 0x42d   :  { %v1859_v5 = vpop.eup %1858 }
 0x42e   :  { %v1861_v36 = vpop.eup %1860  ;;  %v1055_v6 = vmul.f32 %v1859_v5, %v1857_v31  ;;  %v2432_v5 = vld [vmem:[#allocation5 + $0xe0] ss:$16 sps:$4 sm:$0xff]  }
 0x42f   :  { %v1054_v15 = vmul.f32 %v1861_v36, %v1052_v32  ;;  %v1863_v9 = vpop.eup %1862  ;;  %v2435_v32 = vld [vmem:[#allocation5 + $0xe8] ss:$16 sps:$4 sm:$0xff]   ;;  %v2438_v36 = vld [vmem:[#allocation5 + $0xc4] ss:$16 sps:$4 sm:$0xff]  }
 0x431   :  { %v2383_v7 = vadd.f32 %v1055_v6, %v1054_v15  ;;  %v2446_v6 = vld [vmem:[#allocation5 + $0xc0] ss:$16 sps:$4 sm:$0xff]   ;;  %v2449_v15 = vld [vmem:[#allocation5 + $0xc8] ss:$16 sps:$4 sm:$0xff]  }
 0x433   :  { %1864 = vtanh.f32 %v2383_v7  ;;  %v1173_v22 = vrot.slane %v2383_v7, 6  ;;  %v2452_v7 = vld [vmem:[#allocation5 + $0xa4] ss:$16 sps:$4 sm:$0xff]  }
 0x440   :  { %v1865_v10 = vpop.eup %1864 }
 0x441   :  { %v1058_v11 = vmul.f32 %v1865_v10, %v1863_v9  ;;  %v2455_v9 = vld [vmem:[#allocation5 + $0xac] ss:$16 sps:$4 sm:$0xff]   ;;  %v2458_v10 = vld [vmem:[#allocation5 + $0xa0] ss:$16 sps:$4 sm:$0xff]  }
 0x443   :  { %v1063_v12 = vpack.c.bf16 %v1058_v11, %v1058_v11  ;;  %v2388_v8 = vsel %vm1580_vm2, %v2346_v13, %v1058_v11  ;;  %v2461_v11 = vld [vmem:[#allocation5 + $0xa8] ss:$16 sps:$4 sm:$0xff]  }
 0x445   :  { %v1065_v14 = vrot.slane %v1063_v12, 3  ;;  %v2464_v12 = vld [vmem:[#allocation5 + $0x84] ss:$16 sps:$4 sm:$0xff]  }
 0x447   :  { %1100 = vmatmul.mubr.bf16.vlgmr.msra.gmra.mxu0 %v1065_v14  ;;  %1141 = vmatmul.mubr.bf16.vlgmr.msra.gmra.mxu1 %v1065_v14  ;;  %v2467_v14 = vld [vmem:[#allocation5 + $0x8c] ss:$16 sps:$4 sm:$0xff]  }
 0x448   :  { %1186 = vmatpush1.bf16.msra.mxu0 %v2122_v37  ;;  %1227 = vmatpush1.bf16.msra.mxu1 %v2124_v38  ;;  %v1059_v37 = vld [vmem:[#allocation4 + $0x8] sm:$0x3] }
 0x449   :  { %1187 = vmatprep.subr.bf16.mxu0 %v2126_v39  ;;  %1228 = vmatprep.subr.bf16.mxu1 %v2130_v40 }
 0x44a   :  { %1217 = vmatprep.mubr.bf16.mxu0 %v1987_v0  ;;  %1258 = vmatprep.mubr.bf16.mxu1 %v1987_v0 }
 0x44c   :  { %1188 = vmatpush1.bf16.msra.mxu0 %v2132_v41  ;;  %1229 = vmatpush1.bf16.msra.mxu1 %v2136_v42  ;;  %v1060_v41 = vld [vmem:[#allocation4 + $0x20] sm:$0x3] }
 0x44d   :  { %1189 = vmatprep.subr.bf16.mxu0 %v2140_v43  ;;  %1230 = vmatprep.subr.bf16.mxu1 %v2142_v44 }
 0x450   :  { %1190 = vmatpush1.bf16.msra.mxu0 %v2148_v45  ;;  %1231 = vmatpush1.bf16.msra.mxu1 %v2150_v46 }
 0x451   :  { %1191 = vmatprep.subr.bf16.mxu0 %v2152_v47  ;;  %1232 = vmatprep.subr.bf16.mxu1 %v2156_v48 }
 0x454   :  { %1192 = vmatpush1.bf16.msra.mxu0 %v2160_v49  ;;  %1233 = vmatpush1.bf16.msra.mxu1 %v2162_v50 }
 0x455   :  { %1193 = vmatprep.subr.bf16.mxu0 %v2166_v51  ;;  %1234 = vmatprep.subr.bf16.mxu1 %v2168_v52  ;;  %v1062_v51 = vld [vmem:[#allocation4 + $0x38] sm:$0x3] }
 0x458   :  { %1194 = vmatpush1.bf16.msra.mxu0 %v2172_v53  ;;  %1235 = vmatpush1.bf16.msra.mxu1 %v2174_v54 }
 0x459   :  { %1195 = vmatprep.subr.bf16.mxu0 %v2178_v55  ;;  %1236 = vmatprep.subr.bf16.mxu1 %v2180_v56 }
 0x45c   :  { %1196 = vmatpush1.bf16.msra.mxu0 %v2184_v57  ;;  %1237 = vmatpush1.bf16.msra.mxu1 %v2186_v58 }
 0x45d   :  { %1197 = vmatprep.subr.bf16.mxu0 %v2190_v59  ;;  %1238 = vmatprep.subr.bf16.mxu1 %v2192_v60 }
 0x460   :  { %1198 = vmatpush1.bf16.msra.mxu0 %v2196_v61  ;;  %1239 = vmatpush1.bf16.msra.mxu1 %v2198_v62 }
 0x461   :  { %1199 = vmatprep.subr.bf16.mxu0 %v2202_v63  ;;  %1240 = vmatprep.subr.bf16.mxu1 %v2204_v1 }
 0x464   :  { %1200 = vmatpush1.bf16.msra.mxu0 %v2208_v2  ;;  %1241 = vmatpush1.bf16.msra.mxu1 %v2210_v3 }
 0x465   :  { %1318 = vmatprep.subr.bf16.mxu0 %v2115_v34  ;;  %1359 = vmatprep.subr.bf16.mxu1 %v2117_v35  ;;  %v1061_v35 = vld [vmem:[#allocation4 + $0x28] sm:$0x3] }
 0x507   :  { %v1101_v38 = vpop.f32.mrf.mxu0  ;;  %v1142_v39 = vpop.f32.mrf.mxu1 }
 0x508   :  { %v1149_v40 = vadd.f32 %v1101_v38, %v1059_v37  ;;  %v1151_v13 = vadd.f32 %v1142_v39, %v1061_v35  ;;  %v2470_v37 = vld [vmem:[#allocation5 + $0x80] ss:$16 sps:$4 sm:$0xff]   ;;  %v2473_v38 = vld [vmem:[#allocation5 + $0x88] ss:$16 sps:$4 sm:$0xff]   ;;  %v2476_v39 = vld [vmem:[#allocation5 + $0x64] ss:$16 sps:$4 sm:$0xff]  }
 0x509   :  { %v1103_v42 = vpop.f32.mrf.mxu0  ;;  %v1144_v43 = vpop.f32.mrf.mxu1 }
 0x50a   :  { %v1679_v44 = vmul.f32 -1.442695, %v1149_v40  ;;  %v1150_v45 = vadd.f32 %v1103_v42, %v1060_v41  ;;  %v1152_v34 = vadd.f32 %v1144_v43, %v1062_v51  ;;  %v2479_v40 = vld [vmem:[#allocation5 + $0x6c] ss:$16 sps:$4 sm:$0xff]   ;;  %v1181_v41 = vld [vmem:[#allocation4 + $0x20] sm:$0xc] }
 0x50b   :  { %v1105_v46 = vpop.f32.mrf.mxu0  ;;  %v1146_v47 = vpop.f32.mrf.mxu1 }
 0x50c   :  { %1866 = vpow2.f32 %v1679_v44  ;;  %v1680_v48 = vmul.f32 -1.442695, %v1150_v45  ;;  %v1681_v52 = vmul.f32 -1.442695, %v1152_v34  ;;  %v1183_v46 = vld [vmem:[#allocation4 + $0x38] sm:$0xc] }
 0x50d   :  { %v1106_v49 = vpop.f32.mrf.mxu0  ;;  %v1147_v50 = vpop.f32.mrf.mxu1 }
 0x50e   :  { %1868 = vpow2.f32 %v1680_v48  ;;  %v1182_v50 = vld [vmem:[#allocation4 + $0x28] sm:$0xc] }
 0x50f   :  { %1870 = vpow2.f32 %v1681_v52 }
 0x519   :  { %v1867_v25 = vpop.eup %1866 }
 0x51a   :  { %v1156_v17 = vadd.f32 1.0, %v1867_v25 }
 0x51b   :  { %v1869_v16 = vpop.eup %1868 }
 0x51c   :  { %1872 = vrcp.f32 %v1156_v17  ;;  %v1162_v18 = vadd.f32 1.0, %v1869_v16  ;;  %v1871_v33 = vpop.eup %1870 }
 0x51d   :  { %1874 = vtanh.f32 %v1151_v13  ;;  %v1169_v24 = vadd.f32 1.0, %v1871_v33 }
 0x51e   :  { %1876 = vrcp.f32 %v1162_v18 }
 0x51f   :  { %1878 = vrcp.f32 %v1169_v24 }
 0x529   :  { %v1873_v20 = vpop.eup %1872 }
 0x52a   :  { %v1875_v21 = vpop.eup %1874 }
 0x52b   :  { %v1877_v23 = vpop.eup %1876  ;;  %v1176_v19 = vmul.f32 %v1875_v21, %v1873_v20 }
 0x52c   :  { %v1175_v26 = vmul.f32 %v1877_v23, %v1173_v22  ;;  %v1879_v28 = vpop.eup %1878 }
 0x52e   :  { %v2425_v27 = vadd.f32 %v1176_v19, %v1175_v26 }
 0x530   :  { %1880 = vtanh.f32 %v2425_v27  ;;  %v1303_v18 = vrot.slane %v2425_v27, 6  ;;  %v1949_v27 = vld [vmem:[#allocation5 + $0x68] ss:$16 sps:$4 sm:$0xff]  }
 0x53d   :  { %v1881_v29 = vpop.eup %1880 }
 0x53e   :  { %v2428_v30 = vmul.f32 %v1881_v29, %v1879_v28 }
 0x540   :  { %v1184_v31 = vpack.c.bf16 %v2428_v30, %v2428_v30 }
 0x542   :  { %1218 = vmatmul.mubr.bf16.vlgmr.msra.gmra.mxu0 %v1184_v31  ;;  %1259 = vmatmul.mubr.bf16.vlgmr.msra.gmra.mxu1 %v1184_v31  ;;  %v1950_v31 = vld [vmem:[#allocation5 + $0x44] ss:$16 sps:$4 sm:$0xff]  }
 0x543   :  { %1319 = vmatpush1.bf16.msra.mxu0 %v2432_v5  ;;  %1360 = vmatpush1.bf16.msra.mxu1 %v2435_v32 }
 0x544   :  { %1320 = vmatprep.subr.bf16.mxu0 %v2438_v36  ;;  %1361 = vmatprep.subr.bf16.mxu1 %v2441_v4 }
 0x545   :  { %1350 = vmatprep.mubr.bf16.mxu0 %v1987_v0  ;;  %1391 = vmatprep.mubr.bf16.mxu1 %v1987_v0 }
 0x547   :  { %1321 = vmatpush1.bf16.msra.mxu0 %v2446_v6  ;;  %1362 = vmatpush1.bf16.msra.mxu1 %v2449_v15 }
 0x548   :  { %1322 = vmatprep.subr.bf16.mxu0 %v2452_v7  ;;  %1363 = vmatprep.subr.bf16.mxu1 %v2455_v9 }
 0x54b   :  { %1323 = vmatpush1.bf16.msra.mxu0 %v2458_v10  ;;  %1364 = vmatpush1.bf16.msra.mxu1 %v2461_v11 }
 0x54c   :  { %1324 = vmatprep.subr.bf16.mxu0 %v2464_v12  ;;  %1365 = vmatprep.subr.bf16.mxu1 %v2467_v14 }
 0x54f   :  { %1325 = vmatpush1.bf16.msra.mxu0 %v2470_v37  ;;  %1366 = vmatpush1.bf16.msra.mxu1 %v2473_v38 }
 0x550   :  { %1326 = vmatprep.subr.bf16.mxu0 %v2476_v39  ;;  %1367 = vmatprep.subr.bf16.mxu1 %v2479_v40 }
 0x553   :  { %1327 = vmatpush1.bf16.msra.mxu0 %v2172_v53  ;;  %1368 = vmatpush1.bf16.msra.mxu1 %v2174_v54  ;;  %v1946_v53 = vld [vmem:[#allocation5 + $0xe4] ss:$16 sps:$4 sm:$0xff]   ;;  %v1947_v54 = vld [vmem:[#allocation5 + $0xec] ss:$16 sps:$4 sm:$0xff]  }
 0x554   :  { %1328 = vmatprep.subr.bf16.mxu0 %v2178_v55  ;;  %1369 = vmatprep.subr.bf16.mxu1 %v2180_v56 }
 0x557   :  { %1329 = vmatpush1.bf16.msra.mxu0 %v2184_v57  ;;  %1370 = vmatpush1.bf16.msra.mxu1 %v2186_v58  ;;  %v1180_v58 = vld [vmem:[#allocation4 + $0x8] sm:$0xc] }
 0x558   :  { %1330 = vmatprep.subr.bf16.mxu0 %v2190_v59  ;;  %1371 = vmatprep.subr.bf16.mxu1 %v2192_v60 }
 0x55b   :  { %1331 = vmatpush1.bf16.msra.mxu0 %v2196_v61  ;;  %1372 = vmatpush1.bf16.msra.mxu1 %v2198_v62 }
 0x55c   :  { %1332 = vmatprep.subr.bf16.mxu0 %v2202_v63  ;;  %1373 = vmatprep.subr.bf16.mxu1 %v2204_v1 }
 0x55f   :  { %1333 = vmatpush1.bf16.msra.mxu0 %v2208_v2  ;;  %1374 = vmatpush1.bf16.msra.mxu1 %v2210_v3 }
 0x560   :  { %1451 = vmatprep.subr.bf16.mxu0 %v1946_v53  ;;  %1492 = vmatprep.subr.bf16.mxu1 %v1947_v54 }
 0x602   :  { %v1219_v55 = vpop.f32.mrf.mxu0  ;;  %v1260_v56 = vpop.f32.mrf.mxu1 }
 0x603   :  { %v1271_v57 = vrot.slane %v1219_v55, 6  ;;  %v1273_v48 = vrot.slane %v1260_v56, 6  ;;  %v1311_v56 = vld [vmem:[#allocation4 + $0x20] sm:$0x30] }
 0x604   :  { %v1221_v59 = vpop.f32.mrf.mxu0  ;;  %v1262_v60 = vpop.f32.mrf.mxu1 }
 0x605   :  { %v1279_v61 = vadd.f32 %v1271_v57, %v1180_v58  ;;  %v1272_v62 = vrot.slane %v1221_v59, 6  ;;  %v1274_v45 = vrot.slane %v1262_v60, 6  ;;  %v1281_v34 = vadd.f32 %v1273_v48, %v1182_v50 }
 0x606   :  { %v1223_v63 = vpop.f32.mrf.mxu0  ;;  %v1264_v42 = vpop.f32.mrf.mxu1 }
 0x607   :  { %v1682_v1 = vmul.f32 -1.442695, %v1279_v61  ;;  %v1280_v43 = vadd.f32 %v1272_v62, %v1181_v41  ;;  %v1282_v47 = vadd.f32 %v1274_v45, %v1183_v46  ;;  %v1313_v42 = vld [vmem:[#allocation4 + $0x38] sm:$0x30] }
 0x608   :  { %v1224_v2 = vpop.f32.mrf.mxu0  ;;  %v1265_v44 = vpop.f32.mrf.mxu1 }
 0x609   :  { %1882 = vpow2.f32 %v1682_v1  ;;  %v1683_v3 = vmul.f32 -1.442695, %v1280_v43  ;;  %v1684_v49 = vmul.f32 -1.442695, %v1282_v47  ;;  %v1312_v44 = vld [vmem:[#allocation4 + $0x28] sm:$0x30] }
 0x60b   :  { %1884 = vpow2.f32 %v1683_v3 }
 0x60c   :  { %1886 = vpow2.f32 %v1684_v49 }
 0x616   :  { %v1883_v51 = vpop.eup %1882 }
 0x617   :  { %v1286_v52 = vadd.f32 1.0, %v1883_v51 }
 0x618   :  { %v1885_v35 = vpop.eup %1884 }
 0x619   :  { %1888 = vrcp.f32 %v1286_v52  ;;  %v1292_v25 = vadd.f32 1.0, %v1885_v35  ;;  %v1887_v13 = vpop.eup %1886 }
 0x61a   :  { %1890 = vtanh.f32 %v1281_v34  ;;  %v1299_v20 = vadd.f32 1.0, %v1887_v13 }
 0x61b   :  { %1892 = vrcp.f32 %v1292_v25 }
 0x61c   :  { %1894 = vrcp.f32 %v1299_v20 }
 0x626   :  { %v1889_v17 = vpop.eup %1888 }
 0x627   :  { %v1891_v16 = vpop.eup %1890 }
 0x628   :  { %v1893_v33 = vpop.eup %1892  ;;  %v1306_v21 = vmul.f32 %v1891_v16, %v1889_v17 }
 0x629   :  { %v1305_v22 = vmul.f32 %v1893_v33, %v1303_v18  ;;  %v1895_v24 = vpop.eup %1894 }
 0x62b   :  { %v2497_v23 = vadd.f32 %v1306_v21, %v1305_v22 }
 0x62d   :  { %1896 = vtanh.f32 %v2497_v23  ;;  %v1436_v34 = vrot.slane %v2497_v23, 6 }
 0x63a   :  { %v1897_v19 = vpop.eup %1896 }
 0x63b   :  { %v2500_v26 = vmul.f32 %v1897_v19, %v1895_v24 }
 0x63d   :  { %v1314_v28 = vpack.c.bf16 %v2500_v26, %v2500_v26  ;;  %v1582_v20 = vsel %vm1576_vm0, %v2428_v30, %v2500_v26 }
 0x63f   :  { %v1316_v29 = vrot.slane %v1314_v28, 1 }
 0x641   :  { %1351 = vmatmul.mubr.bf16.vlgmr.msra.gmra.mxu0 %v1316_v29  ;;  %1392 = vmatmul.mubr.bf16.vlgmr.msra.gmra.mxu1 %v1316_v29  ;;  %v1443_v29 = vld [vmem:[#allocation4 + $0x8] sm:$0xc0] }
 0x642   :  { %1452 = vmatpush1.bf16.msra.mxu0 %v2432_v5  ;;  %1493 = vmatpush1.bf16.msra.mxu1 %v2435_v32  ;;  %v1951_v5 = vld [vmem:[#allocation5 + $0x4c] ss:$16 sps:$4 sm:$0xff]   ;;  %v1952_v32 = vld [vmem:[#allocation5 + $0x40] ss:$16 sps:$4 sm:$0xff]  }
 0x643   :  { %1453 = vmatprep.subr.bf16.mxu0 %v2438_v36  ;;  %1494 = vmatprep.subr.bf16.mxu1 %v2441_v4  ;;  %v1953_v36 = vld [vmem:[#allocation5 + $0x48] ss:$16 sps:$4 sm:$0xff]   ;;  %v1954_v4 = vld [vmem:[#allocation5 + $0x24] ss:$16 sps:$4 sm:$0xff]  }
 0x644   :  { %1483 = vmatprep.mubr.bf16.mxu0 %v1987_v0  ;;  %1524 = vmatprep.mubr.bf16.mxu1 %v1987_v0  ;;  %v1948_v0 = vld [vmem:[#allocation5 + $0x60] ss:$16 sps:$4 sm:$0xff]  }
 0x646   :  { %1454 = vmatpush1.bf16.msra.mxu0 %v2446_v6  ;;  %1495 = vmatpush1.bf16.msra.mxu1 %v2449_v15  ;;  %v1955_v6 = vld [vmem:[#allocation5 + $0x2c] ss:$16 sps:$4 sm:$0xff]   ;;  %v1956_v15 = vld [vmem:[#allocation5 + $0x20] ss:$16 sps:$4 sm:$0xff]  }
 0x647   :  { %1455 = vmatprep.subr.bf16.mxu0 %v2452_v7  ;;  %1496 = vmatprep.subr.bf16.mxu1 %v2455_v9  ;;  %v1957_v7 = vld [vmem:[#allocation5 + $0x28] ss:$16 sps:$4 sm:$0xff]   ;;  %v1958_v9 = vld [vmem:[#allocation5 + $0x4] ss:$16 sps:$4 sm:$0xff]  }
 0x64a   :  { %1456 = vmatpush1.bf16.msra.mxu0 %v2458_v10  ;;  %1497 = vmatpush1.bf16.msra.mxu1 %v2461_v11  ;;  %v1959_v10 = vld [vmem:[#allocation5 + $0xc] ss:$16 sps:$4 sm:$0xff]   ;;  %v1960_v11 = vld [vmem:[#allocation5] ss:$16 sps:$4 sm:$0xff]  }
 0x64b   :  { %1457 = vmatprep.subr.bf16.mxu0 %v2464_v12  ;;  %1498 = vmatprep.subr.bf16.mxu1 %v2467_v14  ;;  %v1961_v12 = vld [vmem:[#allocation5 + $0x8] ss:$16 sps:$4 sm:$0xff]  }
 0x64e   :  { %1458 = vmatpush1.bf16.msra.mxu0 %v2470_v37  ;;  %1499 = vmatpush1.bf16.msra.mxu1 %v2473_v38 }
 0x64f   :  { %1459 = vmatprep.subr.bf16.mxu0 %v2476_v39  ;;  %1500 = vmatprep.subr.bf16.mxu1 %v2479_v40  ;;  %v1310_v39 = vld [vmem:[#allocation4 + $0x8] sm:$0x30] }
 0x652   :  { %1460 = vmatpush1.bf16.msra.mxu0 %v1948_v0  ;;  %1501 = vmatpush1.bf16.msra.mxu1 %v1949_v27 }
 0x653   :  { %1461 = vmatprep.subr.bf16.mxu0 %v1950_v31  ;;  %1502 = vmatprep.subr.bf16.mxu1 %v1951_v5 }
 0x656   :  { %1462 = vmatpush1.bf16.msra.mxu0 %v1952_v32  ;;  %1503 = vmatpush1.bf16.msra.mxu1 %v1953_v36  ;;  %v1444_v32 = vld [vmem:[#allocation4 + $0x20] sm:$0xc0] }
 0x657   :  { %1463 = vmatprep.subr.bf16.mxu0 %v1954_v4  ;;  %1504 = vmatprep.subr.bf16.mxu1 %v1955_v6 }
 0x65a   :  { %1464 = vmatpush1.bf16.msra.mxu0 %v1956_v15  ;;  %1505 = vmatpush1.bf16.msra.mxu1 %v1957_v7 }
 0x65b   :  { %1465 = vmatprep.subr.bf16.mxu0 %v1958_v9  ;;  %1506 = vmatprep.subr.bf16.mxu1 %v1959_v10  ;;  %v1446_v10 = vld [vmem:[#allocation4 + $0x38] sm:$0xc0] }
 0x65e   :  { %1466 = vmatpush1.bf16.msra.mxu0 %v1960_v11  ;;  %1507 = vmatpush1.bf16.msra.mxu1 %v1961_v12 }
 0x701   :  { %v1352_v14 = vpop.f32.mrf.mxu0  ;;  %v1393_v37 = vpop.f32.mrf.mxu1 }
 0x702   :  { %v1404_v38 = vrot.slane %v1352_v14, 4  ;;  %v1406_v43 = vrot.slane %v1393_v37, 4  ;;  %v1445_v37 = vld [vmem:[#allocation4 + $0x28] sm:$0xc0] }
 0x703   :  { %v1354_v40 = vpop.f32.mrf.mxu0  ;;  %v1395_v53 = vpop.f32.mrf.mxu1 }
 0x704   :  { %v1412_v54 = vadd.f32 %v1404_v38, %v1310_v39  ;;  %v1405_v55 = vrot.slane %v1354_v40, 4  ;;  %v1407_v63 = vrot.slane %v1395_v53, 4  ;;  %v1414_v45 = vadd.f32 %v1406_v43, %v1312_v44 }
 0x705   :  { %v1356_v57 = vpop.f32.mrf.mxu0  ;;  %v1397_v58 = vpop.f32.mrf.mxu1 }
 0x706   :  { %v1685_v59 = vmul.f32 -1.442695, %v1412_v54  ;;  %v1413_v60 = vadd.f32 %v1405_v55, %v1311_v56  ;;  %v1415_v1 = vadd.f32 %v1407_v63, %v1313_v42 }
 0x707   :  { %v1357_v61 = vpop.f32.mrf.mxu0  ;;  %v1398_v62 = vpop.f32.mrf.mxu1 }
 0x708   :  { %1898 = vpow2.f32 %v1685_v59  ;;  %v1686_v41 = vmul.f32 -1.442695, %v1413_v60  ;;  %v1687_v2 = vmul.f32 -1.442695, %v1415_v1 }
 0x70a   :  { %1900 = vpow2.f32 %v1686_v41 }
 0x70b   :  { %1902 = vpow2.f32 %v1687_v2 }
 0x715   :  { %v1899_v3 = vpop.eup %1898 }
 0x716   :  { %v1419_v46 = vadd.f32 1.0, %v1899_v3 }
 0x717   :  { %v1901_v47 = vpop.eup %1900 }
 0x718   :  { %1904 = vrcp.f32 %v1419_v46  ;;  %v1425_v48 = vadd.f32 1.0, %v1901_v47  ;;  %v1903_v49 = vpop.eup %1902 }
 0x719   :  { %1906 = vtanh.f32 %v1414_v45  ;;  %v1432_v35 = vadd.f32 1.0, %v1903_v49 }
 0x71a   :  { %1908 = vrcp.f32 %v1425_v48 }
 0x71b   :  { %1910 = vrcp.f32 %v1432_v35 }
 0x725   :  { %v1905_v50 = vpop.eup %1904 }
 0x726   :  { %v1907_v51 = vpop.eup %1906 }
 0x727   :  { %v1909_v52 = vpop.eup %1908  ;;  %v1439_v25 = vmul.f32 %v1907_v51, %v1905_v50 }
 0x728   :  { %v1438_v13 = vmul.f32 %v1909_v52, %v1436_v34  ;;  %v1911_v16 = vpop.eup %1910 }
 0x72a   :  { %v1440_v17 = vadd.f32 %v1439_v25, %v1438_v13 }
 0x72c   :  { %1912 = vtanh.f32 %v1440_v17  ;;  %v1569_v58 = vrot.slane %v1440_v17, 6 }
 0x739   :  { %v1913_v18 = vpop.eup %1912 }
 0x73a   :  { %v1442_v33 = vmul.f32 %v1913_v18, %v1911_v16 }
 0x73c   :  { %v1447_v21 = vpack.c.bf16 %v1442_v33, %v1442_v33  ;;  %v1583_v22 = vsel %vm1578_vm1, %v1582_v20, %v1442_v33 }
 0x73e   :  { %v1449_v24 = vrot.slane %v1447_v21, 2 }
 0x740   :  { %1484 = vmatmul.mubr.bf16.vlgmr.msra.gmra.mxu0 %v1449_v24  ;;  %1525 = vmatmul.mubr.bf16.vlgmr.msra.gmra.mxu1 %v1449_v24 }
 0x800   :  { %v1485_v23 = vpop.f32.mrf.mxu0  ;;  %v1526_v19 = vpop.f32.mrf.mxu1 }
 0x801   :  { %v1537_v28 = vrot.slane %v1485_v23, 2  ;;  %v1539_v12 = vrot.slane %v1526_v19, 2 }
 0x802   :  { %v1487_v0 = vpop.f32.mrf.mxu0  ;;  %v1528_v27 = vpop.f32.mrf.mxu1 }
 0x803   :  { %v1545_v31 = vadd.f32 %v1537_v28, %v1443_v29  ;;  %v1538_v5 = vrot.slane %v1487_v0, 2  ;;  %v1540_v9 = vrot.slane %v1528_v27, 2  ;;  %v1547_v39 = vadd.f32 %v1539_v12, %v1445_v37 }
 0x804   :  { %v1489_v36 = vpop.f32.mrf.mxu0  ;;  %v1530_v4 = vpop.f32.mrf.mxu1 }
 0x805   :  { %v1688_v6 = vmul.f32 -1.442695, %v1545_v31  ;;  %v1546_v15 = vadd.f32 %v1538_v5, %v1444_v32  ;;  %v1548_v11 = vadd.f32 %v1540_v9, %v1446_v10 }
 0x806   :  { %v1490_v30 = vpop.f32.mrf.mxu0  ;;  %v1531_v26 = vpop.f32.mrf.mxu1 }
 0x807   :  { %1914 = vpow2.f32 %v1688_v6  ;;  %v1689_v7 = vmul.f32 -1.442695, %v1546_v15  ;;  %v1690_v14 = vmul.f32 -1.442695, %v1548_v11 }
 0x809   :  { %1916 = vpow2.f32 %v1689_v7 }
 0x80a   :  { %1918 = vpow2.f32 %v1690_v14 }
 0x814   :  { %v1915_v38 = vpop.eup %1914 }
 0x815   :  { %v1552_v40 = vadd.f32 1.0, %v1915_v38 }
 0x816   :  { %v1917_v53 = vpop.eup %1916 }
 0x817   :  { %1920 = vrcp.f32 %v1552_v40  ;;  %v1558_v54 = vadd.f32 1.0, %v1917_v53  ;;  %v1919_v55 = vpop.eup %1918 }
 0x818   :  { %1922 = vtanh.f32 %v1547_v39  ;;  %v1565_v60 = vadd.f32 1.0, %v1919_v55 }
 0x819   :  { %1924 = vrcp.f32 %v1558_v54 }
 0x81a   :  { %1926 = vrcp.f32 %v1565_v60 }
 0x824   :  { %v1921_v56 = vpop.eup %1920 }
 0x825   :  { %v1923_v57 = vpop.eup %1922 }
 0x826   :  { %v1925_v59 = vpop.eup %1924  ;;  %v1572_v61 = vmul.f32 %v1923_v57, %v1921_v56 }
 0x827   :  { %v1571_v62 = vmul.f32 %v1925_v59, %v1569_v58  ;;  %v1927_v63 = vpop.eup %1926 }
 0x829   :  { %v1573_v41 = vadd.f32 %v1572_v61, %v1571_v62 }
 0x82b   :  { %1928 = vtanh.f32 %v1573_v41  ;;  %1596 = vst [vmem:[#allocation3 - $0x6] sm:$0xc0] %v1573_v41 }
 0x838   :  { %v1929_v42 = vpop.eup %1928 }
 0x839   :  { %v1575_v1 = vmul.f32 %v1929_v42, %v1927_v63 }
 0x83b   :  { %v1584_v43 = vsel %vm1580_vm2, %v1583_v22, %v1575_v1  ;;  %1595 = vst [vmem:[#allocation2 - $0x6] sm:$0xc0] %v1575_v1 }
 0x83c   :  { %v1698_v2 = vpack.c.bf16 %v1584_v43, %v2388_v8 }
 0x83e   :  { %1699 = vst [vmem:[%s2536_s4] sm:$0xff] %v1698_v2  }
 0x83f   :  { %1601 = vsyncpa [#allocation6], 1 }

</bundles_post_ra>
